<compile_context>
chip_gen: v5e
topology: v5e:2x2
jax: 0.10.0
libtpu: 0.0.40
codegen_flags: <defaults>
</compile_context>

<pallas_src>
import functools
import math

import jax
import jax.numpy as jnp
from jax.experimental import pallas as pl
from jax.experimental.pallas import tpu as pltpu


def _round_up(x, m):
    return ((x + m - 1) // m) * m


# ----------------------------------------------------------------------------
# Pallas kernel: one (batch, row-stripe) program.
# ----------------------------------------------------------------------------
def _resgdn_kernel(x_ref, w1_ref, b1_ref, g1t_ref, bt1_ref,
                   w2_ref, b2_ref, g2t_ref, bt2_ref,
                   out_ref, xs_ref, xp2_ref, patch_ref,
                   *, H, W, C, Cp, K, P, TH, inv, conv_dtype):
    Hs1 = TH + 2 * P            # conv1 output rows kept per stripe (conv2 needs a P halo)
    M1 = Hs1 * W                # conv1 im2col rows
    M2 = TH * W                 # conv2 / final output rows
    KKC = K * K * C
    KKCpad = patch_ref.shape[1]

    # Zero the padded tail of the joint contraction once per program: the matching
    # weight rows are zero, but the scratch could hold stale NaN/Inf otherwise.
    if KKCpad > KKC:
        patch_ref[:, KKC:] = jnp.zeros((M1, KKCpad - KKC), conv_dtype)

    def conv(src_ref, rows_out, w_ref, b_ref):
        """KxK 'same' conv as ONE MXU matmul: (M, KKCpad) @ (KKCpad, Cp) -> f32."""
        rows_src = rows_out + 2 * P
        M = rows_out * W
        for kw in range(K):
            # Hoist the sublane-unaligned kw shift: K staging copies per conv, not K*K.
            xs_ref[0:rows_src, :, :] = src_ref[0:rows_src, kw:kw + W, :]
            for kh in range(K):
                col = (kh * K + kw) * C
                # kh slice + reshape are free relayouts when W % sublane pack == 0
                # (W=16 works for both f32 (8) and bf16 (16)).
                patch_ref[0:M, col:col + C] = (
                    xs_ref[kh:kh + rows_out, :, :].reshape(M, Cp)[:, 0:C])
        y = jnp.dot(patch_ref[0:M, :], w_ref[...],
                    preferred_element_type=jnp.float32)
        return y + b_ref[...]                               # f32 (M, Cp)

    def gdn(y, gT_ref, bt_ref):
        # norm2[n, i] = beta_i + sum_j gamma[i, j] * y[n, j]^2   (all f32)
        norm2 = jnp.dot(y * y, gT_ref[...],
                        preferred_element_type=jnp.float32) + bt_ref[...]
        if inv:
            return y * jnp.sqrt(norm2)
        return y * jax.lax.rsqrt(norm2)                     # EUP rsqrt, no divide

    # ---- conv1 over the stripe (+P extra output rows needed by conv2) ------------
    y1 = conv(x_ref, Hs1, w1_ref, b1_ref)
    x1 = gdn(y1, g1t_ref, bt1_ref)                          # (M1, Cp) f32

    # Rows of x1 that fall outside the real image (first / last stripe only) must be
    # ZERO for conv2's zero padding semantics; conv1 extrapolates non-zero values
    # there (bias + partial products) that the PyTorch module never computes.
    i = pl.program_id(1)
    s = jax.lax.broadcasted_iota(jnp.int32, (Hs1, 1, 1), 0)
    orig_row = i * TH - P + s
    valid = jnp.logical_and(orig_row >= 0, orig_row < H).astype(jnp.float32)

    # ---- stage x1 into the column-padded conv2 input buffer ----------------------
    xp2_ref[:, P:P + W, :] = (x1.reshape(Hs1, W, Cp) * valid).astype(conv_dtype)
    if P > 0:
        xp2_ref[:, 0:P, :] = jnp.zeros((Hs1, P, Cp), conv_dtype)
        xp2_ref[:, P + W:, :] = jnp.zeros((Hs1, P, Cp), conv_dtype)

    # ---- conv2 + residual + GDN2 --------------------------------------------------
    y2 = conv(xp2_ref, TH, w2_ref, b2_ref)                  # (M2, Cp) f32
    xres = x_ref[2 * P:2 * P + TH, P:P + W, :].astype(jnp.float32).reshape(M2, Cp)
    out = gdn(xres + y2, g2t_ref, bt2_ref)
    out_ref[0] = out.reshape(TH, W, Cp).astype(out_ref.dtype)


# ----------------------------------------------------------------------------
# Wrapper: NCHW/OIHW (PyTorch layout) -> lane-dense NHWC row stripes + im2col weights.
# ----------------------------------------------------------------------------
def resgdn_forward(x_nchw, w1, b1, w2, b2, g1, bt1, g2, bt2, *,
                   K, P, inv, conv_dtype=jnp.bfloat16, lane=128, stripe_rows=8):
    B, C, H, W = x_nchw.shape
    Cp = _round_up(C, lane)                 # lane-dense channel count (activations / GDN)
    KKC = K * K * C
    KKCpad = _round_up(KKC, lane)           # joint im2col contraction, padded once

    # Row stripes: each program emits TH output rows.  conv1 needs a 2P input halo
    # and conv2 a P halo of conv1's output, so stripes re-read a 2P-row halo from a
    # zero pre-padded image (no overlapping BlockSpecs needed).
    TH = max(1, min(stripe_rows, H))
    while H % TH:
        TH -= 1
    nH = H // TH
    THp = TH + 4 * P
    Hs1 = TH + 2 * P
    Wp2 = W + 2 * P
    M1 = Hs1 * W

    # NCHW -> NHWC, channel pad to Cp, zero spatial pre-pad (2P rows, P cols),
    # cast once to the MXU dtype (bf16 by default).
    x = jnp.transpose(x_nchw, (0, 2, 3, 1))
    x = jnp.pad(x, ((0, 0), (2 * P, 2 * P), (P, P), (0, Cp - C))).astype(conv_dtype)
    # Overlapping stripes, materialized contiguously: (B*nH, THp, Wp2, Cp).
    x_stripes = jnp.stack([x[:, i * TH:i * TH + THp] for i in range(nH)], axis=1)
    x_stripes = x_stripes.reshape(B * nH, THp, Wp2, Cp)

    def prep_conv(w, b):
        wk = jnp.transpose(w, (2, 3, 1, 0)).reshape(KKC, C)          # rows = (kh,kw,cin)
        wk = jnp.pad(wk, ((0, KKCpad - KKC), (0, Cp - C))).astype(conv_dtype)
        return wk, jnp.pad(b, (0, Cp - C)).reshape(1, Cp).astype(jnp.float32)

    def prep_gdn(g, bt):
        gT = jnp.pad(g.T, ((0, Cp - C), (0, Cp - C))).astype(jnp.float32)
        # beta = 1 on padded channels keeps padded lanes exactly 0 (0 * rsqrt(1)).
        btp = jnp.pad(bt, (0, Cp - C), constant_values=1.0).reshape(1, Cp)
        return gT, btp.astype(jnp.float32)

    w1f, b1f = prep_conv(w1, b1)
    w2f, b2f = prep_conv(w2, b2)
    g1t, bt1f = prep_gdn(g1, bt1)
    g2t, bt2f = prep_gdn(g2, bt2)

    kern = functools.partial(_resgdn_kernel, H=H, W=W, C=C, Cp=Cp, K=K, P=P,
                             TH=TH, inv=inv, conv_dtype=conv_dtype)

    def const_spec(shape):
        n = len(shape)
        return pl.BlockSpec(shape, lambda b, i, n=n: (0,) * n)

    in_specs = [
        # One row stripe per program (folded (batch, stripe) leading axis).
        pl.BlockSpec((None, THp, Wp2, Cp), lambda b, i, nH=nH: (b * nH + i, 0, 0, 0)),
        const_spec((KKCpad, Cp)), const_spec((1, Cp)),   # conv1 im2col weight, bias
        const_spec((Cp, Cp)), const_spec((1, Cp)),       # gdn1 gamma^T, beta
        const_spec((KKCpad, Cp)), const_spec((1, Cp)),   # conv2 im2col weight, bias
        const_spec((Cp, Cp)), const_spec((1, Cp)),       # gdn2 gamma^T, beta
    ]

    # Right-sized VMEM request: actual blocks (double-buffered) + scratch + headroom.
    esz = jnp.dtype(conv_dtype).itemsize
    scratch_bytes = (THp * W * Cp + Hs1 * Wp2 * Cp + M1 * KKCpad) * esz
    block_bytes = (2 * THp * Wp2 * Cp * esz          # x stripe block
                   + 2 * TH * W * Cp * 4             # out block
                   + 2 * 2 * KKCpad * Cp * esz       # conv weights
                   + 2 * 2 * Cp * Cp * 4             # gamma matrices
                   + 2 * 4 * Cp * 4)                 # biases / betas
    vmem_limit = int(min(scratch_bytes + block_bytes + 16 * 2 ** 20, 96 * 2 ** 20))

    out_p = pl.pallas_call(
        kern,
        out_shape=jax.ShapeDtypeStruct((B, H, W, Cp), jnp.float32),
        grid_spec=pltpu.PrefetchScalarGridSpec(
            num_scalar_prefetch=0,
            grid=(B, nH),
            in_specs=in_specs,
            out_specs=pl.BlockSpec((1, TH, W, Cp), lambda b, i: (b, i, 0, 0)),
            scratch_shapes=[
                pltpu.VMEM((THp, W, Cp), conv_dtype),     # kw-shift staging
                pltpu.VMEM((Hs1, Wp2, Cp), conv_dtype),   # conv2 padded input
                pltpu.VMEM((M1, KKCpad), conv_dtype),     # joint im2col patch
            ],
        ),
        compiler_params=pltpu.CompilerParams(
            dimension_semantics=("parallel", "parallel"),
            vmem_limit_bytes=vmem_limit,
        ),
    )(x_stripes, w1f, b1f, g1t, bt1f, w2f, b2f, g2t, bt2f)

    # Strip channel padding, back to NCHW.
    return jnp.transpose(out_p[..., :C], (0, 3, 1, 2))


# ----------------------------------------------------------------------------
# Parameter construction (deterministic, mirrors the PyTorch module shapes).
# ----------------------------------------------------------------------------
def make_conv_params(key, cin, cout, k):
    fan_in = cin * k * k
    bound = 1.0 / math.sqrt(fan_in)
    kw, kb = jax.random.split(key)
    w = jax.random.uniform(kw, (cout, cin, k, k), jnp.float32, -bound, bound)  # OIHW
    b = jax.random.uniform(kb, (cout,), jnp.float32, -bound, bound)
    return w, b


def make_gdn_params(c):
    reparam_offset = 2.0 ** -18
    pedestal = reparam_offset ** 2
    beta_min = 1e-6
    beta_bound = (beta_min + pedestal) ** 0.5
    gamma_bound = reparam_offset
    beta_raw = jnp.sqrt(jnp.ones((c,), jnp.float32) + pedestal)
    gamma_raw = jnp.sqrt(0.1 * jnp.eye(c, dtype=jnp.float32) + pedestal)
    beta_eff = jnp.maximum(beta_raw, beta_bound) ** 2 - pedestal
    gamma_eff = jnp.maximum(gamma_raw, gamma_bound) ** 2 - pedestal
    return gamma_eff, beta_eff


# ----------------------------------------------------------------------------
# Pure-JAX reference (NCHW, mirrors the PyTorch forward) for verification.
# ----------------------------------------------------------------------------
def resgdn_ref(x, w1, b1, w2, b2, g1, bt1, g2, bt2, P, inv):
    dn = ("NCHW", "OIHW", "NCHW")

    def conv(z, w, b):
        y = jax.lax.conv_general_dilated(z, w, (1, 1), [(P, P), (P, P)],
                                         dimension_numbers=dn)
        return y + b[None, :, None, None]

    def gdn(y, g, bt):
        n = jax.lax.conv_general_dilated(y * y, g[:, :, None, None], (1, 1),
                                         "VALID", dimension_numbers=dn)
        n = jnp.sqrt(n + bt[None, :, None, None])
        return y * n if inv else y / n

    x1 = gdn(conv(x, w1, b1), g1, bt1)
    x2 = conv(x1, w2, b2)
    return gdn(x + x2, g2, bt2)


if __name__ == "__main__":
    B, C, H, W = 2, 4, 16, 16
    K, stride, padding = 3, 1, 1
    inv = False
    assert stride == 1 and 2 * padding == K - 1  # required for the residual add

    key = jax.random.PRNGKey(0)
    kx, k1, k2 = jax.random.split(key, 3)
    x_nchw = jax.random.normal(kx, (B, C, H, W), jnp.float32)

    w1, b1 = make_conv_params(k1, C, C, K)
    w2, b2 = make_conv_params(k2, C, C, K)
    g1, bt1 = make_gdn_params(C)
    g2, bt2 = make_gdn_params(C)

    ref = resgdn_ref(x_nchw, w1, b1, w2, b2, g1, bt1, g2, bt2, padding, inv)

    # f32 conv path: tight correctness check against the f32 reference.
    out_f32 = resgdn_forward(x_nchw, w1, b1, w2, b2, g1, bt1, g2, bt2,
                             K=K, P=padding, inv=inv, conv_dtype=jnp.float32)
    jax.block_until_ready(out_f32)
    err32 = float(jnp.max(jnp.abs(out_f32 - ref)))
    assert err32 < 2e-3, f"f32 path max abs error {err32}"

    # Default bf16 conv path (MXU-native on v5e/v6e/v7x); tolerance is dtype-bound.
    out_bf16 = resgdn_forward(x_nchw, w1, b1, w2, b2, g1, bt1, g2, bt2,
                              K=K, P=padding, inv=inv)
    jax.block_until_ready(out_bf16)
    errbf = float(jnp.max(jnp.abs(out_bf16 - ref)))
    assert errbf < 1e-1, f"bf16 path max abs error {errbf}"

    print("KERNEL_OK")
</pallas_src>

<mosaic_0001>
module attributes {stable_mosaic.version = 11 : i64} {
  func.func @_resgdn_kernel(%arg0: i32, %arg1: i32, %arg2: memref<1x12x18x128xf32, #tpu.memory_space<vmem>>, %arg3: memref<128x128xf32, #tpu.memory_space<vmem>>, %arg4: memref<1x128xf32, #tpu.memory_space<vmem>>, %arg5: memref<128x128xf32, #tpu.memory_space<vmem>>, %arg6: memref<1x128xf32, #tpu.memory_space<vmem>>, %arg7: memref<128x128xf32, #tpu.memory_space<vmem>>, %arg8: memref<1x128xf32, #tpu.memory_space<vmem>>, %arg9: memref<128x128xf32, #tpu.memory_space<vmem>>, %arg10: memref<1x128xf32, #tpu.memory_space<vmem>>, %arg11: memref<1x8x16x128xf32, #tpu.memory_space<vmem>>, %arg12: memref<12x16x128xf32, #tpu.memory_space<vmem>>, %arg13: memref<10x18x128xf32, #tpu.memory_space<vmem>>, %arg14: memref<160x128xf32, #tpu.memory_space<vmem>>) attributes {dimension_semantics = [#tpu.dimension_semantics<parallel>, #tpu.dimension_semantics<parallel>], iteration_bounds = array<i64: 2, 2>, scalar_prefetch = 0 : i64, scratch_operands = 3 : i64, tpu.core_type = #tpu.core_type<tc>, window_params = [{transform_indices = @transform_0, window_bounds = array<i64: 1, 12, 18, 128>}, {pipeline_mode = #tpu.pipeline_mode<synchronous>, transform_indices = @transform_1, window_bounds = array<i64: 128, 128>}, {pipeline_mode = #tpu.pipeline_mode<synchronous>, transform_indices = @transform_2, window_bounds = array<i64: 1, 128>}, {pipeline_mode = #tpu.pipeline_mode<synchronous>, transform_indices = @transform_3, window_bounds = array<i64: 128, 128>}, {pipeline_mode = #tpu.pipeline_mode<synchronous>, transform_indices = @transform_4, window_bounds = array<i64: 1, 128>}, {pipeline_mode = #tpu.pipeline_mode<synchronous>, transform_indices = @transform_5, window_bounds = array<i64: 128, 128>}, {pipeline_mode = #tpu.pipeline_mode<synchronous>, transform_indices = @transform_6, window_bounds = array<i64: 1, 128>}, {pipeline_mode = #tpu.pipeline_mode<synchronous>, transform_indices = @transform_7, window_bounds = array<i64: 128, 128>}, {pipeline_mode = #tpu.pipeline_mode<synchronous>, transform_indices = @transform_8, window_bounds = array<i64: 1, 128>}, {transform_indices = @transform_9, window_bounds = array<i64: 1, 8, 16, 128>}]} {
    %cst = arith.constant 0.000000e+00 : f32
    %0 = vector.broadcast %cst : f32 to vector<160x92xf32>
    %c0 = arith.constant 0 : index
    %c36 = arith.constant 36 : index
    %1 = vector.load %arg14[%c0, %c36] : memref<160x128xf32, #tpu.memory_space<vmem>>, vector<160x92xf32>
    tpu.vector_store %arg14[%c0, %c36], %0 {strides = array<i32>} : memref<160x128xf32, #tpu.memory_space<vmem>>, vector<160x92xf32>,
    %c0_0 = arith.constant 0 : index
    %c0_1 = arith.constant 0 : index
    %c0_2 = arith.constant 0 : index
    %c0_3 = arith.constant 0 : index
    %2 = vector.load %arg2[%c0_0, %c0_1, %c0_2, %c0_3] : memref<1x12x18x128xf32, #tpu.memory_space<vmem>>, vector<1x12x16x128xf32>
    %3 = vector.shape_cast %2 : vector<1x12x16x128xf32> to vector<12x16x128xf32>
    %c0_4 = arith.constant 0 : index
    %c0_5 = arith.constant 0 : index
    %c0_6 = arith.constant 0 : index
    %4 = vector.load %arg12[%c0_4, %c0_5, %c0_6] : memref<12x16x128xf32, #tpu.memory_space<vmem>>, vector<12x16x128xf32>
    tpu.vector_store %arg12[%c0_4, %c0_5, %c0_6], %3 {strides = array<i32>} : memref<12x16x128xf32, #tpu.memory_space<vmem>>, vector<12x16x128xf32>,
    %c0_7 = arith.constant 0 : index
    %c0_8 = arith.constant 0 : index
    %c0_9 = arith.constant 0 : index
    %5 = vector.load %arg12[%c0_7, %c0_8, %c0_9] : memref<12x16x128xf32, #tpu.memory_space<vmem>>, vector<10x16x128xf32>
    %6 = vector.shape_cast %5 : vector<10x16x128xf32> to vector<160x128xf32>
    %7 = vector.extract_strided_slice %6 {offsets = [0, 0], sizes = [160, 4], strides = [1, 1]} : vector<160x128xf32> to vector<160x4xf32>
    %c0_10 = arith.constant 0 : index
    %c0_11 = arith.constant 0 : index
    %8 = vector.load %arg14[%c0_10, %c0_11] : memref<160x128xf32, #tpu.memory_space<vmem>>, vector<160x4xf32>
    tpu.vector_store %arg14[%c0_10, %c0_11], %7 {strides = array<i32>} : memref<160x128xf32, #tpu.memory_space<vmem>>, vector<160x4xf32>,
    %c1 = arith.constant 1 : index
    %c0_12 = arith.constant 0 : index
    %c0_13 = arith.constant 0 : index
    %9 = vector.load %arg12[%c1, %c0_12, %c0_13] : memref<12x16x128xf32, #tpu.memory_space<vmem>>, vector<10x16x128xf32>
    %10 = vector.shape_cast %9 : vector<10x16x128xf32> to vector<160x128xf32>
    %11 = vector.extract_strided_slice %10 {offsets = [0, 0], sizes = [160, 4], strides = [1, 1]} : vector<160x128xf32> to vector<160x4xf32>
    %c0_14 = arith.constant 0 : index
    %c12 = arith.constant 12 : index
    %12 = vector.load %arg14[%c0_14, %c12] : memref<160x128xf32, #tpu.memory_space<vmem>>, vector<160x4xf32>
    tpu.vector_store %arg14[%c0_14, %c12], %11 {strides = array<i32>} : memref<160x128xf32, #tpu.memory_space<vmem>>, vector<160x4xf32>,
    %c2 = arith.constant 2 : index
    %c0_15 = arith.constant 0 : index
    %c0_16 = arith.constant 0 : index
    %13 = vector.load %arg12[%c2, %c0_15, %c0_16] : memref<12x16x128xf32, #tpu.memory_space<vmem>>, vector<10x16x128xf32>
    %14 = vector.shape_cast %13 : vector<10x16x128xf32> to vector<160x128xf32>
    %15 = vector.extract_strided_slice %14 {offsets = [0, 0], sizes = [160, 4], strides = [1, 1]} : vector<160x128xf32> to vector<160x4xf32>
    %c0_17 = arith.constant 0 : index
    %c24 = arith.constant 24 : index
    %16 = vector.load %arg14[%c0_17, %c24] : memref<160x128xf32, #tpu.memory_space<vmem>>, vector<160x4xf32>
    tpu.vector_store %arg14[%c0_17, %c24], %15 {strides = array<i32>} : memref<160x128xf32, #tpu.memory_space<vmem>>, vector<160x4xf32>,
    %c0_18 = arith.constant 0 : index
    %c0_19 = arith.constant 0 : index
    %c1_20 = arith.constant 1 : index
    %c0_21 = arith.constant 0 : index
    %17 = vector.load %arg2[%c0_18, %c0_19, %c1_20, %c0_21] : memref<1x12x18x128xf32, #tpu.memory_space<vmem>>, vector<1x12x16x128xf32>
    %18 = vector.shape_cast %17 : vector<1x12x16x128xf32> to vector<12x16x128xf32>
    %c0_22 = arith.constant 0 : index
    %c0_23 = arith.constant 0 : index
    %c0_24 = arith.constant 0 : index
    %19 = vector.load %arg12[%c0_22, %c0_23, %c0_24] : memref<12x16x128xf32, #tpu.memory_space<vmem>>, vector<12x16x128xf32>
    tpu.vector_store %arg12[%c0_22, %c0_23, %c0_24], %18 {strides = array<i32>} : memref<12x16x128xf32, #tpu.memory_space<vmem>>, vector<12x16x128xf32>,
    %c0_25 = arith.constant 0 : index
    %c0_26 = arith.constant 0 : index
    %c0_27 = arith.constant 0 : index
    %20 = vector.load %arg12[%c0_25, %c0_26, %c0_27] : memref<12x16x128xf32, #tpu.memory_space<vmem>>, vector<10x16x128xf32>
    %21 = vector.shape_cast %20 : vector<10x16x128xf32> to vector<160x128xf32>
    %22 = vector.extract_strided_slice %21 {offsets = [0, 0], sizes = [160, 4], strides = [1, 1]} : vector<160x128xf32> to vector<160x4xf32>
    %c0_28 = arith.constant 0 : index
    %c4 = arith.constant 4 : index
    %23 = vector.load %arg14[%c0_28, %c4] : memref<160x128xf32, #tpu.memory_space<vmem>>, vector<160x4xf32>
    tpu.vector_store %arg14[%c0_28, %c4], %22 {strides = array<i32>} : memref<160x128xf32, #tpu.memory_space<vmem>>, vector<160x4xf32>,
    %c1_29 = arith.constant 1 : index
    %c0_30 = arith.constant 0 : index
    %c0_31 = arith.constant 0 : index
    %24 = vector.load %arg12[%c1_29, %c0_30, %c0_31] : memref<12x16x128xf32, #tpu.memory_space<vmem>>, vector<10x16x128xf32>
    %25 = vector.shape_cast %24 : vector<10x16x128xf32> to vector<160x128xf32>
    %26 = vector.extract_strided_slice %25 {offsets = [0, 0], sizes = [160, 4], strides = [1, 1]} : vector<160x128xf32> to vector<160x4xf32>
    %c0_32 = arith.constant 0 : index
    %c16 = arith.constant 16 : index
    %27 = vector.load %arg14[%c0_32, %c16] : memref<160x128xf32, #tpu.memory_space<vmem>>, vector<160x4xf32>
    tpu.vector_store %arg14[%c0_32, %c16], %26 {strides = array<i32>} : memref<160x128xf32, #tpu.memory_space<vmem>>, vector<160x4xf32>,
    %c2_33 = arith.constant 2 : index
    %c0_34 = arith.constant 0 : index
    %c0_35 = arith.constant 0 : index
    %28 = vector.load %arg12[%c2_33, %c0_34, %c0_35] : memref<12x16x128xf32, #tpu.memory_space<vmem>>, vector<10x16x128xf32>
    %29 = vector.shape_cast %28 : vector<10x16x128xf32> to vector<160x128xf32>
    %30 = vector.extract_strided_slice %29 {offsets = [0, 0], sizes = [160, 4], strides = [1, 1]} : vector<160x128xf32> to vector<160x4xf32>
    %c0_36 = arith.constant 0 : index
    %c28 = arith.constant 28 : index
    %31 = vector.load %arg14[%c0_36, %c28] : memref<160x128xf32, #tpu.memory_space<vmem>>, vector<160x4xf32>
    tpu.vector_store %arg14[%c0_36, %c28], %30 {strides = array<i32>} : memref<160x128xf32, #tpu.memory_space<vmem>>, vector<160x4xf32>,
    %c0_37 = arith.constant 0 : index
    %c0_38 = arith.constant 0 : index
    %c2_39 = arith.constant 2 : index
    %c0_40 = arith.constant 0 : index
    %32 = vector.load %arg2[%c0_37, %c0_38, %c2_39, %c0_40] : memref<1x12x18x128xf32, #tpu.memory_space<vmem>>, vector<1x12x16x128xf32>
    %33 = vector.shape_cast %32 : vector<1x12x16x128xf32> to vector<12x16x128xf32>
    %c0_41 = arith.constant 0 : index
    %c0_42 = arith.constant 0 : index
    %c0_43 = arith.constant 0 : index
    %34 = vector.load %arg12[%c0_41, %c0_42, %c0_43] : memref<12x16x128xf32, #tpu.memory_space<vmem>>, vector<12x16x128xf32>
    tpu.vector_store %arg12[%c0_41, %c0_42, %c0_43], %33 {strides = array<i32>} : memref<12x16x128xf32, #tpu.memory_space<vmem>>, vector<12x16x128xf32>,
    %c0_44 = arith.constant 0 : index
    %c0_45 = arith.constant 0 : index
    %c0_46 = arith.constant 0 : index
    %35 = vector.load %arg12[%c0_44, %c0_45, %c0_46] : memref<12x16x128xf32, #tpu.memory_space<vmem>>, vector<10x16x128xf32>
    %36 = vector.shape_cast %35 : vector<10x16x128xf32> to vector<160x128xf32>
    %37 = vector.extract_strided_slice %36 {offsets = [0, 0], sizes = [160, 4], strides = [1, 1]} : vector<160x128xf32> to vector<160x4xf32>
    %c0_47 = arith.constant 0 : index
    %c8 = arith.constant 8 : index
    %38 = vector.load %arg14[%c0_47, %c8] : memref<160x128xf32, #tpu.memory_space<vmem>>, vector<160x4xf32>
    tpu.vector_store %arg14[%c0_47, %c8], %37 {strides = array<i32>} : memref<160x128xf32, #tpu.memory_space<vmem>>, vector<160x4xf32>,
    %c1_48 = arith.constant 1 : index
    %c0_49 = arith.constant 0 : index
    %c0_50 = arith.constant 0 : index
    %39 = vector.load %arg12[%c1_48, %c0_49, %c0_50] : memref<12x16x128xf32, #tpu.memory_space<vmem>>, vector<10x16x128xf32>
    %40 = vector.shape_cast %39 : vector<10x16x128xf32> to vector<160x128xf32>
    %41 = vector.extract_strided_slice %40 {offsets = [0, 0], sizes = [160, 4], strides = [1, 1]} : vector<160x128xf32> to vector<160x4xf32>
    %c0_51 = arith.constant 0 : index
    %c20 = arith.constant 20 : index
    %42 = vector.load %arg14[%c0_51, %c20] : memref<160x128xf32, #tpu.memory_space<vmem>>, vector<160x4xf32>
    tpu.vector_store %arg14[%c0_51, %c20], %41 {strides = array<i32>} : memref<160x128xf32, #tpu.memory_space<vmem>>, vector<160x4xf32>,
    %c2_52 = arith.constant 2 : index
    %c0_53 = arith.constant 0 : index
    %c0_54 = arith.constant 0 : index
    %43 = vector.load %arg12[%c2_52, %c0_53, %c0_54] : memref<12x16x128xf32, #tpu.memory_space<vmem>>, vector<10x16x128xf32>
    %44 = vector.shape_cast %43 : vector<10x16x128xf32> to vector<160x128xf32>
    %45 = vector.extract_strided_slice %44 {offsets = [0, 0], sizes = [160, 4], strides = [1, 1]} : vector<160x128xf32> to vector<160x4xf32>
    %c0_55 = arith.constant 0 : index
    %c32 = arith.constant 32 : index
    %46 = vector.load %arg14[%c0_55, %c32] : memref<160x128xf32, #tpu.memory_space<vmem>>, vector<160x4xf32>
    tpu.vector_store %arg14[%c0_55, %c32], %45 {strides = array<i32>} : memref<160x128xf32, #tpu.memory_space<vmem>>, vector<160x4xf32>,
    %c0_56 = arith.constant 0 : index
    %c0_57 = arith.constant 0 : index
    %47 = vector.load %arg14[%c0_56, %c0_57] : memref<160x128xf32, #tpu.memory_space<vmem>>, vector<160x128xf32>
    %c0_58 = arith.constant 0 : index
    %c0_59 = arith.constant 0 : index
    %48 = vector.load %arg3[%c0_58, %c0_59] : memref<128x128xf32, #tpu.memory_space<vmem>>, vector<128x128xf32>
    %cst_60 = arith.constant dense<0.000000e+00> : vector<160x128xf32>
    %49 = tpu.matmul %47, %48, %cst_60 {dimension_numbers = #tpu.dot_dimension_numbers<[1], [0], [0], [1], [0, 0, 1, 1], [], []>} : vector<160x128xf32>, vector<128x128xf32>, vector<160x128xf32> -> vector<160x128xf32>
    %c0_61 = arith.constant 0 : index
    %c0_62 = arith.constant 0 : index
    %50 = vector.load %arg4[%c0_61, %c0_62] : memref<1x128xf32, #tpu.memory_space<vmem>>, vector<1x128xf32>
    %51 = vector.broadcast %50 : vector<1x128xf32> to vector<160x128xf32>
    %52 = arith.addf %49, %51 : vector<160x128xf32>
    %53 = arith.mulf %52, %52 : vector<160x128xf32>
    %c0_63 = arith.constant 0 : index
    %c0_64 = arith.constant 0 : index
    %54 = vector.load %arg5[%c0_63, %c0_64] : memref<128x128xf32, #tpu.memory_space<vmem>>, vector<128x128xf32>
    %cst_65 = arith.constant dense<0.000000e+00> : vector<160x128xf32>
    %55 = tpu.matmul %53, %54, %cst_65 {dimension_numbers = #tpu.dot_dimension_numbers<[1], [0], [0], [1], [0, 0, 1, 1], [], []>} : vector<160x128xf32>, vector<128x128xf32>, vector<160x128xf32> -> vector<160x128xf32>
    %c0_66 = arith.constant 0 : index
    %c0_67 = arith.constant 0 : index
    %56 = vector.load %arg6[%c0_66, %c0_67] : memref<1x128xf32, #tpu.memory_space<vmem>>, vector<1x128xf32>
    %57 = vector.broadcast %56 : vector<1x128xf32> to vector<160x128xf32>
    %58 = arith.addf %55, %57 : vector<160x128xf32>
    %59 = math.rsqrt %58 : vector<160x128xf32>
    %60 = arith.mulf %52, %59 : vector<160x128xf32>
    %61 = tpu.iota {dimensions = array<i32: 0>} : vector<10x1x1xi32>
    %c8_i32 = arith.constant 8 : i32
    %62 = arith.muli %arg1, %c8_i32 : i32
    %c1_i32 = arith.constant 1 : i32
    %63 = arith.subi %62, %c1_i32 : i32
    %64 = vector.broadcast %63 : i32 to vector<10x1x1xi32>
    %65 = arith.addi %64, %61 : vector<10x1x1xi32>
    %c0_i32 = arith.constant 0 : i32
    %66 = vector.broadcast %c0_i32 : i32 to vector<10x1x1xi32>
    %67 = arith.cmpi sge, %65, %66 : vector<10x1x1xi32>
    %c16_i32 = arith.constant 16 : i32
    %68 = vector.broadcast %c16_i32 : i32 to vector<10x1x1xi32>
    %69 = arith.cmpi slt, %65, %68 : vector<10x1x1xi32>
    %70 = arith.andi %67, %69 : vector<10x1x1xi1>
    %71 = arith.extui %70 : vector<10x1x1xi1> to vector<10x1x1xi32>
    %72 = arith.sitofp %71 : vector<10x1x1xi32> to vector<10x1x1xf32>
    %73 = vector.shape_cast %60 : vector<160x128xf32> to vector<10x16x128xf32>
    %74 = vector.broadcast %72 : vector<10x1x1xf32> to vector<10x16x128xf32>
    %75 = arith.mulf %73, %74 : vector<10x16x128xf32>
    %c0_68 = arith.constant 0 : index
    %c1_69 = arith.constant 1 : index
    %c0_70 = arith.constant 0 : index
    %76 = vector.load %arg13[%c0_68, %c1_69, %c0_70] : memref<10x18x128xf32, #tpu.memory_space<vmem>>, vector<10x16x128xf32>
    tpu.vector_store %arg13[%c0_68, %c1_69, %c0_70], %75 {strides = array<i32>} : memref<10x18x128xf32, #tpu.memory_space<vmem>>, vector<10x16x128xf32>,
    %cst_71 = arith.constant 0.000000e+00 : f32
    %77 = vector.broadcast %cst_71 : f32 to vector<10x1x128xf32>
    %c0_72 = arith.constant 0 : index
    %c0_73 = arith.constant 0 : index
    %c0_74 = arith.constant 0 : index
    %78 = vector.load %arg13[%c0_72, %c0_73, %c0_74] : memref<10x18x128xf32, #tpu.memory_space<vmem>>, vector<10x1x128xf32>
    tpu.vector_store %arg13[%c0_72, %c0_73, %c0_74], %77 {strides = array<i32>} : memref<10x18x128xf32, #tpu.memory_space<vmem>>, vector<10x1x128xf32>,
    %cst_75 = arith.constant 0.000000e+00 : f32
    %79 = vector.broadcast %cst_75 : f32 to vector<10x1x128xf32>
    %c0_76 = arith.constant 0 : index
    %c17 = arith.constant 17 : index
    %c0_77 = arith.constant 0 : index
    %80 = vector.load %arg13[%c0_76, %c17, %c0_77] : memref<10x18x128xf32, #tpu.memory_space<vmem>>, vector<10x1x128xf32>
    tpu.vector_store %arg13[%c0_76, %c17, %c0_77], %79 {strides = array<i32>} : memref<10x18x128xf32, #tpu.memory_space<vmem>>, vector<10x1x128xf32>,
    %c0_78 = arith.constant 0 : index
    %c0_79 = arith.constant 0 : index
    %c0_80 = arith.constant 0 : index
    %81 = vector.load %arg13[%c0_78, %c0_79, %c0_80] : memref<10x18x128xf32, #tpu.memory_space<vmem>>, vector<10x16x128xf32>
    %c0_81 = arith.constant 0 : index
    %c0_82 = arith.constant 0 : index
    %c0_83 = arith.constant 0 : index
    %82 = vector.load %arg12[%c0_81, %c0_82, %c0_83] : memref<12x16x128xf32, #tpu.memory_space<vmem>>, vector<10x16x128xf32>
    tpu.vector_store %arg12[%c0_81, %c0_82, %c0_83], %81 {strides = array<i32>} : memref<12x16x128xf32, #tpu.memory_space<vmem>>, vector<10x16x128xf32>,
    %c0_84 = arith.constant 0 : index
    %c0_85 = arith.constant 0 : index
    %c0_86 = arith.constant 0 : index
    %83 = vector.load %arg12[%c0_84, %c0_85, %c0_86] : memref<12x16x128xf32, #tpu.memory_space<vmem>>, vector<8x16x128xf32>
    %84 = vector.shape_cast %83 : vector<8x16x128xf32> to vector<128x128xf32>
    %85 = vector.extract_strided_slice %84 {offsets = [0, 0], sizes = [128, 4], strides = [1, 1]} : vector<128x128xf32> to vector<128x4xf32>
    %c0_87 = arith.constant 0 : index
    %c0_88 = arith.constant 0 : index
    %86 = vector.load %arg14[%c0_87, %c0_88] : memref<160x128xf32, #tpu.memory_space<vmem>>, vector<128x4xf32>
    tpu.vector_store %arg14[%c0_87, %c0_88], %85 {strides = array<i32>} : memref<160x128xf32, #tpu.memory_space<vmem>>, vector<128x4xf32>,
    %c1_89 = arith.constant 1 : index
    %c0_90 = arith.constant 0 : index
    %c0_91 = arith.constant 0 : index
    %87 = vector.load %arg12[%c1_89, %c0_90, %c0_91] : memref<12x16x128xf32, #tpu.memory_space<vmem>>, vector<8x16x128xf32>
    %88 = vector.shape_cast %87 : vector<8x16x128xf32> to vector<128x128xf32>
    %89 = vector.extract_strided_slice %88 {offsets = [0, 0], sizes = [128, 4], strides = [1, 1]} : vector<128x128xf32> to vector<128x4xf32>
    %c0_92 = arith.constant 0 : index
    %c12_93 = arith.constant 12 : index
    %90 = vector.load %arg14[%c0_92, %c12_93] : memref<160x128xf32, #tpu.memory_space<vmem>>, vector<128x4xf32>
    tpu.vector_store %arg14[%c0_92, %c12_93], %89 {strides = array<i32>} : memref<160x128xf32, #tpu.memory_space<vmem>>, vector<128x4xf32>,
    %c2_94 = arith.constant 2 : index
    %c0_95 = arith.constant 0 : index
    %c0_96 = arith.constant 0 : index
    %91 = vector.load %arg12[%c2_94, %c0_95, %c0_96] : memref<12x16x128xf32, #tpu.memory_space<vmem>>, vector<8x16x128xf32>
    %92 = vector.shape_cast %91 : vector<8x16x128xf32> to vector<128x128xf32>
    %93 = vector.extract_strided_slice %92 {offsets = [0, 0], sizes = [128, 4], strides = [1, 1]} : vector<128x128xf32> to vector<128x4xf32>
    %c0_97 = arith.constant 0 : index
    %c24_98 = arith.constant 24 : index
    %94 = vector.load %arg14[%c0_97, %c24_98] : memref<160x128xf32, #tpu.memory_space<vmem>>, vector<128x4xf32>
    tpu.vector_store %arg14[%c0_97, %c24_98], %93 {strides = array<i32>} : memref<160x128xf32, #tpu.memory_space<vmem>>, vector<128x4xf32>,
    %c0_99 = arith.constant 0 : index
    %c1_100 = arith.constant 1 : index
    %c0_101 = arith.constant 0 : index
    %95 = vector.load %arg13[%c0_99, %c1_100, %c0_101] : memref<10x18x128xf32, #tpu.memory_space<vmem>>, vector<10x16x128xf32>
    %c0_102 = arith.constant 0 : index
    %c0_103 = arith.constant 0 : index
    %c0_104 = arith.constant 0 : index
    %96 = vector.load %arg12[%c0_102, %c0_103, %c0_104] : memref<12x16x128xf32, #tpu.memory_space<vmem>>, vector<10x16x128xf32>
    tpu.vector_store %arg12[%c0_102, %c0_103, %c0_104], %95 {strides = array<i32>} : memref<12x16x128xf32, #tpu.memory_space<vmem>>, vector<10x16x128xf32>,
    %c0_105 = arith.constant 0 : index
    %c0_106 = arith.constant 0 : index
    %c0_107 = arith.constant 0 : index
    %97 = vector.load %arg12[%c0_105, %c0_106, %c0_107] : memref<12x16x128xf32, #tpu.memory_space<vmem>>, vector<8x16x128xf32>
    %98 = vector.shape_cast %97 : vector<8x16x128xf32> to vector<128x128xf32>
    %99 = vector.extract_strided_slice %98 {offsets = [0, 0], sizes = [128, 4], strides = [1, 1]} : vector<128x128xf32> to vector<128x4xf32>
    %c0_108 = arith.constant 0 : index
    %c4_109 = arith.constant 4 : index
    %100 = vector.load %arg14[%c0_108, %c4_109] : memref<160x128xf32, #tpu.memory_space<vmem>>, vector<128x4xf32>
    tpu.vector_store %arg14[%c0_108, %c4_109], %99 {strides = array<i32>} : memref<160x128xf32, #tpu.memory_space<vmem>>, vector<128x4xf32>,
    %c1_110 = arith.constant 1 : index
    %c0_111 = arith.constant 0 : index
    %c0_112 = arith.constant 0 : index
    %101 = vector.load %arg12[%c1_110, %c0_111, %c0_112] : memref<12x16x128xf32, #tpu.memory_space<vmem>>, vector<8x16x128xf32>
    %102 = vector.shape_cast %101 : vector<8x16x128xf32> to vector<128x128xf32>
    %103 = vector.extract_strided_slice %102 {offsets = [0, 0], sizes = [128, 4], strides = [1, 1]} : vector<128x128xf32> to vector<128x4xf32>
    %c0_113 = arith.constant 0 : index
    %c16_114 = arith.constant 16 : index
    %104 = vector.load %arg14[%c0_113, %c16_114] : memref<160x128xf32, #tpu.memory_space<vmem>>, vector<128x4xf32>
    tpu.vector_store %arg14[%c0_113, %c16_114], %103 {strides = array<i32>} : memref<160x128xf32, #tpu.memory_space<vmem>>, vector<128x4xf32>,
    %c2_115 = arith.constant 2 : index
    %c0_116 = arith.constant 0 : index
    %c0_117 = arith.constant 0 : index
    %105 = vector.load %arg12[%c2_115, %c0_116, %c0_117] : memref<12x16x128xf32, #tpu.memory_space<vmem>>, vector<8x16x128xf32>
    %106 = vector.shape_cast %105 : vector<8x16x128xf32> to vector<128x128xf32>
    %107 = vector.extract_strided_slice %106 {offsets = [0, 0], sizes = [128, 4], strides = [1, 1]} : vector<128x128xf32> to vector<128x4xf32>
    %c0_118 = arith.constant 0 : index
    %c28_119 = arith.constant 28 : index
    %108 = vector.load %arg14[%c0_118, %c28_119] : memref<160x128xf32, #tpu.memory_space<vmem>>, vector<128x4xf32>
    tpu.vector_store %arg14[%c0_118, %c28_119], %107 {strides = array<i32>} : memref<160x128xf32, #tpu.memory_space<vmem>>, vector<128x4xf32>,
    %c0_120 = arith.constant 0 : index
    %c2_121 = arith.constant 2 : index
    %c0_122 = arith.constant 0 : index
    %109 = vector.load %arg13[%c0_120, %c2_121, %c0_122] : memref<10x18x128xf32, #tpu.memory_space<vmem>>, vector<10x16x128xf32>
    %c0_123 = arith.constant 0 : index
    %c0_124 = arith.constant 0 : index
    %c0_125 = arith.constant 0 : index
    %110 = vector.load %arg12[%c0_123, %c0_124, %c0_125] : memref<12x16x128xf32, #tpu.memory_space<vmem>>, vector<10x16x128xf32>
    tpu.vector_store %arg12[%c0_123, %c0_124, %c0_125], %109 {strides = array<i32>} : memref<12x16x128xf32, #tpu.memory_space<vmem>>, vector<10x16x128xf32>,
    %c0_126 = arith.constant 0 : index
    %c0_127 = arith.constant 0 : index
    %c0_128 = arith.constant 0 : index
    %111 = vector.load %arg12[%c0_126, %c0_127, %c0_128] : memref<12x16x128xf32, #tpu.memory_space<vmem>>, vector<8x16x128xf32>
    %112 = vector.shape_cast %111 : vector<8x16x128xf32> to vector<128x128xf32>
    %113 = vector.extract_strided_slice %112 {offsets = [0, 0], sizes = [128, 4], strides = [1, 1]} : vector<128x128xf32> to vector<128x4xf32>
    %c0_129 = arith.constant 0 : index
    %c8_130 = arith.constant 8 : index
    %114 = vector.load %arg14[%c0_129, %c8_130] : memref<160x128xf32, #tpu.memory_space<vmem>>, vector<128x4xf32>
    tpu.vector_store %arg14[%c0_129, %c8_130], %113 {strides = array<i32>} : memref<160x128xf32, #tpu.memory_space<vmem>>, vector<128x4xf32>,
    %c1_131 = arith.constant 1 : index
    %c0_132 = arith.constant 0 : index
    %c0_133 = arith.constant 0 : index
    %115 = vector.load %arg12[%c1_131, %c0_132, %c0_133] : memref<12x16x128xf32, #tpu.memory_space<vmem>>, vector<8x16x128xf32>
    %116 = vector.shape_cast %115 : vector<8x16x128xf32> to vector<128x128xf32>
    %117 = vector.extract_strided_slice %116 {offsets = [0, 0], sizes = [128, 4], strides = [1, 1]} : vector<128x128xf32> to vector<128x4xf32>
    %c0_134 = arith.constant 0 : index
    %c20_135 = arith.constant 20 : index
    %118 = vector.load %arg14[%c0_134, %c20_135] : memref<160x128xf32, #tpu.memory_space<vmem>>, vector<128x4xf32>
    tpu.vector_store %arg14[%c0_134, %c20_135], %117 {strides = array<i32>} : memref<160x128xf32, #tpu.memory_space<vmem>>, vector<128x4xf32>,
    %c2_136 = arith.constant 2 : index
    %c0_137 = arith.constant 0 : index
    %c0_138 = arith.constant 0 : index
    %119 = vector.load %arg12[%c2_136, %c0_137, %c0_138] : memref<12x16x128xf32, #tpu.memory_space<vmem>>, vector<8x16x128xf32>
    %120 = vector.shape_cast %119 : vector<8x16x128xf32> to vector<128x128xf32>
    %121 = vector.extract_strided_slice %120 {offsets = [0, 0], sizes = [128, 4], strides = [1, 1]} : vector<128x128xf32> to vector<128x4xf32>
    %c0_139 = arith.constant 0 : index
    %c32_140 = arith.constant 32 : index
    %122 = vector.load %arg14[%c0_139, %c32_140] : memref<160x128xf32, #tpu.memory_space<vmem>>, vector<128x4xf32>
    tpu.vector_store %arg14[%c0_139, %c32_140], %121 {strides = array<i32>} : memref<160x128xf32, #tpu.memory_space<vmem>>, vector<128x4xf32>,
    %c0_141 = arith.constant 0 : index
    %c0_142 = arith.constant 0 : index
    %123 = vector.load %arg14[%c0_141, %c0_142] : memref<160x128xf32, #tpu.memory_space<vmem>>, vector<128x128xf32>
    %c0_143 = arith.constant 0 : index
    %c0_144 = arith.constant 0 : index
    %124 = vector.load %arg7[%c0_143, %c0_144] : memref<128x128xf32, #tpu.memory_space<vmem>>, vector<128x128xf32>
    %cst_145 = arith.constant dense<0.000000e+00> : vector<128x128xf32>
    %125 = tpu.matmul %123, %124, %cst_145 {dimension_numbers = #tpu.dot_dimension_numbers<[1], [0], [0], [1], [0, 0, 1, 1], [], []>} : vector<128x128xf32>, vector<128x128xf32>, vector<128x128xf32> -> vector<128x128xf32>
    %c0_146 = arith.constant 0 : index
    %c0_147 = arith.constant 0 : index
    %126 = vector.load %arg8[%c0_146, %c0_147] : memref<1x128xf32, #tpu.memory_space<vmem>>, vector<1x128xf32>
    %127 = vector.broadcast %126 : vector<1x128xf32> to vector<128x128xf32>
    %128 = arith.addf %125, %127 : vector<128x128xf32>
    %c0_148 = arith.constant 0 : index
    %c2_149 = arith.constant 2 : index
    %c1_150 = arith.constant 1 : index
    %c0_151 = arith.constant 0 : index
    %129 = vector.load %arg2[%c0_148, %c2_149, %c1_150, %c0_151] : memref<1x12x18x128xf32, #tpu.memory_space<vmem>>, vector<1x8x16x128xf32>
    %130 = vector.shape_cast %129 : vector<1x8x16x128xf32> to vector<8x16x128xf32>
    %131 = vector.shape_cast %130 : vector<8x16x128xf32> to vector<128x128xf32>
    %132 = arith.addf %131, %128 : vector<128x128xf32>
    %133 = arith.mulf %132, %132 : vector<128x128xf32>
    %c0_152 = arith.constant 0 : index
    %c0_153 = arith.constant 0 : index
    %134 = vector.load %arg9[%c0_152, %c0_153] : memref<128x128xf32, #tpu.memory_space<vmem>>, vector<128x128xf32>
    %cst_154 = arith.constant dense<0.000000e+00> : vector<128x128xf32>
    %135 = tpu.matmul %133, %134, %cst_154 {dimension_numbers = #tpu.dot_dimension_numbers<[1], [0], [0], [1], [0, 0, 1, 1], [], []>} : vector<128x128xf32>, vector<128x128xf32>, vector<128x128xf32> -> vector<128x128xf32>
    %c0_155 = arith.constant 0 : index
    %c0_156 = arith.constant 0 : index
    %136 = vector.load %arg10[%c0_155, %c0_156] : memref<1x128xf32, #tpu.memory_space<vmem>>, vector<1x128xf32>
    %137 = vector.broadcast %136 : vector<1x128xf32> to vector<128x128xf32>
    %138 = arith.addf %135, %137 : vector<128x128xf32>
    %139 = math.rsqrt %138 : vector<128x128xf32>
    %140 = arith.mulf %132, %139 : vector<128x128xf32>
    %141 = vector.shape_cast %140 : vector<128x128xf32> to vector<8x16x128xf32>
    %c0_157 = arith.constant 0 : index
    %c0_158 = arith.constant 0 : index
    %c0_159 = arith.constant 0 : index
    %c0_160 = arith.constant 0 : index
    %142 = vector.load %arg11[%c0_157, %c0_158, %c0_159, %c0_160] : memref<1x8x16x128xf32, #tpu.memory_space<vmem>>, vector<1x8x16x128xf32>
    %143 = vector.shape_cast %142 : vector<1x8x16x128xf32> to vector<8x16x128xf32>
    %144 = vector.shape_cast %141 : vector<8x16x128xf32> to vector<1x8x16x128xf32>
    tpu.vector_store %arg11[%c0_157, %c0_158, %c0_159, %c0_160], %144 {strides = array<i32>} : memref<1x8x16x128xf32, #tpu.memory_space<vmem>>, vector<1x8x16x128xf32>,
    return
  }
  func.func @transform_0(%arg0: i32, %arg1: i32) -> (i32, i32, i32, i32) {
    %c2_i32 = arith.constant 2 : i32
    %0 = arith.muli %arg0, %c2_i32 : i32
    %1 = arith.addi %0, %arg1 : i32
    %c0_i32 = arith.constant 0 : i32
    %c0_i32_0 = arith.constant 0 : i32
    %c0_i32_1 = arith.constant 0 : i32
    %c0_i32_2 = arith.constant 0 : i32
    return %1, %c0_i32, %c0_i32_0, %c0_i32_1 : i32, i32, i32, i32
  }
  func.func @transform_1(%arg0: i32, %arg1: i32) -> (i32, i32) {
    %c0_i32 = arith.constant 0 : i32
    %c0_i32_0 = arith.constant 0 : i32
    %c0_i32_1 = arith.constant 0 : i32
    return %c0_i32, %c0_i32_0 : i32, i32
  }
  func.func @transform_2(%arg0: i32, %arg1: i32) -> (i32, i32) {
    %c0_i32 = arith.constant 0 : i32
    %c0_i32_0 = arith.constant 0 : i32
    %c0_i32_1 = arith.constant 0 : i32
    return %c0_i32, %c0_i32_0 : i32, i32
  }
  func.func @transform_3(%arg0: i32, %arg1: i32) -> (i32, i32) {
    %c0_i32 = arith.constant 0 : i32
    %c0_i32_0 = arith.constant 0 : i32
    %c0_i32_1 = arith.constant 0 : i32
    return %c0_i32, %c0_i32_0 : i32, i32
  }
  func.func @transform_4(%arg0: i32, %arg1: i32) -> (i32, i32) {
    %c0_i32 = arith.constant 0 : i32
    %c0_i32_0 = arith.constant 0 : i32
    %c0_i32_1 = arith.constant 0 : i32
    return %c0_i32, %c0_i32_0 : i32, i32
  }
  func.func @transform_5(%arg0: i32, %arg1: i32) -> (i32, i32) {
    %c0_i32 = arith.constant 0 : i32
    %c0_i32_0 = arith.constant 0 : i32
    %c0_i32_1 = arith.constant 0 : i32
    return %c0_i32, %c0_i32_0 : i32, i32
  }
  func.func @transform_6(%arg0: i32, %arg1: i32) -> (i32, i32) {
    %c0_i32 = arith.constant 0 : i32
    %c0_i32_0 = arith.constant 0 : i32
    %c0_i32_1 = arith.constant 0 : i32
    return %c0_i32, %c0_i32_0 : i32, i32
  }
  func.func @transform_7(%arg0: i32, %arg1: i32) -> (i32, i32) {
    %c0_i32 = arith.constant 0 : i32
    %c0_i32_0 = arith.constant 0 : i32
    %c0_i32_1 = arith.constant 0 : i32
    return %c0_i32, %c0_i32_0 : i32, i32
  }
  func.func @transform_8(%arg0: i32, %arg1: i32) -> (i32, i32) {
    %c0_i32 = arith.constant 0 : i32
    %c0_i32_0 = arith.constant 0 : i32
    %c0_i32_1 = arith.constant 0 : i32
    return %c0_i32, %c0_i32_0 : i32, i32
  }
  func.func @transform_9(%arg0: i32, %arg1: i32) -> (i32, i32, i32, i32) {
    %c0_i32 = arith.constant 0 : i32
    %c0_i32_0 = arith.constant 0 : i32
    %c0_i32_1 = arith.constant 0 : i32
    return %arg0, %arg1, %c0_i32, %c0_i32_0 : i32, i32, i32, i32
  }
}

</mosaic_0001>

<bundles_post_ra>
// kernel: tpu_custom_call.1
= control target key start
LH: loop header
LB: loop body
LE: loop exit
PB: predicated region body
PF: predicated region fallthrough
CT: control target
= control target key end

     0   :  { %s5852_s0 = inlined_call_operand.vmem [shape: f32[4,12,18,128], index: 0, kind: input, shape index: {}]   ;;  %s5853_s1 = inlined_call_operand.vmem [shape: f32[128,128], index: 1, kind: input, shape index: {}]   ;;  %s5854_s2 = inlined_call_operand.vmem [shape: f32[1,128], index: 2, kind: input, shape index: {}]   ;;  %s5855_s3 = inlined_call_operand.vmem [shape: f32[128,128], index: 3, kind: input, shape index: {}]   ;;  %s5856_s4 = inlined_call_operand.vmem [shape: f32[1,128], index: 4, kind: input, shape index: {}]   ;;  %s5857_s5 = inlined_call_operand.vmem [shape: f32[128,128], index: 5, kind: input, shape index: {}]   ;;  %s5858_s6 = inlined_call_operand.vmem [shape: f32[1,128], index: 6, kind: input, shape index: {}]   ;;  %s5859_s7 = inlined_call_operand.vmem [shape: f32[128,128], index: 7, kind: input, shape index: {}]   ;;  %s5860_s8 = inlined_call_operand.vmem [shape: f32[1,128], index: 8, kind: input, shape index: {}]   ;;  %s5861_s9 = inlined_call_operand.hbm [shape: f32[2,16,16,128], index: 9, kind: output, shape index: {}]  }
   0x1   :  { %5882 = sst [smem:[#allocation13_spill]] %s5852_s0 }
   0x2   :  { %5883 = sst [smem:[#allocation14_spill]] %s5853_s1 }
   0x3   :  { %14 = vsyncpa [#allocation6], 0 }
   0x4   :  { %16 = vsyncpa [#allocation6 + $0x1], 0  ;;  %s3916_s30 = smov 0   ;;  %s3918_s10 = smov 0  }
   0x5   :  { %s3920_s11 = smov 0   ;;  %s3922_s12 = smov 0  }
   0x6   :  { %s3924_s13 = smov 0   ;;  %s3926_s14 = smov 0  }
   0x7   :  { %s3928_s15 = smov 0   ;;  %s3930_s16 = smov 0  }
   0x8 LB: > { %5884 = sst [smem:[#allocation8_spill]] %s3846_s14  ;;  %s3554_s17 = sadd.s32 4294967295, %s3854_s16   ;;  %s3854_s16 = sphi %s3930_s16, %s22_s16   ;;  %s3850_s15 = sphi %s3928_s15, %s5905_s15   ;;  %s3846_s14 = sphi %s3926_s14, %s5904_s14   ;;  %s3842_s13 = sphi %s3924_s13, %s5903_s13   ;;  %s3838_s12 = sphi %s3922_s12, %s5902_s12   ;;  %s3834_s11 = sphi %s3920_s11, %s5908_s11   ;;  %s3830_s10 = sphi %s3918_s10, %s5907_s10   ;;  %s3826_s30 = sphi %s3916_s30, %s5906_s30  }
   0x9   : > { %5885 = sst [smem:[#allocation9_spill]] %s3850_s15  ;;  %s3555_s18 = sadd.s32 4294967294, %s3854_s16  }
   0xa   : > { %s31_s19 = sadd.s32 1, %s3846_s14  ;;  %s34_s20 = sadd.s32 1, %s3850_s15 }
   0xb   : > { %p32_p0 = scmp.ge.s32.totalorder %s31_s19, 2  ;;  %p251_p1 = scmp.ne.s32.totalorder %s3834_s11, %s3830_s10 }
   0xc   : > { %p252_p2 = scmp.eq.s32.totalorder %s3554_s17, 3  ;;  %p257_p5 = scmp.ne.s32.totalorder %s3830_s10, %s3826_s30 }
   0xd   : > { %s5910_s19 = smov (%p32_p0, %s31_s19), 0  ;;  %s5912_s20 = smov (!%p32_p0, %s34_s20), %s3850_s15 }
   0xe   : > { %5886 = sst [smem:[#allocation10_spill]] %s5910_s19  ;;  %s237_s21 = ssub.s32 %s3846_s14, %s5910_s19 }
   0xf   : > { %p3967_p3 = por %p252_p2, %p251_p1  ;;  %p36_p4 = scmp.ge.s32.totalorder %s5912_s20, 2 }
  0x10   : > { %p258_p6 = scmp.eq.s32.totalorder %s3555_s18, 3  ;;  %p3560_p7 = scmp.ge.s32.totalorder %s3854_s16, 1 }
  0x11   : > { %s5914_s20 = smov (%p36_p4, %s5912_s20), 0  ;;  %p312_p9 = scmp.lt.s32.totalorder %s3854_s16, 5 }
  0x12   : > { %5888 = sst [smem:[#allocation11_spill]] %s5914_s20  ;;  %p3976_p8 = por %p258_p6, %p257_p5 }
  0x13   : > { %s236_s24 = ssub.s32 %s3850_s15, %s5914_s20  ;;  %s241_s25 = sadd.s32 1, %s3834_s11 }
  0x14   : > { %s238_s26 = sor.u32 %s237_s21, %s236_s24  ;;  %p313_p10 = pnand %p3560_p7, %p312_p9 }
  0x15   : > { %p239_p11 = scmp.eq.s32.totalorder %s238_s26, 0  ;;  %s3562_s28 = sshll.u32 (!%p313_p10), %s3842_s13, 1 }
  0x16   : > { %316 = sbr.rel (%p313_p10) target bundleno = 1305 (0x519), region = 56  ;;  %s351_s29 = sadd.s32 (!%p313_p10), %s3838_s12, %s3562_s28 }
  0x17   : > { %s3985_s27 = scalar_select %p239_p11, %s3834_s11, %s241_s25  }
  0x18   : > { %p352_p12 = scmp.lt.s32.totalorder (!%p313_p10), %s351_s29, 3  ;;  %s5891_s0 = sld [smem:[#allocation13_spill]] (!%p313_p10) }
  0x19   : > { %5890 = sst [smem:[#allocation12_spill]] %s3985_s27  ;;  %s5862_s25 = smov (!%p313_p10), 12  }
  0x1a   : > { %s5868_s26 = smov (!%p313_p10), 24   ;;  %s5866_s28 = smov (!%p313_p10), 4  }
  0x1b   : > { %vm360_vm0 = vcmask 1047840   ;;  %v3856_v0 = vmov 0.0   ;;  %s5916_s29 = smov (!%p352_p12, %s351_s29), 3  ;;  %vm449_vm1 = vcmask 31744   ;;  %s5874_s18 = smov 8   ;;  %vm571_vm2 = vcmask 130144  }
  0x1c   : > { %363 = vst.msk [vmem:[#allocation4 + $0x10] sm:$0xff] %vm360_vm0, %v3856_v0  ;;  %s3600_s17 = smul.u32 288, %s5916_s29  ;;  %s5864_s29 = smov 16   ;;  %vm693_vm3 = vcmask 228544   ;;  %vm862_vm4 = vcmask 64544   ;;  %vm983_vm5 = vcmask 162944  }
  0x1d   : > { %361 = vst.msk [vmem:[#allocation4] sm:$0xff] %vm360_vm0, %v3856_v0  ;;  %s5872_s21 = smov 20   ;;  %s5892_s1 = sld [smem:[#allocation14_spill]]  ;;  %vm1104_vm6 = vcmask 261344   ;;  %vm1273_vm7 = vcmask 97344   ;;  %vm1394_vm8 = vcmask 195744  }
  0x1e   : > { %362 = vst.msk [vmem:[#allocation4 + $0x8] sm:$0xff] %vm360_vm0, %v3856_v0  ;;  %s4006_s24 = scalar_lea.vmem %s5891_s0, %s3600_s17  ;;  %s5870_s17 = smov 28   ;;  %vm1515_vm9 = vcmask 294144  }
  0x1f   : > { %364 = vst.msk [vmem:[#allocation4 + $0x18] sm:$0xff] %vm360_vm0, %v3856_v0  ;;  %v383_v1 = vld [vmem:[%s4006_s24 + $0x18] sm:$0xff]  ;;  %v385_v2 = vld [vmem:[%s4006_s24 + $0x30] sm:$0xff]  ;;  %v4022_v3 = vld [vmem:[%s4006_s24 + $0x48] sm:$0xff]  ;;  %s5896_s19 = smov 28   ;;  %s5898_s0 = smov 20  }
  0x20   : > { %365 = vst.msk [vmem:[#allocation4 + $0x20] sm:$0xff] %vm360_vm0, %v3856_v0  ;;  %511 = vrot.lane.b32.xlu0 %v383_v1, %s5862_s25  ;;  %515 = vrot.lane.b32.xlu1 %v385_v2, %s5862_s25  ;;  %v384_v4 = vld [vmem:[%s4006_s24 + $0x20] sm:$0xff]  ;;  %v4034_v5 = vld [vmem:[%s4006_s24 + $0x38] sm:$0xff]  ;;  %s5899_s27 = smov 32   ;;  %s5900_s14 = smov 12  }
  0x21   : > { %366 = vst.msk [vmem:[#allocation4 + $0x28] sm:$0xff] %vm360_vm0, %v3856_v0  ;;  %519 = vrot.lane.b32.xlu2 %v4022_v3, %s5862_s25  ;;  %v4046_v6 = vld [vmem:[%s4006_s24 + $0x50] sm:$0xff]  ;;  %v4059_v7 = vld [vmem:[%s4006_s24 + $0x60] sm:$0xff]  ;;  %v4062_v8 = vld [vmem:[%s4006_s24 + $0x68] sm:$0xff] }
  0x22   : > { %367 = vst.msk [vmem:[#allocation4 + $0x30] sm:$0xff] %vm360_vm0, %v3856_v0  ;;  %v714_v9 = vld [vmem:[%s4006_s24 + $0x1] sm:$0xff]  ;;  %v716_v10 = vld [vmem:[%s4006_s24 + $0x19] sm:$0xff]  ;;  %v4085_v11 = vld [vmem:[%s4006_s24 + $0x31] sm:$0xff] }
  0x23   : > { %368 = vst.msk [vmem:[#allocation4 + $0x38] sm:$0xff] %vm360_vm0, %v3856_v0  ;;  %v1125_v12 = vld [vmem:[%s4006_s24 + $0x2] sm:$0xff]  ;;  %v1127_v13 = vld [vmem:[%s4006_s24 + $0x1a] sm:$0xff]  ;;  %v4102_v14 = vld [vmem:[%s4006_s24 + $0x32] sm:$0xff] }
  0x24   : > { %369 = vst.msk [vmem:[#allocation4 + $0x40] sm:$0xff] %vm360_vm0, %v3856_v0  ;;  %v715_v15 = vld [vmem:[%s4006_s24 + $0x9] sm:$0xff]  ;;  %v717_v16 = vld [vmem:[%s4006_s24 + $0x21] sm:$0xff]  ;;  %v4124_v17 = vld [vmem:[%s4006_s24 + $0x39] sm:$0xff] }
  0x25   : > { %452 = vst.msk [vmem:[#allocation4 + $0x10] sm:$0xff] %vm449_vm1, %v383_v1  ;;  %v1126_v18 = vld [vmem:[%s4006_s24 + $0xa] sm:$0xff]  ;;  %v1128_v19 = vld [vmem:[%s4006_s24 + $0x22] sm:$0xff]  ;;  %v4133_v20 = vld [vmem:[%s4006_s24 + $0x3a] sm:$0xff] }
  0x26   : > { %370 = vst.msk [vmem:[#allocation4 + $0x48] sm:$0xff] %vm360_vm0, %v3856_v0  ;;  %v4141_v21 = vld [vmem:[%s4006_s24 + $0x49] sm:$0xff]  ;;  %v4161_v23 = vld [vmem:[%s4006_s24 + $0x51] sm:$0xff]  ;;  %v381_v24 = vld [vmem:[%s4006_s24] sm:$0xff] }
  0x27   : > { %371 = vst.msk [vmem:[#allocation4 + $0x50] sm:$0xff] %vm360_vm0, %v3856_v0  ;;  %v4149_v22 = vld [vmem:[%s4006_s24 + $0x4a] sm:$0xff]  ;;  %v4171_v25 = vld [vmem:[%s4006_s24 + $0x52] sm:$0xff]  ;;  %v1568_v31 = vld [vmem:[%s5892_s1 + $0x60] sm:$0xff] }
  0x28   : > { %372 = vst.msk [vmem:[#allocation4 + $0x58] sm:$0xff] %vm360_vm0, %v3856_v0  ;;  %513 = vrot.lane.b32.xlu0 %v384_v4, %s5862_s25  ;;  %517 = vrot.lane.b32.xlu1 %v4034_v5, %s5862_s25  ;;  %v382_v26 = vld [vmem:[%s4006_s24 + $0x8] sm:$0xff]  ;;  %v1571_v27 = vld [vmem:[%s5892_s1 + $0x78] sm:$0xff] }
  0x29   : > { %373 = vst.msk [vmem:[#allocation4 + $0x60] sm:$0xff] %vm360_vm0, %v3856_v0  ;;  %521 = vrot.lane.b32.xlu2 %v4046_v6, %s5862_s25  ;;  %v1570_v28 = vld [vmem:[%s5892_s1 + $0x70] sm:$0xff]  ;;  %1576 = vmatpush.msra.mxu0 %v1571_v27  ;;  %v1569_v30 = vld [vmem:[%s5892_s1 + $0x68] sm:$0xff]  ;;  %v1567_v32 = vld [vmem:[%s5892_s1 + $0x58] sm:$0xff] }
  0x2a   : > { %374 = vst.msk [vmem:[#allocation4 + $0x68] sm:$0xff] %vm360_vm0, %v3856_v0  ;;  %v4200_v33 = vld [vmem:[%s4006_s24 + $0x61] sm:$0xff]  ;;  %v1566_v35 = vld [vmem:[%s5892_s1 + $0x50] sm:$0xff]  ;;  %v1563_v40 = vld [vmem:[%s5892_s1 + $0x38] sm:$0xff] }
  0x2b   : > { %375 = vst.msk [vmem:[#allocation4 + $0x70] sm:$0xff] %vm360_vm0, %v3856_v0  ;;  %1577 = vmatpush.msra.mxu0 %v1570_v28  ;;  %v1565_v36 = vld [vmem:[%s5892_s1 + $0x48] sm:$0xff]  ;;  %v1564_v37 = vld [vmem:[%s5892_s1 + $0x40] sm:$0xff]  ;;  %v1562_v41 = vld [vmem:[%s5892_s1 + $0x30] sm:$0xff] }
  0x2c   : > { %376 = vst.msk [vmem:[#allocation4 + $0x78] sm:$0xff] %vm360_vm0, %v3856_v0  ;;  %v4219_v38 = vld [vmem:[%s4006_s24 + $0x62] sm:$0xff]  ;;  %v1559_v48 = vld [vmem:[%s5892_s1 + $0x18] sm:$0xff]  ;;  %v1558_v50 = vld [vmem:[%s5892_s1 + $0x10] sm:$0xff] }
  0x2d   : > { %377 = vst.msk [vmem:[#allocation4 + $0x80] sm:$0xff] %vm360_vm0, %v3856_v0  ;;  %1578 = vmatpush.msra.mxu0 %v1569_v30  ;;  %v1561_v42 = vld [vmem:[%s5892_s1 + $0x28] sm:$0xff]  ;;  %v1560_v45 = vld [vmem:[%s5892_s1 + $0x20] sm:$0xff]  ;;  %v4264_v52 = vld [vmem:[%s4006_s24 + $0x78] sm:$0xff] }
  0x2e   : > { %378 = vst.msk [vmem:[#allocation4 + $0x88] sm:$0xff] %vm360_vm0, %v3856_v0  ;;  %v4242_v46 = vld [vmem:[%s4006_s24 + $0x69] sm:$0xff]  ;;  %v4249_v49 = vld [vmem:[%s4006_s24 + $0x80] sm:$0xff] }
  0x2f   : > { %379 = vst.msk [vmem:[#allocation4 + $0x90] sm:$0xff] %vm360_vm0, %v3856_v0  ;;  %1579 = vmatpush.msra.mxu0 %v1568_v31  ;;  %v1557_v51 = vld [vmem:[%s5892_s1 + $0x8] sm:$0xff]  ;;  %v1556_v55 = vld [vmem:[%s5892_s1] sm:$0xff]  ;;  %s3564_s1 = sshll.u32 %s3838_s12, 3 }
  0x30   : > { %380 = vst.msk [vmem:[#allocation4 + $0x98] sm:$0xff] %vm360_vm0, %v3856_v0  ;;  %523 = vrot.lane.b32.xlu0 %v4059_v7, %s5862_s25  ;;  %525 = vrot.lane.b32.xlu1 %v4062_v8, %s5862_s25  ;;  %s5876_s25 = smov 32   ;;  %v4276_v56 = vld [vmem:[%s4006_s24 + $0x6a] sm:$0xff]  ;;  %v4291_v61 = vld [vmem:[%s4006_s24 + $0x79] sm:$0xff] }
  0x31   : > { %2092 = vst [vmem:[#allocation3] sm:$0x1] %v3856_v0  ;;  %633 = vrot.lane.b32.xlu2 %v385_v2, %s5868_s26  ;;  %1580 = vmatpush.msra.mxu0 %v1567_v32 }
  0x32   : > { %2093 = vst [vmem:[#allocation3 + $0x18] sm:$0x1] %v3856_v0 }
  0x33   : > { %2094 = vst [vmem:[#allocation3 + $0x30] sm:$0x1] %v3856_v0  ;;  %1581 = vmatpush.msra.mxu0 %v1566_v35 }
  0x34   : > { %2095 = vst [vmem:[#allocation3 + $0x48] sm:$0x1] %v3856_v0 }
  0x35   : > { %2096 = vst [vmem:[#allocation3 + $0x60] sm:$0x1] %v3856_v0  ;;  %1582 = vmatpush.msra.mxu0 %v1565_v36 }
  0x36   : > { %2097 = vst [vmem:[#allocation3 + $0x78] sm:$0x1] %v3856_v0 }
  0x37   : > { %2098 = vst [vmem:[#allocation3 + $0x90] sm:$0x1] %v3856_v0  ;;  %1583 = vmatpush.msra.mxu0 %v1564_v37  ;;  %v4404_v37 = vld [vmem:[%s4006_s24 + $0x9a] sm:$0xff] }
  0x38   : > { %2099 = vst [vmem:[#allocation3 + $0xa8] sm:$0x1] %v3856_v0  ;;  %802 = vrot.lane.b32.xlu0 %v714_v9, %s5866_s28  ;;  %923 = vrot.lane.b32.xlu1 %v716_v10, %s5864_s29  ;;  %v4320_v9 = vld [vmem:[%s4006_s24 + $0x81] sm:$0xff] }
  0x39   : > { %2100 = vst [vmem:[#allocation3 + $0xc0] sm:$0x1] %v3856_v0  ;;  %1044 = vrot.lane.b32.xlu2 %v4085_v11, %s5870_s17  ;;  %1584 = vmatpush.msra.mxu0 %v1563_v40 }
  0x3a   : > { %2101 = vst [vmem:[#allocation3 + $0xd8] sm:$0x1] %v3856_v0 }
  0x3b   : > { %2102 = vst [vmem:[#allocation3 + $0x11] sm:$0x1] %v3856_v0  ;;  %1585 = vmatpush.msra.mxu0 %v1562_v41 }
  0x3c   : > { %2103 = vst [vmem:[#allocation3 + $0x29] sm:$0x1] %v3856_v0 }
  0x3d   : > { %2104 = vst [vmem:[#allocation3 + $0x41] sm:$0x1] %v3856_v0  ;;  %1586 = vmatpush.msra.mxu0 %v1561_v42 }
  0x3e   : > { %2105 = vst [vmem:[#allocation3 + $0x59] sm:$0x1] %v3856_v0 }
  0x3f   : > { %2106 = vst [vmem:[#allocation3 + $0x71] sm:$0x1] %v3856_v0  ;;  %1587 = vmatpush.msra.mxu0 %v1560_v45  ;;  %v4425_v45 = vld [vmem:[%s4006_s24 + $0xa9] sm:$0xff] }
  0x40   : > { %2107 = vst [vmem:[#allocation3 + $0x89] sm:$0x1] %v3856_v0  ;;  %1213 = vrot.lane.b32.xlu0 %v1125_v12, %s5874_s18  ;;  %1334 = vrot.lane.b32.xlu1 %v1127_v13, %s5872_s21  ;;  %v4332_v12 = vld [vmem:[%s4006_s24 + $0x90] sm:$0xff] }
  0x41   : > { %2108 = vst [vmem:[#allocation3 + $0xa1] sm:$0x1] %v3856_v0  ;;  %1455 = vrot.lane.b32.xlu2 %v4102_v14, %s5876_s25  ;;  %1588 = vmatpush.msra.mxu0 %v1559_v48  ;;  %v4436_v48 = vld [vmem:[%s4006_s24 + $0xc0] sm:$0xff] }
  0x42   : > { %2109 = vst [vmem:[#allocation3 + $0xb9] sm:$0x1] %v3856_v0 }
  0x43   : > { %2110 = vst [vmem:[#allocation3 + $0xd1] sm:$0x1] %v3856_v0  ;;  %1589 = vmatpush.msra.mxu0 %v1558_v50  ;;  %v4444_v50 = vld [vmem:[%s4006_s24 + $0xb0] sm:$0xff] }
  0x44   : > { %2111 = vst [vmem:[#allocation3 + $0xe9] sm:$0x1] %v3856_v0 }
  0x45   : > { %454 = vst.msk [vmem:[#allocation4 + $0x20] sm:$0xff] %vm449_vm1, %v385_v2  ;;  %1590 = vmatpush.msra.mxu0 %v1557_v51  ;;  %v4303_v2 = vld [vmem:[%s4006_s24 + $0x7a] sm:$0xff] }
  0x46   : > { %453 = vst.msk [vmem:[#allocation4 + $0x18] sm:$0xff] %vm449_vm1, %v384_v4 }
  0x47   : > { %455 = vst.msk [vmem:[#allocation4 + $0x28] sm:$0xff] %vm449_vm1, %v4034_v5  ;;  %1591 = vmatpush.msra.mxu0 %v1556_v55 }
  0x48   : > { %458 = vst.msk [vmem:[#allocation4 + $0x40] sm:$0xff] %vm449_vm1, %v4059_v7  ;;  %635 = vrot.lane.b32.xlu0 %v4034_v5, %s5868_s26  ;;  %804 = vrot.lane.b32.xlu1 %v715_v15, %s5866_s28  ;;  %v4342_v15 = vld [vmem:[%s4006_s24 + $0x82] sm:$0xff] }
  0x49   : > { %459 = vst.msk [vmem:[#allocation4 + $0x48] sm:$0xff] %vm449_vm1, %v4062_v8  ;;  %925 = vrot.lane.b32.xlu2 %v717_v16, %s5864_s29 }
  0x4a   : > { %456 = vst.msk [vmem:[#allocation4 + $0x30] sm:$0xff] %vm449_vm1, %v4022_v3 }
  0x4b   : > { %457 = vst.msk [vmem:[#allocation4 + $0x38] sm:$0xff] %vm449_vm1, %v4046_v6 }
  0x4c   : > { %450 = vst.msk [vmem:[#allocation4] sm:$0xff] %vm449_vm1, %v381_v24 }
  0x4d   : > { %451 = vst.msk [vmem:[#allocation4 + $0x8] sm:$0xff] %vm449_vm1, %v382_v26  ;;  %v4376_v26 = vld [vmem:[%s4006_s24 + $0x92] sm:$0xff] }
  0x4e   : > { %461 = vst.msk [vmem:[#allocation4 + $0x58] sm:$0xff] %vm449_vm1, %v4249_v49 }
  0x4f   : > { %460 = vst.msk [vmem:[#allocation4 + $0x50] sm:$0xff] %vm449_vm1, %v4264_v52 }
  0x50   : > { %1046 = vrot.lane.b32.xlu0 %v4124_v17, %s5870_s17  ;;  %1215 = vrot.lane.b32.xlu1 %v1126_v18, %s5874_s18  ;;  %462 = vst.msk [vmem:[#allocation4 + $0x60] sm:$0xff] %vm449_vm1, %v4332_v12 }
  0x51   : > { %1336 = vrot.lane.b32.xlu2 %v1128_v19, %s5872_s21  ;;  %466 = vst.msk [vmem:[#allocation4 + $0x80] sm:$0xff] %vm449_vm1, %v4436_v48 }
  0x52   : > { %465 = vst.msk [vmem:[#allocation4 + $0x78] sm:$0xff] %vm449_vm1, %v4444_v50 }
  0x58   : > { %1457 = vrot.lane.b32.xlu0 %v4133_v20, %s5876_s25  ;;  %637 = vrot.lane.b32.xlu1 %v4022_v3, %s5868_s26 }
  0x59   : > { %806 = vrot.lane.b32.xlu2 %v716_v10, %s5866_s28 }
  0x60   : > { %927 = vrot.lane.b32.xlu0 %v4085_v11, %s5864_s29  ;;  %1048 = vrot.lane.b32.xlu1 %v4141_v21, %s5870_s17 }
  0x61   : > { %1217 = vrot.lane.b32.xlu2 %v1127_v13, %s5874_s18 }
  0x68   : > { %1338 = vrot.lane.b32.xlu0 %v4102_v14, %s5872_s21  ;;  %1459 = vrot.lane.b32.xlu1 %v4149_v22, %s5876_s25 }
  0x69   : > { %639 = vrot.lane.b32.xlu2 %v4046_v6, %s5868_s26  ;;  %s5897_s26 = smov 8  }
  0x70   : > { %808 = vrot.lane.b32.xlu0 %v717_v16, %s5866_s28  ;;  %929 = vrot.lane.b32.xlu1 %v4124_v17, %s5864_s29  ;;  %s5895_s29 = smov 16  }
  0x71   : > { %1050 = vrot.lane.b32.xlu2 %v4161_v23, %s5870_s17 }
  0x78   : > { %1219 = vrot.lane.b32.xlu0 %v1128_v19, %s5874_s18  ;;  %1340 = vrot.lane.b32.xlu1 %v4133_v20, %s5872_s21  ;;  %s5893_s21 = smov 24   ;;  %s5894_s18 = smov 4  }
  0x79   : > { %1461 = vrot.lane.b32.xlu2 %v4171_v25, %s5876_s25  ;;  %s3565_s25 = sadd.s32 4294967295, %s3564_s1 }
  0x7b   : > { %v520_v29 = vpop.permute.xlu2 %519 }
  0x7c   : > { %576 = vst.msk [vmem:[#allocation4 + $0x20] sm:$0xff] %vm571_vm2, %v520_v29 }
  0x80   : > { %641 = vrot.lane.b32.xlu0 %v4059_v7, %s5893_s21  ;;  %810 = vrot.lane.b32.xlu1 %v4085_v11, %s5894_s18  ;;  %v4327_v11 = vld [vmem:[%s4006_s24 + $0x98] sm:$0xff] }
  0x81   : > { %931 = vrot.lane.b32.xlu2 %v4141_v21, %s5895_s29  ;;  %463 = vst.msk [vmem:[#allocation4 + $0x68] sm:$0xff] %vm449_vm1, %v4327_v11 }
  0x83   : > { %v522_v34 = vpop.permute.xlu2 %521 }
  0x84   : > { %577 = vst.msk [vmem:[#allocation4 + $0x28] sm:$0xff] %vm571_vm2, %v522_v34 }
  0x88   : > { %1052 = vrot.lane.b32.xlu0 %v4200_v33, %s5896_s19  ;;  %1221 = vrot.lane.b32.xlu1 %v4102_v14, %s5897_s26 }
  0x89   : > { %1342 = vrot.lane.b32.xlu2 %v4149_v22, %s5898_s0 }
  0x8b   : > { %v634_v39 = vpop.permute.xlu2 %633 }
  0x90   : > { %1463 = vrot.lane.b32.xlu0 %v4219_v38, %s5899_s27  ;;  %643 = vrot.lane.b32.xlu1 %v4062_v8, %s5893_s21 }
  0x91   : > { %812 = vrot.lane.b32.xlu2 %v4124_v17, %s5894_s18 }
  0x92   : > { %v512_v43 = vpop.permute.xlu0 %511  ;;  %v516_v44 = vpop.permute.xlu1 %515 }
  0x93   : > { %572 = vst.msk [vmem:[#allocation4] sm:$0xff] %vm571_vm2, %v512_v43  ;;  %v1045_v47 = vpop.permute.xlu2 %1044 }
  0x94   : > { %574 = vst.msk [vmem:[#allocation4 + $0x10] sm:$0xff] %vm571_vm2, %v516_v44 }
  0x95   : > { %694 = vst.msk [vmem:[#allocation4] sm:$0xff] %vm693_vm3, %v634_v39 }
  0x98   : > { %933 = vrot.lane.b32.xlu0 %v4161_v23, %s5895_s29  ;;  %1054 = vrot.lane.b32.xlu1 %v4242_v46, %s5896_s19 }
  0x99   : > { %1223 = vrot.lane.b32.xlu2 %v4133_v20, %s5897_s26  ;;  %v4359_v20 = vld [vmem:[%s4006_s24 + $0x91] sm:$0xff] }
  0x9a   : > { %v514_v53 = vpop.permute.xlu0 %513  ;;  %v518_v54 = vpop.permute.xlu1 %517 }
  0x9b   : > { %573 = vst.msk [vmem:[#allocation4 + $0x8] sm:$0xff] %vm571_vm2, %v514_v53  ;;  %v1456_v57 = vpop.permute.xlu2 %1455  ;;  %v1686_v53 = vld [vmem:[%s5855_s3 + $0x68] sm:$0xff] }
  0x9c   : > { %575 = vst.msk [vmem:[#allocation4 + $0x18] sm:$0xff] %vm571_vm2, %v518_v54  ;;  %v4457_v54 = vld [vmem:[%s4006_s24 + $0xaa] sm:$0xff] }
  0xa0   : > { %1344 = vrot.lane.b32.xlu0 %v4171_v25, %s5898_s0  ;;  %1465 = vrot.lane.b32.xlu1 %v4276_v56, %s5899_s27 }
  0xa1   : > { %645 = vrot.lane.b32.xlu2 %v4264_v52, %s5893_s21 }
  0xa2   : > { %v524_v58 = vpop.permute.xlu0 %523  ;;  %v526_v59 = vpop.permute.xlu1 %525 }
  0xa3   : > { %578 = vst.msk [vmem:[#allocation4 + $0x30] sm:$0xff] %vm571_vm2, %v524_v58  ;;  %v926_v60 = vpop.permute.xlu2 %925  ;;  %v1683_v58 = vld [vmem:[%s5855_s3 + $0x50] sm:$0xff] }
  0xa4   : > { %579 = vst.msk [vmem:[#allocation4 + $0x38] sm:$0xff] %vm571_vm2, %v526_v59 }
  0xa8   : > { %814 = vrot.lane.b32.xlu0 %v4141_v21, %s5894_s18  ;;  %935 = vrot.lane.b32.xlu1 %v4200_v33, %s5895_s29 }
  0xa9   : > { %1056 = vrot.lane.b32.xlu2 %v4291_v61, %s5896_s19 }
  0xaa   : > { %v803_v62 = vpop.permute.xlu0 %802  ;;  %v924_v63 = vpop.permute.xlu1 %923 }
  0xab   : > { %863 = vst.msk [vmem:[#allocation4] sm:$0xff] %vm862_vm4, %v803_v62  ;;  %v1337_v1 = vpop.permute.xlu2 %1336  ;;  %v1682_v62 = vld [vmem:[%s5855_s3 + $0x48] sm:$0xff] }
  0xac   : > { %984 = vst.msk [vmem:[#allocation4] sm:$0xff] %vm983_vm5, %v924_v63 }
  0xad   : > { %1105 = vst.msk [vmem:[#allocation4] sm:$0xff] %vm1104_vm6, %v1045_v47  ;;  %v1688_v47 = vld [vmem:[%s5855_s3 + $0x78] sm:$0xff] }
  0xae   : > { %1693 = vmatpush.msra.mxu1 %v1688_v47 }
  0xb0   : > { %1225 = vrot.lane.b32.xlu0 %v4149_v22, %s5897_s26  ;;  %1346 = vrot.lane.b32.xlu1 %v4219_v38, %s5898_s0 }
  0xb1   : > { %1467 = vrot.lane.b32.xlu2 %v4303_v2, %s5899_s27 }
  0xb2   : > { %v1214_v3 = vpop.permute.xlu0 %1213  ;;  %v1335_v4 = vpop.permute.xlu1 %1334 }
  0xb3   : > { %1274 = vst.msk [vmem:[#allocation4] sm:$0xff] %vm1273_vm7, %v1214_v3  ;;  %v807_v5 = vpop.permute.xlu2 %806  ;;  %v1680_v3 = vld [vmem:[%s5855_s3 + $0x38] sm:$0xff] }
  0xb4   : > { %1395 = vst.msk [vmem:[#allocation4] sm:$0xff] %vm1394_vm8, %v1335_v4 }
  0xb5   : > { %1516 = vst.msk [vmem:[#allocation4] sm:$0xff] %vm1515_vm9, %v1456_v57  ;;  %v1684_v57 = vld [vmem:[%s5855_s3 + $0x58] sm:$0xff] }
  0xb8   : > { %647 = vrot.lane.b32.xlu0 %v4249_v49, %s5893_s21  ;;  %816 = vrot.lane.b32.xlu1 %v4161_v23, %s5894_s18 }
  0xb9   : > { %937 = vrot.lane.b32.xlu2 %v4242_v46, %s5895_s29 }
  0xba   : > { %v636_v6 = vpop.permute.xlu0 %635  ;;  %v805_v7 = vpop.permute.xlu1 %804 }
  0xbb   : > { %695 = vst.msk [vmem:[#allocation4 + $0x8] sm:$0xff] %vm693_vm3, %v636_v6  ;;  %v1218_v10 = vpop.permute.xlu2 %1217  ;;  %v1679_v6 = vld [vmem:[%s5855_s3 + $0x30] sm:$0xff] }
  0xbc   : > { %864 = vst.msk [vmem:[#allocation4 + $0x8] sm:$0xff] %vm862_vm4, %v805_v7  ;;  %v1536_v8 = vld [vmem:[#allocation4] sm:$0xff]  ;;  %v1678_v7 = vld [vmem:[%s5855_s3 + $0x28] sm:$0xff] }
  0xbd   : > { %985 = vst.msk [vmem:[#allocation4 + $0x8] sm:$0xff] %vm983_vm5, %v926_v60  ;;  %1592 = vmatmul.f32.vlgmr.msra.gmra.mxu0 %v1536_v8 }
  0xc0   : > { %1058 = vrot.lane.b32.xlu0 %v4320_v9, %s5896_s19  ;;  %1227 = vrot.lane.b32.xlu1 %v4171_v25, %s5897_s26  ;;  %v4367_v25 = vld [vmem:[%s4006_s24 + $0xa8] sm:$0xff] }
  0xc1   : > { %1348 = vrot.lane.b32.xlu2 %v4276_v56, %s5898_s0  ;;  %464 = vst.msk [vmem:[#allocation4 + $0x70] sm:$0xff] %vm449_vm1, %v4367_v25 }
  0xc2   : > { %v1047_v13 = vpop.permute.xlu0 %1046  ;;  %v1216_v14 = vpop.permute.xlu1 %1215 }
  0xc3   : > { %1106 = vst.msk [vmem:[#allocation4 + $0x8] sm:$0xff] %vm1104_vm6, %v1047_v13  ;;  %v640_v16 = vpop.permute.xlu2 %639 }
  0xc4   : > { %1275 = vst.msk [vmem:[#allocation4 + $0x8] sm:$0xff] %vm1273_vm7, %v1216_v14 }
  0xc5   : > { %1396 = vst.msk [vmem:[#allocation4 + $0x8] sm:$0xff] %vm1394_vm8, %v1337_v1  ;;  %v1681_v1 = vld [vmem:[%s5855_s3 + $0x40] sm:$0xff] }
  0xc6   : > { %697 = vst.msk [vmem:[#allocation4 + $0x18] sm:$0xff] %vm693_vm3, %v640_v16  ;;  %v1675_v16 = vld [vmem:[%s5855_s3 + $0x10] sm:$0xff] }
  0xc8   : > { %1469 = vrot.lane.b32.xlu0 %v4342_v15, %s5899_s27  ;;  %527 = vrot.lane.b32.xlu1 %v4264_v52, %s5900_s14 }
  0xc9   : > { %649 = vrot.lane.b32.xlu2 %v4332_v12, %s5893_s21 }
  0xca   : > { %v1458_v17 = vpop.permute.xlu0 %1457  ;;  %v638_v18 = vpop.permute.xlu1 %637 }
  0xcb   : > { %1517 = vst.msk [vmem:[#allocation4 + $0x8] sm:$0xff] %vm1515_vm9, %v1458_v17  ;;  %v1051_v19 = vpop.permute.xlu2 %1050 }
  0xcc   : > { %696 = vst.msk [vmem:[#allocation4 + $0x10] sm:$0xff] %vm693_vm3, %v638_v18 }
  0xcd   : > { %865 = vst.msk [vmem:[#allocation4 + $0x10] sm:$0xff] %vm862_vm4, %v807_v5 }
  0xd0   : > { %818 = vrot.lane.b32.xlu0 %v4200_v33, %s5894_s18  ;;  %939 = vrot.lane.b32.xlu1 %v4291_v61, %s5895_s29  ;;  %v4392_v33 = vld [vmem:[%s4006_s24 + $0x99] sm:$0xff] }
  0xd1   : > { %1060 = vrot.lane.b32.xlu2 %v4359_v20, %s5896_s19 }
  0xd2   : > { %v928_v21 = vpop.permute.xlu0 %927  ;;  %v1049_v22 = vpop.permute.xlu1 %1048  ;;  %v1537_v23 = vld [vmem:[#allocation4 + $0x8] sm:$0xff] }
  0xd3   : > { %986 = vst.msk [vmem:[#allocation4 + $0x10] sm:$0xff] %vm983_vm5, %v928_v21  ;;  %1595 = vmatmul.f32.gmra.mxu0 %v1537_v23  ;;  %v1462_v24 = vpop.permute.xlu2 %1461  ;;  %v4545_v23 = vld [vmem:[%s4006_s24 + $0xc1] sm:$0xff] }
  0xd4   : > { %1107 = vst.msk [vmem:[#allocation4 + $0x10] sm:$0xff] %vm1104_vm6, %v1049_v22 }
  0xd5   : > { %1276 = vst.msk [vmem:[#allocation4 + $0x10] sm:$0xff] %vm1273_vm7, %v1218_v10  ;;  %v1677_v10 = vld [vmem:[%s5855_s3 + $0x20] sm:$0xff] }
  0xd8   : > { %1229 = vrot.lane.b32.xlu0 %v4219_v38, %s5897_s26  ;;  %1350 = vrot.lane.b32.xlu1 %v4303_v2, %s5898_s0 }
  0xd9   : > { %1471 = vrot.lane.b32.xlu2 %v4376_v26, %s5899_s27 }
  0xda   : > { %v1339_v27 = vpop.permute.xlu0 %1338  ;;  %v1460_v28 = vpop.permute.xlu1 %1459 }
  0xdb   : > { %1397 = vst.msk [vmem:[#allocation4 + $0x10] sm:$0xff] %vm1394_vm8, %v1339_v27  ;;  %v932_v29 = vpop.permute.xlu2 %931 }
  0xdc   : > { %1518 = vst.msk [vmem:[#allocation4 + $0x10] sm:$0xff] %vm1515_vm9, %v1460_v28  ;;  %v4557_v28 = vld [vmem:[%s4006_s24 + $0xc2] sm:$0xff] }
  0xe0   : > { %529 = vrot.lane.b32.xlu0 %v4249_v49, %s5900_s14  ;;  %651 = vrot.lane.b32.xlu1 %v4327_v11, %s5893_s21  ;;  %v1687_v49 = vld [vmem:[%s5855_s3 + $0x70] sm:$0xff] }
  0xe1   : > { %820 = vrot.lane.b32.xlu2 %v4242_v46, %s5894_s18  ;;  %1694 = vmatpush.msra.mxu1 %v1687_v49 }
  0xe2   : > { %v809_v30 = vpop.permute.xlu0 %808  ;;  %v930_v31 = vpop.permute.xlu1 %929 }
  0xe3   : > { %866 = vst.msk [vmem:[#allocation4 + $0x18] sm:$0xff] %vm862_vm4, %v809_v30  ;;  %v1538_v32 = vld [vmem:[#allocation4 + $0x10] sm:$0xff]  ;;  %v1343_v34 = vpop.permute.xlu2 %1342  ;;  %1695 = vmatpush.msra.mxu1 %v1686_v53 }
  0xe4   : > { %987 = vst.msk [vmem:[#allocation4 + $0x18] sm:$0xff] %vm983_vm5, %v930_v31  ;;  %1598 = vmatmul.f32.gmra.mxu0 %v1538_v32  ;;  %v4571_v32 = vld [vmem:[%s5854_s2] ss:$0 sm:$0xff] }
  0xe5   : > { %1108 = vst.msk [vmem:[#allocation4 + $0x18] sm:$0xff] %vm1104_vm6, %v1051_v19  ;;  %v1673_v19 = vld [vmem:[%s5855_s3] sm:$0xff] }
  0xe8   : > { %941 = vrot.lane.b32.xlu0 %v4320_v9, %s5895_s29  ;;  %1062 = vrot.lane.b32.xlu1 %v4392_v33, %s5896_s19 }
  0xe9   : > { %1231 = vrot.lane.b32.xlu2 %v4276_v56, %s5897_s26  ;;  %v1685_v56 = vld [vmem:[%s5855_s3 + $0x60] sm:$0xff] }
  0xea   : > { %v1220_v35 = vpop.permute.xlu0 %1219  ;;  %v1341_v36 = vpop.permute.xlu1 %1340  ;;  %1696 = vmatpush.msra.mxu1 %v1685_v56 }
  0xeb   : > { %1277 = vst.msk [vmem:[#allocation4 + $0x18] sm:$0xff] %vm1273_vm7, %v1220_v35  ;;  %v813_v38 = vpop.permute.xlu2 %812 }
  0xec   : > { %1398 = vst.msk [vmem:[#allocation4 + $0x18] sm:$0xff] %vm1394_vm8, %v1341_v36  ;;  %1697 = vmatpush.msra.mxu1 %v1684_v57 }
  0xed   : > { %1519 = vst.msk [vmem:[#allocation4 + $0x18] sm:$0xff] %vm1515_vm9, %v1462_v24 }
  0xee   : > { %1698 = vmatpush.msra.mxu1 %v1683_v58 }
  0xf0   : > { %1352 = vrot.lane.b32.xlu0 %v4342_v15, %s5898_s0  ;;  %1473 = vrot.lane.b32.xlu1 %v4404_v37, %s5899_s27 }
  0xf1   : > { %531 = vrot.lane.b32.xlu2 %v4332_v12, %s5900_s14  ;;  %1699 = vmatpush.msra.mxu1 %v1682_v62  ;;  %v1676_v12 = vld [vmem:[%s5855_s3 + $0x18] sm:$0xff] }
  0xf2   : > { %v642_v39 = vpop.permute.xlu0 %641  ;;  %v811_v40 = vpop.permute.xlu1 %810 }
  0xf3   : > { %698 = vst.msk [vmem:[#allocation4 + $0x20] sm:$0xff] %vm693_vm3, %v642_v39  ;;  %v1224_v42 = vpop.permute.xlu2 %1223  ;;  %1700 = vmatpush.msra.mxu1 %v1681_v1 }
  0xf4   : > { %867 = vst.msk [vmem:[#allocation4 + $0x20] sm:$0xff] %vm862_vm4, %v811_v40  ;;  %v1539_v41 = vld [vmem:[#allocation4 + $0x18] sm:$0xff] }
  0xf5   : > { %988 = vst.msk [vmem:[#allocation4 + $0x20] sm:$0xff] %vm983_vm5, %v932_v29  ;;  %1601 = vmatmul.f32.gmra.mxu0 %v1539_v41  ;;  %1701 = vmatpush.msra.mxu1 %v1680_v3  ;;  %v4595_v41 = vld [vmem:[%s4006_s24 + $0xe0] sm:$0xff] }
  0xf6   : > { %469 = vst.msk [vmem:[#allocation4 + $0x98] sm:$0xff] %vm449_vm1, %v4595_v41 }
  0xf7   : > { %1702 = vmatpush.msra.mxu1 %v1679_v6 }
  0xf8   : > { %653 = vrot.lane.b32.xlu0 %v4367_v25, %s5893_s21  ;;  %822 = vrot.lane.b32.xlu1 %v4291_v61, %s5894_s18 }
  0xf9   : > { %943 = vrot.lane.b32.xlu2 %v4359_v20, %s5895_s29  ;;  %1703 = vmatpush.msra.mxu1 %v1678_v7 }
  0xfa   : > { %v1053_v43 = vpop.permute.xlu0 %1052  ;;  %v1222_v44 = vpop.permute.xlu1 %1221 }
  0xfb   : > { %1109 = vst.msk [vmem:[#allocation4 + $0x20] sm:$0xff] %vm1104_vm6, %v1053_v43  ;;  %v646_v46 = vpop.permute.xlu2 %645  ;;  %1704 = vmatpush.msra.mxu1 %v1677_v10 }
  0xfc   : > { %1278 = vst.msk [vmem:[#allocation4 + $0x20] sm:$0xff] %vm1273_vm7, %v1222_v44 }
  0xfd   : > { %1399 = vst.msk [vmem:[#allocation4 + $0x20] sm:$0xff] %vm1394_vm8, %v1343_v34  ;;  %1705 = vmatpush.msra.mxu1 %v1676_v12 }
  0xfe   : > { %700 = vst.msk [vmem:[#allocation4 + $0x30] sm:$0xff] %vm693_vm3, %v646_v46 }
  0xff   : > { %1706 = vmatpush.msra.mxu1 %v1675_v16 }
 0x100   : > { %1064 = vrot.lane.b32.xlu0 %v4425_v45, %s5896_s19  ;;  %1233 = vrot.lane.b32.xlu1 %v4303_v2, %s5897_s26  ;;  %v4488_v2 = vld [vmem:[%s4006_s24 + $0xb1] sm:$0xff] }
 0x101   : > { %1354 = vrot.lane.b32.xlu2 %v4376_v26, %s5898_s0 }
 0x102   : > { %v1464_v51 = vpop.permute.xlu0 %1463  ;;  %v644_v52 = vpop.permute.xlu1 %643 }
 0x103   : > { %1520 = vst.msk [vmem:[#allocation4 + $0x20] sm:$0xff] %vm1515_vm9, %v1464_v51  ;;  %v1057_v55 = vpop.permute.xlu2 %1056 }
 0x104   : > { %699 = vst.msk [vmem:[#allocation4 + $0x28] sm:$0xff] %vm693_vm3, %v644_v52 }
 0x105   : > { %868 = vst.msk [vmem:[#allocation4 + $0x28] sm:$0xff] %vm862_vm4, %v813_v38 }
 0x108   : > { %1475 = vrot.lane.b32.xlu0 %v4457_v54, %s5899_s27  ;;  %533 = vrot.lane.b32.xlu1 %v4327_v11, %s5900_s14  ;;  %v4516_v11 = vld [vmem:[%s4006_s24 + $0xb2] sm:$0xff] }
 0x109   : > { %655 = vrot.lane.b32.xlu2 %v4444_v50, %s5893_s21 }
 0x10a   : > { %v934_v59 = vpop.permute.xlu0 %933  ;;  %v1055_v60 = vpop.permute.xlu1 %1054  ;;  %v1540_v61 = vld [vmem:[#allocation4 + $0x20] sm:$0xff] }
 0x10b   : > { %989 = vst.msk [vmem:[#allocation4 + $0x28] sm:$0xff] %vm983_vm5, %v934_v59  ;;  %1604 = vmatmul.f32.gmra.mxu0 %v1540_v61  ;;  %v1468_v63 = vpop.permute.xlu2 %1467  ;;  %v4644_v59 = vld [vmem:[%s4006_s24 + $0xda] sm:$0xff] }
 0x10c   : > { %1110 = vst.msk [vmem:[#allocation4 + $0x28] sm:$0xff] %vm1104_vm6, %v1055_v60 }
 0x10d   : > { %1279 = vst.msk [vmem:[#allocation4 + $0x28] sm:$0xff] %vm1273_vm7, %v1224_v42  ;;  %v4600_v42 = vld [vmem:[%s4006_s24 + $0xd8] sm:$0xff] }
 0x10e   : > { %468 = vst.msk [vmem:[#allocation4 + $0x90] sm:$0xff] %vm449_vm1, %v4600_v42 }
 0x110   : > { %824 = vrot.lane.b32.xlu0 %v4320_v9, %s5894_s18  ;;  %945 = vrot.lane.b32.xlu1 %v4392_v33, %s5895_s29  ;;  %v4504_v9 = vld [vmem:[%s4006_s24 + $0xc8] sm:$0xff] }
 0x111   : > { %1066 = vrot.lane.b32.xlu2 %v4488_v2, %s5896_s19  ;;  %467 = vst.msk [vmem:[#allocation4 + $0x88] sm:$0xff] %vm449_vm1, %v4504_v9 }
 0x112   : > { %v1345_v4 = vpop.permute.xlu0 %1344  ;;  %v1466_v5 = vpop.permute.xlu1 %1465 }
 0x113   : > { %1400 = vst.msk [vmem:[#allocation4 + $0x28] sm:$0xff] %vm1394_vm8, %v1345_v4  ;;  %v938_v8 = vpop.permute.xlu2 %937 }
 0x114   : > { %1521 = vst.msk [vmem:[#allocation4 + $0x28] sm:$0xff] %vm1515_vm9, %v1466_v5  ;;  %v4665_v5 = vld [vmem:[%s4006_s24 + $0xe1] sm:$0xff] }
 0x118   : > { %1235 = vrot.lane.b32.xlu0 %v4342_v15, %s5897_s26  ;;  %1356 = vrot.lane.b32.xlu1 %v4404_v37, %s5898_s0  ;;  %v1674_v15 = vld [vmem:[%s5855_s3 + $0x8] sm:$0xff] }
 0x119   : > { %1477 = vrot.lane.b32.xlu2 %v4516_v11, %s5899_s27  ;;  %1707 = vmatpush.msra.mxu1 %v1674_v15 }
 0x11a   : > { %v815_v13 = vpop.permute.xlu0 %814  ;;  %v936_v14 = vpop.permute.xlu1 %935 }
 0x11b   : > { %869 = vst.msk [vmem:[#allocation4 + $0x30] sm:$0xff] %vm862_vm4, %v815_v13  ;;  %v1541_v17 = vld [vmem:[#allocation4 + $0x28] sm:$0xff]  ;;  %v1349_v18 = vpop.permute.xlu2 %1348  ;;  %1708 = vmatpush.msra.mxu1 %v1673_v19 }
 0x11c   : > { %990 = vst.msk [vmem:[#allocation4 + $0x30] sm:$0xff] %vm983_vm5, %v936_v14  ;;  %1607 = vmatmul.f32.gmra.mxu0 %v1541_v17  ;;  %v4694_v17 = vld [vmem:[%s4006_s24 + $0xf0] sm:$0xff] }
 0x11d   : > { %1111 = vst.msk [vmem:[#allocation4 + $0x30] sm:$0xff] %vm1104_vm6, %v1057_v55 }
 0x120   : > { %535 = vrot.lane.b32.xlu0 %v4367_v25, %s5900_s14  ;;  %657 = vrot.lane.b32.xlu1 %v4436_v48, %s5893_s21 }
 0x121   : > { %826 = vrot.lane.b32.xlu2 %v4359_v20, %s5894_s18 }
 0x122   : > { %v1226_v21 = vpop.permute.xlu0 %1225  ;;  %v1347_v22 = vpop.permute.xlu1 %1346 }
 0x123   : > { %1280 = vst.msk [vmem:[#allocation4 + $0x30] sm:$0xff] %vm1273_vm7, %v1226_v21  ;;  %v650_v24 = vpop.permute.xlu2 %649  ;;  %v4706_v21 = vld [vmem:[%s4006_s24 + $0xf1] sm:$0xff] }
 0x124   : > { %1401 = vst.msk [vmem:[#allocation4 + $0x30] sm:$0xff] %vm1394_vm8, %v1347_v22 }
 0x125   : > { %1522 = vst.msk [vmem:[#allocation4 + $0x30] sm:$0xff] %vm1515_vm9, %v1468_v63 }
 0x128   : > { %947 = vrot.lane.b32.xlu0 %v4425_v45, %s5895_s29  ;;  %1068 = vrot.lane.b32.xlu1 %v4545_v23, %s5896_s19 }
 0x129   : > { %1237 = vrot.lane.b32.xlu2 %v4376_v26, %s5897_s26 }
 0x12a   : > { %v648_v25 = vpop.permute.xlu0 %647  ;;  %v817_v27 = vpop.permute.xlu1 %816 }
 0x12b   : > { %701 = vst.msk [vmem:[#allocation4 + $0x38] sm:$0xff] %vm693_vm3, %v648_v25  ;;  %v1061_v29 = vpop.permute.xlu2 %1060 }
 0x12c   : > { %870 = vst.msk [vmem:[#allocation4 + $0x38] sm:$0xff] %vm862_vm4, %v817_v27  ;;  %v1542_v20 = vld [vmem:[#allocation4 + $0x30] sm:$0xff]  ;;  %v4718_v27 = vld [vmem:[%s4006_s24 + $0xf2] sm:$0xff] }
 0x12d   : > { %991 = vst.msk [vmem:[#allocation4 + $0x38] sm:$0xff] %vm983_vm5, %v938_v8  ;;  %1610 = vmatmul.f32.gmra.mxu0 %v1542_v20 }
 0x130   : > { %1358 = vrot.lane.b32.xlu0 %v4457_v54, %s5898_s0  ;;  %1479 = vrot.lane.b32.xlu1 %v4557_v28, %s5899_s27 }
 0x131   : > { %537 = vrot.lane.b32.xlu2 %v4444_v50, %s5900_s14 }
 0x132   : > { %v1059_v30 = vpop.permute.xlu0 %1058  ;;  %v1228_v31 = vpop.permute.xlu1 %1227 }
 0x133   : > { %1112 = vst.msk [vmem:[#allocation4 + $0x38] sm:$0xff] %vm1104_vm6, %v1059_v30  ;;  %v1472_v26 = vpop.permute.xlu2 %1471 }
 0x134   : > { %1281 = vst.msk [vmem:[#allocation4 + $0x38] sm:$0xff] %vm1273_vm7, %v1228_v31 }
 0x135   : > { %1402 = vst.msk [vmem:[#allocation4 + $0x38] sm:$0xff] %vm1394_vm8, %v1349_v18 }
 0x138   : > { %659 = vrot.lane.b32.xlu0 %v4504_v9, %s5893_s21  ;;  %828 = vrot.lane.b32.xlu1 %v4392_v33, %s5894_s18  ;;  %v4588_v33 = vld [vmem:[%s4006_s24 + $0xc9] sm:$0xff] }
 0x139   : > { %949 = vrot.lane.b32.xlu2 %v4488_v2, %s5895_s29 }
 0x13a   : > { %v1470_v34 = vpop.permute.xlu0 %1469  ;;  %v1593_v35 = vpop.f32.mrf.mxu0 }
 0x13b   : > { %1523 = vst.msk [vmem:[#allocation4 + $0x38] sm:$0xff] %vm1515_vm9, %v1470_v34  ;;  %v4579_v36 = vadd.f32 %v4571_v32, %v1593_v35  ;;  %v528_v38 = vpop.permute.xlu1 %527  ;;  %v821_v40 = vpop.permute.xlu2 %820 }
 0x13c   : > { %580 = vst.msk [vmem:[#allocation4 + $0x40] sm:$0xff] %vm571_vm2, %v528_v38  ;;  %v4743_v38 = vld [vmem:[%s4006_s24 + $0xf9] sm:$0xff] }
 0x13d   : > { %702 = vst.msk [vmem:[#allocation4 + $0x40] sm:$0xff] %vm693_vm3, %v650_v24  ;;  %v1653_v39 = vmul.f32 %v4579_v36, %v4579_v36 }
 0x13f   : > { %1709 = vmatmul.f32.vlgmr.msra.gmra.mxu1 %v1653_v39 }
 0x140   : > { %1070 = vrot.lane.b32.xlu0 %v4588_v33, %s5896_s19  ;;  %1239 = vrot.lane.b32.xlu1 %v4404_v37, %s5897_s26  ;;  %v4610_v37 = vld [vmem:[%s4006_s24 + $0xca] sm:$0xff] }
 0x141   : > { %1360 = vrot.lane.b32.xlu2 %v4516_v11, %s5898_s0 }
 0x142   : > { %v819_v43 = vpop.permute.xlu0 %818  ;;  %v1543_v44 = vld [vmem:[#allocation4 + $0x38] sm:$0xff] }
 0x143   : > { %871 = vst.msk [vmem:[#allocation4 + $0x40] sm:$0xff] %vm862_vm4, %v819_v43  ;;  %v940_v46 = vpop.permute.xlu1 %939  ;;  %1613 = vmatmul.f32.gmra.mxu0 %v1543_v44  ;;  %v1232_v47 = vpop.permute.xlu2 %1231 }
 0x144   : > { %992 = vst.msk [vmem:[#allocation4 + $0x40] sm:$0xff] %vm983_vm5, %v940_v46 }
 0x145   : > { %1113 = vst.msk [vmem:[#allocation4 + $0x40] sm:$0xff] %vm1104_vm6, %v1061_v29  ;;  %v4725_v29 = vld [vmem:[%s4006_s24 + $0xf8] sm:$0xff] }
 0x148   : > { %1481 = vrot.lane.b32.xlu0 %v4610_v37, %s5899_s27  ;;  %539 = vrot.lane.b32.xlu1 %v4436_v48, %s5900_s14  ;;  %v4627_v48 = vld [vmem:[%s4006_s24 + $0xd9] sm:$0xff] }
 0x149   : > { %661 = vrot.lane.b32.xlu2 %v4600_v42, %s5893_s21 }
 0x14a   : > { %v1230_v49 = vpop.permute.xlu0 %1229 }
 0x14b   : > { %1282 = vst.msk [vmem:[#allocation4 + $0x40] sm:$0xff] %vm1273_vm7, %v1230_v49  ;;  %v1351_v50 = vpop.permute.xlu1 %1350  ;;  %v532_v51 = vpop.permute.xlu2 %531  ;;  %v403_v49 = vld [vmem:[%s4006_s24 + $0x108] sm:$0xff] }
 0x14c   : > { %1403 = vst.msk [vmem:[#allocation4 + $0x40] sm:$0xff] %vm1394_vm8, %v1351_v50 }
 0x14d   : > { %1524 = vst.msk [vmem:[#allocation4 + $0x40] sm:$0xff] %vm1515_vm9, %v1472_v26 }
 0x14e   : > { %582 = vst.msk [vmem:[#allocation4 + $0x50] sm:$0xff] %vm571_vm2, %v532_v51 }
 0x150   : > { %830 = vrot.lane.b32.xlu0 %v4425_v45, %s5894_s18  ;;  %v1596_v52 = vpop.f32.mrf.mxu0  ;;  %951 = vrot.lane.b32.xlu1 %v4545_v23, %s5895_s29 }
 0x151   : > { %v4630_v53 = vadd.f32 %v4571_v32, %v1596_v52  ;;  %1072 = vrot.lane.b32.xlu2 %v4627_v48, %s5896_s19 }
 0x152   : > { %v530_v55 = vpop.permute.xlu0 %529 }
 0x153   : > { %581 = vst.msk [vmem:[#allocation4 + $0x48] sm:$0xff] %vm571_vm2, %v530_v55  ;;  %v652_v56 = vpop.permute.xlu1 %651  ;;  %v1654_v57 = vmul.f32 %v4630_v53, %v4630_v53  ;;  %v944_v58 = vpop.permute.xlu2 %943  ;;  %v736_v55 = vld [vmem:[%s4006_s24 + $0x109] sm:$0xff] }
 0x154   : > { %703 = vst.msk [vmem:[#allocation4 + $0x48] sm:$0xff] %vm693_vm3, %v652_v56  ;;  %v1544_v45 = vld [vmem:[#allocation4 + $0x40] sm:$0xff] }
 0x155   : > { %872 = vst.msk [vmem:[#allocation4 + $0x48] sm:$0xff] %vm862_vm4, %v821_v40  ;;  %1616 = vmatmul.f32.gmra.mxu0 %v1544_v45  ;;  %1712 = vmatmul.f32.gmra.mxu1 %v1654_v57 }
 0x158   : > { %1241 = vrot.lane.b32.xlu0 %v4457_v54, %s5897_s26  ;;  %1362 = vrot.lane.b32.xlu1 %v4557_v28, %s5898_s0 }
 0x159   : > { %1483 = vrot.lane.b32.xlu2 %v4644_v59, %s5899_s27 }
 0x15a   : > { %v942_v60 = vpop.permute.xlu0 %941 }
 0x15b   : > { %993 = vst.msk [vmem:[#allocation4 + $0x48] sm:$0xff] %vm983_vm5, %v942_v60  ;;  %v1063_v61 = vpop.permute.xlu1 %1062  ;;  %v1355_v62 = vpop.permute.xlu2 %1354 }
 0x15c   : > { %1114 = vst.msk [vmem:[#allocation4 + $0x48] sm:$0xff] %vm1104_vm6, %v1063_v61 }
 0x15d   : > { %1283 = vst.msk [vmem:[#allocation4 + $0x48] sm:$0xff] %vm1273_vm7, %v1232_v47 }
 0x160   : > { %541 = vrot.lane.b32.xlu0 %v4504_v9, %s5900_s14  ;;  %663 = vrot.lane.b32.xlu1 %v4595_v41, %s5893_s21  ;;  %v4677_v9 = vld [vmem:[%s4006_s24 + $0xe2] sm:$0xff] }
 0x161   : > { %v1599_v54 = vpop.f32.mrf.mxu0  ;;  %832 = vrot.lane.b32.xlu2 %v4488_v2, %s5894_s18 }
 0x162   : > { %v4656_v63 = vadd.f32 %v4571_v32, %v1599_v54  ;;  %v1353_v1 = vpop.permute.xlu0 %1352 }
 0x163   : > { %1404 = vst.msk [vmem:[#allocation4 + $0x48] sm:$0xff] %vm1394_vm8, %v1353_v1  ;;  %v1474_v3 = vpop.permute.xlu1 %1473  ;;  %v656_v6 = vpop.permute.xlu2 %655 }
 0x164   : > { %1525 = vst.msk [vmem:[#allocation4 + $0x48] sm:$0xff] %vm1515_vm9, %v1474_v3  ;;  %v1655_v4 = vmul.f32 %v4656_v63, %v4656_v63  ;;  %v404_v3 = vld [vmem:[%s4006_s24 + $0x110] sm:$0xff] }
 0x166   : > { %1715 = vmatmul.f32.gmra.mxu1 %v1655_v4 }
 0x168   : > { %953 = vrot.lane.b32.xlu0 %v4588_v33, %s5895_s29  ;;  %1074 = vrot.lane.b32.xlu1 %v4665_v5, %s5896_s19 }
 0x169   : > { %1243 = vrot.lane.b32.xlu2 %v4516_v11, %s5897_s26 }
 0x16a   : > { %v654_v7 = vpop.permute.xlu0 %653 }
 0x16b   : > { %704 = vst.msk [vmem:[#allocation4 + $0x50] sm:$0xff] %vm693_vm3, %v654_v7  ;;  %v823_v2 = vpop.permute.xlu1 %822  ;;  %v1545_v8 = vld [vmem:[#allocation4 + $0x48] sm:$0xff]  ;;  %v1067_v10 = vpop.permute.xlu2 %1066 }
 0x16c   : > { %873 = vst.msk [vmem:[#allocation4 + $0x50] sm:$0xff] %vm862_vm4, %v823_v2  ;;  %1619 = vmatmul.f32.gmra.mxu0 %v1545_v8 }
 0x16d   : > { %994 = vst.msk [vmem:[#allocation4 + $0x50] sm:$0xff] %vm983_vm5, %v944_v58 }
 0x170   : > { %1364 = vrot.lane.b32.xlu0 %v4610_v37, %s5898_s0  ;;  %1485 = vrot.lane.b32.xlu1 %v4677_v9, %s5899_s27 }
 0x171   : > { %543 = vrot.lane.b32.xlu2 %v4600_v42, %s5900_s14  ;;  %v4755_v42 = vld [vmem:[%s4006_s24 + $0xfa] sm:$0xff] }
 0x172   : > { %v1065_v12 = vpop.permute.xlu0 %1064  ;;  %v1602_v13 = vpop.f32.mrf.mxu0 }
 0x173   : > { %1115 = vst.msk [vmem:[#allocation4 + $0x50] sm:$0xff] %vm1104_vm6, %v1065_v12  ;;  %v4685_v11 = vadd.f32 %v4571_v32, %v1602_v13  ;;  %v1234_v14 = vpop.permute.xlu1 %1233  ;;  %v1478_v15 = vpop.permute.xlu2 %1477 }
 0x174   : > { %1284 = vst.msk [vmem:[#allocation4 + $0x50] sm:$0xff] %vm1273_vm7, %v1234_v14 }
 0x175   : > { %1405 = vst.msk [vmem:[#allocation4 + $0x50] sm:$0xff] %vm1394_vm8, %v1355_v62  ;;  %v1656_v16 = vmul.f32 %v4685_v11, %v4685_v11  ;;  %v1147_v62 = vld [vmem:[%s4006_s24 + $0x10a] sm:$0xff] }
 0x177   : > { %1718 = vmatmul.f32.gmra.mxu1 %v1656_v16 }
 0x178   : > { %665 = vrot.lane.b32.xlu0 %v4694_v17, %s5893_s21  ;;  %834 = vrot.lane.b32.xlu1 %v4545_v23, %s5894_s18 }
 0x179   : > { %955 = vrot.lane.b32.xlu2 %v4627_v48, %s5895_s29 }
 0x17a   : > { %v1476_v18 = vpop.permute.xlu0 %1475 }
 0x17b   : > { %1526 = vst.msk [vmem:[#allocation4 + $0x50] sm:$0xff] %vm1515_vm9, %v1476_v18  ;;  %v534_v19 = vpop.permute.xlu1 %533  ;;  %v827_v22 = vpop.permute.xlu2 %826 }
 0x17c   : > { %583 = vst.msk [vmem:[#allocation4 + $0x58] sm:$0xff] %vm571_vm2, %v534_v19  ;;  %v1148_v19 = vld [vmem:[%s4006_s24 + $0x112] sm:$0xff] }
 0x17d   : > { %705 = vst.msk [vmem:[#allocation4 + $0x58] sm:$0xff] %vm693_vm3, %v656_v6  ;;  %v4805_v6 = vld [vmem:[%s5856_s4] ss:$0 sm:$0xff] }
 0x180   : > { %1076 = vrot.lane.b32.xlu0 %v4706_v21, %s5896_s19  ;;  %1245 = vrot.lane.b32.xlu1 %v4557_v28, %s5897_s26 }
 0x181   : > { %1366 = vrot.lane.b32.xlu2 %v4644_v59, %s5898_s0 }
 0x182   : > { %v825_v23 = vpop.permute.xlu0 %824  ;;  %v1546_v24 = vld [vmem:[#allocation4 + $0x50] sm:$0xff] }
 0x183   : > { %874 = vst.msk [vmem:[#allocation4 + $0x58] sm:$0xff] %vm862_vm4, %v825_v23  ;;  %v946_v25 = vpop.permute.xlu1 %945  ;;  %1622 = vmatmul.f32.gmra.mxu0 %v1546_v24  ;;  %v1238_v20 = vpop.permute.xlu2 %1237  ;;  %v4829_v23 = vstv %s3565_s25 }
 0x184   : > { %995 = vst.msk [vmem:[#allocation4 + $0x58] sm:$0xff] %vm983_vm5, %v946_v25  ;;  %vm2002_vm10 = vcmp.ge.s32.totalorder %v4829_v23, 0  ;;  %vm2012_vm11 = vcmp.lt.s32.totalorder %v4829_v23, 16 }
 0x185   : > { %1116 = vst.msk [vmem:[#allocation4 + $0x58] sm:$0xff] %vm1104_vm6, %v1067_v10  ;;  %v737_v10 = vld [vmem:[%s4006_s24 + $0x111] sm:$0xff]  ;;  %vm2022_vm13 = vmand %vm2002_vm10, %vm2012_vm11 }
 0x188   : > { %1487 = vrot.lane.b32.xlu0 %v4718_v27, %s5899_s27  ;;  %v1605_v28 = vpop.f32.mrf.mxu0  ;;  %545 = vrot.lane.b32.xlu1 %v4595_v41, %s5900_s14 }
 0x189   : > { %v4728_v30 = vadd.f32 %v4571_v32, %v1605_v28  ;;  %667 = vrot.lane.b32.xlu2 %v4725_v29, %s5893_s21 }
 0x18a   : > { %v1236_v31 = vpop.permute.xlu0 %1235 }
 0x18b   : > { %1285 = vst.msk [vmem:[#allocation4 + $0x58] sm:$0xff] %vm1273_vm7, %v1236_v31  ;;  %v1357_v26 = vpop.permute.xlu1 %1356  ;;  %v1657_v34 = vmul.f32 %v4728_v30, %v4728_v30  ;;  %v538_v35 = vpop.permute.xlu2 %537 }
 0x18c   : > { %1406 = vst.msk [vmem:[#allocation4 + $0x58] sm:$0xff] %vm1394_vm8, %v1357_v26 }
 0x18d   : > { %1527 = vst.msk [vmem:[#allocation4 + $0x58] sm:$0xff] %vm1515_vm9, %v1478_v15  ;;  %1721 = vmatmul.f32.gmra.mxu1 %v1657_v34  ;;  %v3566_v34 = vsel %vm2022_vm13, 1.0, %v3856_v0 }
 0x18e   : > { %585 = vst.msk [vmem:[#allocation4 + $0x68] sm:$0xff] %vm571_vm2, %v538_v35 }
 0x190   : > { %836 = vrot.lane.b32.xlu0 %v4588_v33, %s5894_s18  ;;  %957 = vrot.lane.b32.xlu1 %v4665_v5, %s5895_s29 }
 0x191   : > { %1078 = vrot.lane.b32.xlu2 %v4743_v38, %s5896_s19 }
 0x192   : > { %v536_v39 = vpop.permute.xlu0 %535 }
 0x193   : > { %584 = vst.msk [vmem:[#allocation4 + $0x60] sm:$0xff] %vm571_vm2, %v536_v39  ;;  %v658_v40 = vpop.permute.xlu1 %657  ;;  %v950_v33 = vpop.permute.xlu2 %949 }
 0x194   : > { %706 = vst.msk [vmem:[#allocation4 + $0x60] sm:$0xff] %vm693_vm3, %v658_v40  ;;  %v1547_v41 = vld [vmem:[#allocation4 + $0x58] sm:$0xff] }
 0x195   : > { %875 = vst.msk [vmem:[#allocation4 + $0x60] sm:$0xff] %vm862_vm4, %v827_v22  ;;  %1625 = vmatmul.f32.gmra.mxu0 %v1547_v41 }
 0x198   : > { %1247 = vrot.lane.b32.xlu0 %v4610_v37, %s5897_s26  ;;  %1368 = vrot.lane.b32.xlu1 %v4677_v9, %s5898_s0 }
 0x199   : > { %v1608_v43 = vpop.f32.mrf.mxu0  ;;  %1489 = vrot.lane.b32.xlu2 %v4755_v42, %s5899_s27 }
 0x19a   : > { %v4758_v44 = vadd.f32 %v4571_v32, %v1608_v43  ;;  %v948_v46 = vpop.permute.xlu0 %947 }
 0x19b   : > { %996 = vst.msk [vmem:[#allocation4 + $0x60] sm:$0xff] %vm983_vm5, %v948_v46  ;;  %v1069_v47 = vpop.permute.xlu1 %1068  ;;  %v1361_v50 = vpop.permute.xlu2 %1360 }
 0x19c   : > { %1117 = vst.msk [vmem:[#allocation4 + $0x60] sm:$0xff] %vm1104_vm6, %v1069_v47  ;;  %v1658_v37 = vmul.f32 %v4758_v44, %v4758_v44 }
 0x19d   : > { %1286 = vst.msk [vmem:[#allocation4 + $0x60] sm:$0xff] %vm1273_vm7, %v1238_v20 }
 0x19e   : > { %1724 = vmatmul.f32.gmra.mxu1 %v1658_v37 }
 0x1a0   : > { %547 = vrot.lane.b32.xlu0 %v4694_v17, %s5900_s14  ;;  %669 = vrot.lane.b32.xlu1 %v403_v49, %s5893_s21 }
 0x1a1   : > { %838 = vrot.lane.b32.xlu2 %v4627_v48, %s5894_s18 }
 0x1a2   : > { %v1359_v51 = vpop.permute.xlu0 %1358 }
 0x1a3   : > { %1407 = vst.msk [vmem:[#allocation4 + $0x60] sm:$0xff] %vm1394_vm8, %v1359_v51  ;;  %v1480_v52 = vpop.permute.xlu1 %1479  ;;  %v662_v56 = vpop.permute.xlu2 %661 }
 0x1a4   : > { %1528 = vst.msk [vmem:[#allocation4 + $0x60] sm:$0xff] %vm1515_vm9, %v1480_v52 }
 0x1a8   : > { %959 = vrot.lane.b32.xlu0 %v4706_v21, %s5895_s29  ;;  %1080 = vrot.lane.b32.xlu1 %v736_v55, %s5896_s19 }
 0x1a9   : > { %1249 = vrot.lane.b32.xlu2 %v4644_v59, %s5897_s26 }
 0x1aa   : > { %v660_v57 = vpop.permute.xlu0 %659  ;;  %v1611_v45 = vpop.f32.mrf.mxu0 }
 0x1ab   : > { %707 = vst.msk [vmem:[#allocation4 + $0x68] sm:$0xff] %vm693_vm3, %v660_v57  ;;  %v4781_v58 = vadd.f32 %v4571_v32, %v1611_v45  ;;  %v829_v60 = vpop.permute.xlu1 %828  ;;  %v1548_v61 = vld [vmem:[#allocation4 + $0x60] sm:$0xff]  ;;  %v1073_v54 = vpop.permute.xlu2 %1072 }
 0x1ac   : > { %876 = vst.msk [vmem:[#allocation4 + $0x68] sm:$0xff] %vm862_vm4, %v829_v60  ;;  %1628 = vmatmul.f32.gmra.mxu0 %v1548_v61 }
 0x1ad   : > { %997 = vst.msk [vmem:[#allocation4 + $0x68] sm:$0xff] %vm983_vm5, %v950_v33  ;;  %v1659_v48 = vmul.f32 %v4781_v58, %v4781_v58 }
 0x1af   : > { %1727 = vmatmul.f32.gmra.mxu1 %v1659_v48 }
 0x1b0   : > { %1370 = vrot.lane.b32.xlu0 %v4718_v27, %s5898_s0  ;;  %1491 = vrot.lane.b32.xlu1 %v1147_v62, %s5899_s27 }
 0x1b1   : > { %549 = vrot.lane.b32.xlu2 %v4725_v29, %s5900_s14 }
 0x1b2   : > { %v1071_v1 = vpop.permute.xlu0 %1070 }
 0x1b3   : > { %1118 = vst.msk [vmem:[#allocation4 + $0x68] sm:$0xff] %vm1104_vm6, %v1071_v1  ;;  %v1240_v59 = vpop.permute.xlu1 %1239  ;;  %v1484_v4 = vpop.permute.xlu2 %1483 }
 0x1b4   : > { %1287 = vst.msk [vmem:[#allocation4 + $0x68] sm:$0xff] %vm1273_vm7, %v1240_v59 }
 0x1b5   : > { %1408 = vst.msk [vmem:[#allocation4 + $0x68] sm:$0xff] %vm1394_vm8, %v1361_v50 }
 0x1b8   : > { %671 = vrot.lane.b32.xlu0 %v404_v3, %s5893_s21  ;;  %840 = vrot.lane.b32.xlu1 %v4665_v5, %s5894_s18 }
 0x1b9   : > { %961 = vrot.lane.b32.xlu2 %v4743_v38, %s5895_s29 }
 0x1ba   : > { %v1482_v7 = vpop.permute.xlu0 %1481 }
 0x1bb   : > { %1529 = vst.msk [vmem:[#allocation4 + $0x68] sm:$0xff] %vm1515_vm9, %v1482_v7  ;;  %v540_v2 = vpop.permute.xlu1 %539  ;;  %v833_v12 = vpop.permute.xlu2 %832 }
 0x1bc   : > { %586 = vst.msk [vmem:[#allocation4 + $0x70] sm:$0xff] %vm571_vm2, %v540_v2  ;;  %v1710_v8 = vpop.f32.mrf.mxu1 }
 0x1bd   : > { %708 = vst.msk [vmem:[#allocation4 + $0x70] sm:$0xff] %vm693_vm3, %v662_v56  ;;  %v1711_v5 = vadd.f32 %v4805_v6, %v1710_v8 }
 0x1bf   : > { %3686 = vrsqrt.f32 %v1711_v5  ;;  %vm1776_vm14 = vweird.f32 %v1711_v5 }
 0x1c0   : > { %1082 = vrot.lane.b32.xlu0 %v737_v10, %s5896_s19  ;;  %v1614_v13 = vpop.f32.mrf.mxu0  ;;  %1251 = vrot.lane.b32.xlu1 %v4677_v9, %s5897_s26 }
 0x1c1   : > { %v4819_v14 = vadd.f32 %v4571_v32, %v1614_v13  ;;  %1372 = vrot.lane.b32.xlu2 %v4755_v42, %s5898_s0 }
 0x1c2   : > { %v831_v16 = vpop.permute.xlu0 %830  ;;  %v1549_v17 = vld [vmem:[#allocation4 + $0x68] sm:$0xff] }
 0x1c3   : > { %877 = vst.msk [vmem:[#allocation4 + $0x70] sm:$0xff] %vm862_vm4, %v831_v16  ;;  %v952_v15 = vpop.permute.xlu1 %951  ;;  %1631 = vmatmul.f32.gmra.mxu0 %v1549_v17  ;;  %v1660_v18 = vmul.f32 %v4819_v14, %v4819_v14  ;;  %v1244_v21 = vpop.permute.xlu2 %1243 }
 0x1c4   : > { %998 = vst.msk [vmem:[#allocation4 + $0x70] sm:$0xff] %vm983_vm5, %v952_v15 }
 0x1c5   : > { %v3687_v9 = vpop.eup %3686  ;;  %1119 = vst.msk [vmem:[#allocation4 + $0x70] sm:$0xff] %vm1104_vm6, %v1073_v54  ;;  %1730 = vmatmul.f32.gmra.mxu1 %v1660_v18 }
 0x1c6   : > { %v1771_v22 = vmul.f32 %v3687_v9, %v1711_v5  ;;  %vm1777_vm12 = vweird.f32 %v3687_v9 }
 0x1c7   : > { %vm1778_vm15 = vmor %vm1776_vm14, %vm1777_vm12 }
 0x1c8   : > { %v1772_v24 = vmul.f32 %v3687_v9, %v1771_v22  ;;  %1493 = vrot.lane.b32.xlu0 %v1148_v19, %s5899_s27 }
 0x1ca   : > { %v1773_v25 = vmul.f32 0.5, %v1772_v24  ;;  %v1242_v27 = vpop.permute.xlu0 %1241 }
 0x1cb   : > { %1288 = vst.msk [vmem:[#allocation4 + $0x70] sm:$0xff] %vm1273_vm7, %v1242_v27  ;;  %v1363_v20 = vpop.permute.xlu1 %1362  ;;  %v544_v29 = vpop.permute.xlu2 %543 }
 0x1cc   : > { %v1774_v28 = vsub.f32 1.5, %v1773_v25  ;;  %1409 = vst.msk [vmem:[#allocation4 + $0x70] sm:$0xff] %vm1394_vm8, %v1363_v20 }
 0x1cd   : > { %1530 = vst.msk [vmem:[#allocation4 + $0x70] sm:$0xff] %vm1515_vm9, %v1484_v4 }
 0x1ce   : > { %v1775_v31 = vmul.f32 %v3687_v9, %v1774_v28  ;;  %588 = vst.msk [vmem:[#allocation4 + $0x80] sm:$0xff] %vm571_vm2, %v544_v29 }
 0x1d0   : > { %v1779_v26 = vsel %vm1778_vm15, %v3687_v9, %v1775_v31 }
 0x1d1   : > { %v1970_v35 = vmul.f32 %v1779_v26, %v4579_v36 }
 0x1d2   : > { %v542_v38 = vpop.permute.xlu0 %541  ;;  %v1617_v39 = vpop.f32.mrf.mxu0 }
 0x1d3   : > { %v2052_v40 = vmul.f32 %v3566_v34, %v1970_v35  ;;  %587 = vst.msk [vmem:[#allocation4 + $0x78] sm:$0xff] %vm571_vm2, %v542_v38  ;;  %v4842_v41 = vadd.f32 %v4571_v32, %v1617_v39  ;;  %v1713_v33 = vpop.f32.mrf.mxu1  ;;  %v664_v42 = vpop.permute.xlu1 %663 }
 0x1d4   : > { %v1714_v43 = vadd.f32 %v4805_v6, %v1713_v33  ;;  %709 = vst.msk [vmem:[#allocation4 + $0x78] sm:$0xff] %vm693_vm3, %v664_v42  ;;  %v1550_v46 = vld [vmem:[#allocation4 + $0x70] sm:$0xff]  ;;  %v956_v47 = vpop.permute.xlu2 %955 }
 0x1d5   : > { %2072 = vst [vmem:[#allocation3 + $0x1] sm:$0xff] %v2052_v40  ;;  %1634 = vmatmul.f32.gmra.mxu0 %v1550_v46  ;;  %v1661_v36 = vmul.f32 %v4842_v41, %v4842_v41  ;;  %2448 = vrot.lane.b32.xlu0 %v2052_v40, %s5894_s18 }
 0x1d6   : > { %3688 = vrsqrt.f32 %v1714_v43  ;;  %878 = vst.msk [vmem:[#allocation4 + $0x78] sm:$0xff] %vm862_vm4, %v833_v12  ;;  %vm1786_vm10 = vweird.f32 %v1714_v43 }
 0x1d7   : > { %1733 = vmatmul.f32.gmra.mxu1 %v1661_v36 }
 0x1da   : > { %v954_v37 = vpop.permute.xlu0 %953 }
 0x1db   : > { %999 = vst.msk [vmem:[#allocation4 + $0x78] sm:$0xff] %vm983_vm5, %v954_v37  ;;  %v1075_v49 = vpop.permute.xlu1 %1074 }
 0x1dc   : > { %v3689_v50 = vpop.eup %3688  ;;  %1120 = vst.msk [vmem:[#allocation4 + $0x78] sm:$0xff] %vm1104_vm6, %v1075_v49  ;;  %v2112_v51 = vld [vmem:[#allocation3] sm:$0xff]  ;;  %v1367_v55 = vpop.permute.xlu2 %1366 }
 0x1dd   : > { %v1781_v52 = vmul.f32 %v3689_v50, %v1714_v43  ;;  %1289 = vst.msk [vmem:[#allocation4 + $0x78] sm:$0xff] %vm1273_vm7, %v1244_v21  ;;  %vm1787_vm0 = vweird.f32 %v3689_v50 }
 0x1de   : > { %2168 = vst.msk [vmem:[#allocation4] sm:$0xff] %vm449_vm1, %v2112_v51  ;;  %vm1788_vm11 = vmor %vm1786_vm10, %vm1787_vm0 }
 0x1df   : > { %v1782_v56 = vmul.f32 %v3689_v50, %v1781_v52 }
 0x1e1   : > { %v1783_v57 = vmul.f32 0.5, %v1782_v56 }
 0x1e2   : > { %v1365_v45 = vpop.permute.xlu0 %1364 }
 0x1e3   : > { %v1784_v60 = vsub.f32 1.5, %v1783_v57  ;;  %1410 = vst.msk [vmem:[#allocation4 + $0x78] sm:$0xff] %vm1394_vm8, %v1365_v45  ;;  %v1486_v61 = vpop.permute.xlu1 %1485  ;;  %v1716_v48 = vpop.f32.mrf.mxu1 }
 0x1e4   : > { %1531 = vst.msk [vmem:[#allocation4 + $0x78] sm:$0xff] %vm1515_vm9, %v1486_v61  ;;  %v1717_v62 = vadd.f32 %v4805_v6, %v1716_v48  ;;  %v668_v1 = vpop.permute.xlu2 %667 }
 0x1e5   : > { %v1785_v54 = vmul.f32 %v3689_v50, %v1784_v60 }
 0x1e6   : > { %3690 = vrsqrt.f32 %v1717_v62  ;;  %vm1796_vm0 = vweird.f32 %v1717_v62 }
 0x1e7   : > { %v1789_v59 = vsel %vm1788_vm11, %v3689_v50, %v1785_v54 }
 0x1e8   : > { %v1971_v3 = vmul.f32 %v1789_v59, %v4630_v53  ;;  %v1993_v53 = vadd.s32 1, %v4829_v23 }
 0x1e9   : > { %v1620_v4 = vpop.f32.mrf.mxu0 }
 0x1ea   : > { %v2053_v7 = vmul.f32 %v3566_v34, %v1971_v3  ;;  %v4859_v2 = vadd.f32 %v4571_v32, %v1620_v4  ;;  %v666_v8 = vpop.permute.xlu0 %665  ;;  %vm2003_vm12 = vcmp.ge.s32.totalorder %v1993_v53, 0  ;;  %vm2013_vm13 = vcmp.lt.s32.totalorder %v1993_v53, 16 }
 0x1eb   : > { %710 = vst.msk [vmem:[#allocation4 + $0x80] sm:$0xff] %vm693_vm3, %v666_v8  ;;  %v835_v5 = vpop.permute.xlu1 %834  ;;  %v1551_v10 = vld [vmem:[#allocation4 + $0x78] sm:$0xff]  ;;  %vm2023_vm15 = vmand %vm2003_vm12, %vm2013_vm13 }
 0x1ec   : > { %v3691_v12 = vpop.eup %3690  ;;  %2073 = vst [vmem:[#allocation3 + $0x9] sm:$0xff] %v2053_v7  ;;  %1637 = vmatmul.f32.gmra.mxu0 %v1551_v10  ;;  %v1662_v13 = vmul.f32 %v4859_v2, %v4859_v2  ;;  %2450 = vrot.lane.b32.xlu2 %v2053_v7, %s5894_s18  ;;  %v1079_v17 = vpop.permute.xlu2 %1078  ;;  %v3567_v26 = vsel %vm2023_vm15, 1.0, %v3856_v0 }
 0x1ed   : > { %v1791_v16 = vmul.f32 %v3691_v12, %v1717_v62  ;;  %879 = vst.msk [vmem:[#allocation4 + $0x80] sm:$0xff] %vm862_vm4, %v835_v5  ;;  %vm1797_vm14 = vweird.f32 %v3691_v12  ;;  %v1994_v5 = vadd.s32 2, %v4829_v23 }
 0x1ee   : > { %1000 = vst.msk [vmem:[#allocation4 + $0x80] sm:$0xff] %vm983_vm5, %v956_v47  ;;  %1736 = vmatmul.f32.gmra.mxu1 %v1662_v13  ;;  %vm1798_vm10 = vmor %vm1796_vm0, %vm1797_vm14 }
 0x1ef   : > { %v1792_v15 = vmul.f32 %v3691_v12, %v1791_v16  ;;  %vm2004_vm14 = vcmp.ge.s32.totalorder %v1994_v5, 0  ;;  %vm2014_vm15 = vcmp.lt.s32.totalorder %v1994_v5, 16 }
 0x1f1   : > { %v1793_v18 = vmul.f32 0.5, %v1792_v15 }
 0x1f2   : > { %v1077_v9 = vpop.permute.xlu0 %1076 }
 0x1f3   : > { %v1794_v19 = vsub.f32 1.5, %v1793_v18  ;;  %1121 = vst.msk [vmem:[#allocation4 + $0x80] sm:$0xff] %vm1104_vm6, %v1077_v9  ;;  %v1246_v21 = vpop.permute.xlu1 %1245  ;;  %v2704_v22 = vld [vmem:[#allocation3 + $0x2] sm:$0xff]  ;;  %v2705_v24 = vld [vmem:[#allocation3 + $0xa] sm:$0xff] }
 0x1f4   : > { %v2113_v25 = vld [vmem:[#allocation3 + $0x8] sm:$0xff]  ;;  %1290 = vst.msk [vmem:[#allocation4 + $0x80] sm:$0xff] %vm1273_vm7, %v1246_v21  ;;  %2776 = vrot.lane.b32.xlu0 %v2704_v22, %s5897_s26  ;;  %v1719_v27 = vpop.f32.mrf.mxu1  ;;  %2778 = vrot.lane.b32.xlu2 %v2705_v24, %s5897_s26  ;;  %v1490_v29 = vpop.permute.xlu2 %1489 }
 0x1f5   : > { %v1795_v20 = vmul.f32 %v3691_v12, %v1794_v19  ;;  %1411 = vst.msk [vmem:[#allocation4 + $0x80] sm:$0xff] %vm1394_vm8, %v1367_v55  ;;  %v1720_v28 = vadd.f32 %v4805_v6, %v1719_v27 }
 0x1f6   : > { %2169 = vst.msk [vmem:[#allocation4 + $0x8] sm:$0xff] %vm449_vm1, %v2113_v25 }
 0x1f7   : > { %v1799_v31 = vsel %vm1798_vm10, %v3691_v12, %v1795_v20  ;;  %3692 = vrsqrt.f32 %v1720_v28  ;;  %vm1806_vm12 = vweird.f32 %v1720_v28  ;;  %vm2024_vm10 = vmand %vm2004_vm14, %vm2014_vm15 }
 0x1f8   : > { %v1972_v34 = vmul.f32 %v1799_v31, %v4656_v63  ;;  %v3568_v25 = vsel %vm2024_vm10, 1.0, %v3856_v0 }
 0x1fa   : > { %v4878_v35 = vmul.f32 %v3567_v26, %v1972_v34  ;;  %v1488_v38 = vpop.permute.xlu0 %1487 }
 0x1fb   : > { %1532 = vst.msk [vmem:[#allocation4 + $0x80] sm:$0xff] %vm1515_vm9, %v1488_v38  ;;  %v546_v39 = vpop.permute.xlu1 %545 }
 0x1fc   : > { %2074 = vst [vmem:[#allocation3 + $0x19] sm:$0xff] %v4878_v35  ;;  %v839_v33 = vpop.permute.xlu2 %838 }
 0x1fd   : > { %v3693_v40 = vpop.eup %3692  ;;  %589 = vst.msk [vmem:[#allocation4 + $0x88] sm:$0xff] %vm571_vm2, %v546_v39 }
 0x1fe   : > { %v1801_v42 = vmul.f32 %v3693_v40, %v1720_v28  ;;  %711 = vst.msk [vmem:[#allocation4 + $0x88] sm:$0xff] %vm693_vm3, %v668_v1  ;;  %vm1807_vm11 = vweird.f32 %v3693_v40 }
 0x1ff   : > { %vm1808_vm13 = vmor %vm1806_vm12, %vm1807_vm11 }
 0x200   : > { %v1802_v43 = vmul.f32 %v3693_v40, %v1801_v42  ;;  %v1623_v46 = vpop.f32.mrf.mxu0 }
 0x201   : > { %v4885_v36 = vadd.f32 %v4571_v32, %v1623_v46 }
 0x202   : > { %v1803_v63 = vmul.f32 0.5, %v1802_v43  ;;  %v837_v47 = vpop.permute.xlu0 %836  ;;  %v1552_v37 = vld [vmem:[#allocation4 + $0x80] sm:$0xff] }
 0x203   : > { %880 = vst.msk [vmem:[#allocation4 + $0x88] sm:$0xff] %vm862_vm4, %v837_v47  ;;  %v958_v49 = vpop.permute.xlu1 %957  ;;  %1640 = vmatmul.f32.gmra.mxu0 %v1552_v37  ;;  %v2114_v50 = vld [vmem:[#allocation3 + $0x18] sm:$0xff]  ;;  %v1663_v51 = vmul.f32 %v4885_v36, %v4885_v36 }
 0x204   : > { %v1804_v52 = vsub.f32 1.5, %v1803_v63  ;;  %1001 = vst.msk [vmem:[#allocation4 + $0x88] sm:$0xff] %vm983_vm5, %v958_v49  ;;  %2216 = vrot.lane.b32.xlu1 %v2114_v50, %s5900_s14  ;;  %v1250_v55 = vpop.permute.xlu2 %1249 }
 0x205   : > { %1122 = vst.msk [vmem:[#allocation4 + $0x88] sm:$0xff] %vm1104_vm6, %v1079_v17  ;;  %1739 = vmatmul.f32.gmra.mxu1 %v1663_v51 }
 0x206   : > { %v1805_v56 = vmul.f32 %v3693_v40, %v1804_v52  ;;  %2170 = vst.msk [vmem:[#allocation4 + $0x10] sm:$0xff] %vm449_vm1, %v2114_v50 }
 0x208   : > { %v1809_v57 = vsel %vm1808_vm13, %v3693_v40, %v1805_v56 }
 0x209   : > { %v1973_v45 = vmul.f32 %v1809_v57, %v4685_v11 }
 0x20a   : > { %v1248_v60 = vpop.permute.xlu0 %1247  ;;  %v1722_v61 = vpop.f32.mrf.mxu1 }
 0x20b   : > { %v4895_v48 = vmul.f32 %v3567_v26, %v1973_v45  ;;  %1291 = vst.msk [vmem:[#allocation4 + $0x88] sm:$0xff] %vm1273_vm7, %v1248_v60  ;;  %v1723_v62 = vadd.f32 %v4805_v6, %v1722_v61  ;;  %v1369_v54 = vpop.permute.xlu1 %1368 }
 0x20c   : > { %1412 = vst.msk [vmem:[#allocation4 + $0x88] sm:$0xff] %vm1394_vm8, %v1369_v54  ;;  %2544 = vrot.lane.b32.xlu1 %v4878_v35, %s5895_s29  ;;  %v550_v1 = vpop.permute.xlu2 %549  ;;  %v1995_v54 = vadd.s32 3, %v4829_v23 }
 0x20d   : > { %2075 = vst [vmem:[#allocation3 + $0x21] sm:$0xff] %v4895_v48  ;;  %3694 = vrsqrt.f32 %v1723_v62  ;;  %vm1816_vm11 = vweird.f32 %v1723_v62 }
 0x20e   : > { %1533 = vst.msk [vmem:[#allocation4 + $0x88] sm:$0xff] %vm1515_vm9, %v1490_v29  ;;  %vm2015_vm10 = vcmp.lt.s32.totalorder %v1995_v54, 16 }
 0x20f   : > { %591 = vst.msk [vmem:[#allocation4 + $0x98] sm:$0xff] %vm571_vm2, %v550_v1 }
 0x212   : > { %v548_v11 = vpop.permute.xlu0 %547  ;;  %v1626_v59 = vpop.f32.mrf.mxu0 }
 0x213   : > { %v3695_v3 = vpop.eup %3694  ;;  %590 = vst.msk [vmem:[#allocation4 + $0x90] sm:$0xff] %vm571_vm2, %v548_v11  ;;  %v4907_v4 = vadd.f32 %v4571_v32, %v1626_v59  ;;  %v670_v7 = vpop.permute.xlu1 %669 }
 0x214   : > { %v1811_v8 = vmul.f32 %v3695_v3, %v1723_v62  ;;  %712 = vst.msk [vmem:[#allocation4 + $0x90] sm:$0xff] %vm693_vm3, %v670_v7  ;;  %v4911_v10 = vld [vmem:[#allocation3 + $0x1a] sm:$0xff]  ;;  %vm1817_vm0 = vweird.f32 %v3695_v3  ;;  %v4932_v26 = vld [vmem:[#allocation3 + $0x22] sm:$0xff]  ;;  %v962_v40 = vpop.permute.xlu2 %961 }
 0x215   : > { %v2115_v12 = vld [vmem:[#allocation3 + $0x20] sm:$0xff]  ;;  %v1553_v13 = vld [vmem:[#allocation4 + $0x88] sm:$0xff]  ;;  %2872 = vrot.lane.b32.xlu1 %v4911_v10, %s5898_s0  ;;  %v1664_v16 = vmul.f32 %v4907_v4, %v4907_v4  ;;  %881 = vst.msk [vmem:[#allocation4 + $0x90] sm:$0xff] %vm862_vm4, %v839_v33  ;;  %vm1818_vm12 = vmor %vm1816_vm11, %vm1817_vm0  ;;  %vm2005_vm0 = vcmp.ge.s32.totalorder %v1995_v54, 0 }
 0x216   : > { %2218 = vrot.lane.b32.xlu0 %v2115_v12, %s5900_s14  ;;  %2171 = vst.msk [vmem:[#allocation4 + $0x18] sm:$0xff] %vm449_vm1, %v2115_v12  ;;  %v1812_v53 = vmul.f32 %v3695_v3, %v1811_v8  ;;  %1643 = vmatmul.f32.gmra.mxu0 %v1553_v13  ;;  %v3062_v54 = vld [vmem:[%s5857_s5 + $0x70] sm:$0xff] }
 0x217   : > { %1742 = vmatmul.f32.gmra.mxu1 %v1664_v16 }
 0x218   : > { %v1813_v17 = vmul.f32 0.5, %v1812_v53 }
 0x21a   : > { %v1814_v15 = vsub.f32 1.5, %v1813_v17  ;;  %v960_v18 = vpop.permute.xlu0 %959 }
 0x21b   : > { %1002 = vst.msk [vmem:[#allocation4 + $0x90] sm:$0xff] %vm983_vm5, %v960_v18  ;;  %v1081_v9 = vpop.permute.xlu1 %1080  ;;  %v1725_v19 = vpop.f32.mrf.mxu1 }
 0x21c   : > { %v1815_v21 = vmul.f32 %v3695_v3, %v1814_v15  ;;  %1123 = vst.msk [vmem:[#allocation4 + $0x90] sm:$0xff] %vm1104_vm6, %v1081_v9  ;;  %v1726_v22 = vadd.f32 %v4805_v6, %v1725_v19  ;;  %v1373_v60 = vpop.permute.xlu2 %1372 }
 0x21d   : > { %1292 = vst.msk [vmem:[#allocation4 + $0x90] sm:$0xff] %vm1273_vm7, %v1250_v55 }
 0x21e   : > { %2546 = vrot.lane.b32.xlu0 %v4895_v48, %s5895_s29  ;;  %v1819_v24 = vsel %vm1818_vm12, %v3695_v3, %v1815_v21  ;;  %3696 = vrsqrt.f32 %v1726_v22  ;;  %vm1826_vm14 = vweird.f32 %v1726_v22  ;;  %vm2025_vm12 = vmand %vm2005_vm0, %vm2015_vm10 }
 0x21f   : > { %v1974_v27 = vmul.f32 %v1819_v24, %v4728_v30  ;;  %v3569_v5 = vsel %vm2025_vm12, 1.0, %v3856_v0 }
 0x221   : > { %v4928_v20 = vmul.f32 %v3568_v25, %v1974_v27 }
 0x222   : > { %v1371_v28 = vpop.permute.xlu0 %1370 }
 0x223   : > { %2076 = vst [vmem:[#allocation3 + $0x31] sm:$0xff] %v4928_v20  ;;  %v1492_v29 = vpop.permute.xlu1 %1491 }
 0x224   : > { %v3697_v31 = vpop.eup %3696  ;;  %1413 = vst.msk [vmem:[#allocation4 + $0x90] sm:$0xff] %vm1394_vm8, %v1371_v28 }
 0x225   : > { %v1821_v34 = vmul.f32 %v3697_v31, %v1726_v22  ;;  %1534 = vst.msk [vmem:[#allocation4 + $0x90] sm:$0xff] %vm1515_vm9, %v1492_v29  ;;  %vm1827_vm13 = vweird.f32 %v3697_v31  ;;  %v4998_v29 = vld [vmem:[%s5854_s2] ss:$0 sm:$0xff] }
 0x226   : > { %2874 = vrot.lane.b32.xlu0 %v4932_v26, %s5898_s0  ;;  %vm1828_vm15 = vmor %vm1826_vm14, %vm1827_vm13 }
 0x227   : > { %v1822_v38 = vmul.f32 %v3697_v31, %v1821_v34 }
 0x229   : > { %v1823_v39 = vmul.f32 0.5, %v1822_v38  ;;  %v1629_v30 = vpop.f32.mrf.mxu0 }
 0x22a   : > { %v4938_v33 = vadd.f32 %v4571_v32, %v1629_v30  ;;  %v672_v42 = vpop.permute.xlu0 %671  ;;  %v2116_v43 = vld [vmem:[#allocation3 + $0x30] sm:$0xff] }
 0x22b   : > { %v1824_v46 = vsub.f32 1.5, %v1823_v39  ;;  %713 = vst.msk [vmem:[#allocation4 + $0x98] sm:$0xff] %vm693_vm3, %v672_v42  ;;  %2312 = vrot.lane.b32.xlu2 %v2116_v43, %s5893_s21  ;;  %v841_v63 = vpop.permute.xlu1 %840 }
 0x22c   : > { %2172 = vst.msk [vmem:[#allocation4 + $0x20] sm:$0xff] %vm449_vm1, %v2116_v43  ;;  %v1554_v47 = vld [vmem:[#allocation4 + $0x90] sm:$0xff]  ;;  %v1728_v37 = vpop.f32.mrf.mxu1  ;;  %v1665_v49 = vmul.f32 %v4938_v33, %v4938_v33 }
 0x22d   : > { %v1825_v50 = vmul.f32 %v3697_v31, %v1824_v46  ;;  %1646 = vmatmul.f32.gmra.mxu0 %v1554_v47  ;;  %v1729_v51 = vadd.f32 %v4805_v6, %v1728_v37  ;;  %882 = vst.msk [vmem:[#allocation4 + $0x98] sm:$0xff] %vm862_vm4, %v841_v63  ;;  %v1996_v63 = vadd.s32 4, %v4829_v23 }
 0x22e   : > { %1745 = vmatmul.f32.gmra.mxu1 %v1665_v49  ;;  %1003 = vst.msk [vmem:[#allocation4 + $0x98] sm:$0xff] %vm983_vm5, %v962_v40 }
 0x22f   : > { %v1829_v52 = vsel %vm1828_vm15, %v3697_v31, %v1825_v50  ;;  %3698 = vrsqrt.f32 %v1729_v51  ;;  %vm1836_vm13 = vweird.f32 %v1729_v51  ;;  %vm2016_vm12 = vcmp.lt.s32.totalorder %v1996_v63, 16 }
 0x230   : > { %v1975_v55 = vmul.f32 %v1829_v52, %v4758_v44 }
 0x232   : > { %v4949_v56 = vmul.f32 %v3568_v25, %v1975_v55  ;;  %v1083_v57 = vpop.permute.xlu0 %1082  ;;  %v3063_v55 = vld [vmem:[%s5857_s5 + $0x78] sm:$0xff] }
 0x233   : > { %1124 = vst.msk [vmem:[#allocation4 + $0x98] sm:$0xff] %vm1104_vm6, %v1083_v57  ;;  %2640 = vrot.lane.b32.xlu2 %v4928_v20, %s5896_s19  ;;  %v1252_v45 = vpop.permute.xlu1 %1251  ;;  %3068 = vmatpush.msra.mxu2 %v3063_v55 }
 0x234   : > { %2077 = vst [vmem:[#allocation3 + $0x39] sm:$0xff] %v4949_v56 }
 0x235   : > { %v3699_v61 = vpop.eup %3698  ;;  %1293 = vst.msk [vmem:[#allocation4 + $0x98] sm:$0xff] %vm1273_vm7, %v1252_v45  ;;  %3069 = vmatpush.msra.mxu2 %v3062_v54 }
 0x236   : > { %v1831_v62 = vmul.f32 %v3699_v61, %v1729_v51  ;;  %1414 = vst.msk [vmem:[#allocation4 + $0x98] sm:$0xff] %vm1394_vm8, %v1373_v60  ;;  %vm1837_vm11 = vweird.f32 %v3699_v61 }
 0x237   : > { %vm1838_vm14 = vmor %vm1836_vm13, %vm1837_vm11  ;;  %vm2006_vm11 = vcmp.ge.s32.totalorder %v1996_v63, 0  ;;  %v3050_v63 = vld [vmem:[%s5857_s5 + $0x10] sm:$0xff] }
 0x238   : > { %v1832_v44 = vmul.f32 %v3699_v61, %v1831_v62 }
 0x23a   : > { %v1833_v1 = vmul.f32 0.5, %v1832_v44  ;;  %v1494_v11 = vpop.permute.xlu0 %1493 }
 0x23b   : > { %1535 = vst.msk [vmem:[#allocation4 + $0x98] sm:$0xff] %vm1515_vm9, %v1494_v11  ;;  %2220 = vrot.lane.b32.xlu2 %v2116_v43, %s5900_s14  ;;  %v4960_v59 = vld [vmem:[#allocation3 + $0x38] sm:$0xff] }
 0x23c   : > { %v1834_v3 = vsub.f32 1.5, %v1833_v1  ;;  %2314 = vrot.lane.b32.xlu1 %v4960_v59, %s5893_s21  ;;  %2173 = vst.msk [vmem:[#allocation4 + $0x28] sm:$0xff] %vm449_vm1, %v4960_v59  ;;  %v4971_v15 = vld [vmem:[#allocation3 + $0x32] sm:$0xff]  ;;  %v3061_v1 = vld [vmem:[%s5857_s5 + $0x68] sm:$0xff] }
 0x23d   : > { %3070 = vmatpush.msra.mxu2 %v3061_v1  ;;  %v3059_v11 = vld [vmem:[%s5857_s5 + $0x58] sm:$0xff] }
 0x23e   : > { %v1835_v7 = vmul.f32 %v3699_v61, %v1834_v3 }
 0x240   : > { %v1839_v8 = vsel %vm1838_vm14, %v3699_v61, %v1835_v7  ;;  %v1632_v12 = vpop.f32.mrf.mxu0  ;;  %vm2026_vm14 = vmand %vm2006_vm11, %vm2016_vm12  ;;  %v3058_v7 = vld [vmem:[%s5857_s5 + $0x50] sm:$0xff] }
 0x241   : > { %v1976_v13 = vmul.f32 %v1839_v8, %v4781_v58  ;;  %v4969_v16 = vadd.f32 %v4571_v32, %v1632_v12  ;;  %v4985_v58 = vld [vmem:[#allocation3 + $0x3a] sm:$0xff]  ;;  %v5032_v52 = vsel %vm2026_vm14, 1.0, %v3856_v0 }
 0x242   : > { %v1731_v53 = vpop.f32.mrf.mxu1  ;;  %v1555_v17 = vld [vmem:[#allocation4 + $0x98] sm:$0xff] }
 0x243   : > { %v4973_v18 = vmul.f32 %v3569_v5, %v1976_v13  ;;  %v1732_v9 = vadd.f32 %v4805_v6, %v1731_v53  ;;  %1649 = vmatmul.f32.gmra.mxu0 %v1555_v17  ;;  %2968 = vrot.lane.b32.xlu2 %v4971_v15, %s5899_s27  ;;  %v1666_v19 = vmul.f32 %v4969_v16, %v4969_v16  ;;  %v3057_v13 = vld [vmem:[%s5857_s5 + $0x48] sm:$0xff] }
 0x244   : > { %2642 = vrot.lane.b32.xlu1 %v4949_v56, %s5896_s19 }
 0x245   : > { %2078 = vst [vmem:[#allocation3 + $0x49] sm:$0xff] %v4973_v18  ;;  %3700 = vrsqrt.f32 %v1732_v9  ;;  %1748 = vmatmul.f32.gmra.mxu1 %v1666_v19  ;;  %vm1846_vm0 = vweird.f32 %v1732_v9 }
 0x246   : > { %v5068_v3 = vpop.permute.xlu2 %2450 }
 0x247   : > { %v2449_v53 = vpop.permute.xlu0 %2448 }
 0x24b   : > { %v3701_v32 = vpop.eup %3700  ;;  %2548 = vrot.lane.b32.xlu2 %v4928_v20, %s5895_s29 }
 0x24c   : > { %v1841_v21 = vmul.f32 %v3701_v32, %v1732_v9  ;;  %2970 = vrot.lane.b32.xlu1 %v4985_v58, %s5899_s27  ;;  %v4989_v22 = vld [vmem:[#allocation3 + $0x48] sm:$0xff]  ;;  %vm1847_vm15 = vweird.f32 %v3701_v32  ;;  %v3056_v9 = vld [vmem:[%s5857_s5 + $0x40] sm:$0xff] }
 0x24d   : > { %2316 = vrot.lane.b32.xlu0 %v4989_v22, %s5893_s21  ;;  %2174 = vst.msk [vmem:[#allocation4 + $0x30] sm:$0xff] %vm449_vm1, %v4989_v22  ;;  %vm1848_vm10 = vmor %vm1846_vm0, %vm1847_vm15 }
 0x24e   : > { %v1842_v24 = vmul.f32 %v3701_v32, %v1841_v21 }
 0x250   : > { %v1843_v25 = vmul.f32 0.5, %v1842_v24  ;;  %v3054_v24 = vld [vmem:[%s5857_s5 + $0x30] sm:$0xff] }
 0x252   : > { %v1844_v27 = vsub.f32 1.5, %v1843_v25  ;;  %v1635_v28 = vpop.f32.mrf.mxu0  ;;  %v5102_v25 = vpop.permute.xlu2 %2778 }
 0x253   : > { %v5001_v31 = vadd.f32 %v4998_v29, %v1635_v28  ;;  %2876 = vrot.lane.b32.xlu2 %v4971_v15, %s5898_s0  ;;  %v3053_v28 = vld [vmem:[%s5857_s5 + $0x28] sm:$0xff] }
 0x254   : > { %v1845_v34 = vmul.f32 %v3701_v32, %v1844_v27  ;;  %v1734_v38 = vpop.f32.mrf.mxu1  ;;  %2452 = vrot.lane.b32.xlu1 %v4878_v35, %s5894_s18 }
 0x255   : > { %v1735_v39 = vadd.f32 %v4805_v6, %v1734_v38  ;;  %2644 = vrot.lane.b32.xlu0 %v4973_v18, %s5896_s19  ;;  %v1667_v30 = vmul.f32 %v5001_v31, %v5001_v31 }
 0x256   : > { %v1849_v40 = vsel %vm1848_vm10, %v3701_v32, %v1845_v34  ;;  %v3055_v32 = vld [vmem:[%s5857_s5 + $0x38] sm:$0xff]  ;;  %v3052_v34 = vld [vmem:[%s5857_s5 + $0x20] sm:$0xff] }
 0x257   : > { %v1977_v42 = vmul.f32 %v1849_v40, %v4819_v14  ;;  %3702 = vrsqrt.f32 %v1735_v39  ;;  %1751 = vmatmul.f32.gmra.mxu1 %v1667_v30  ;;  %vm1856_vm15 = vweird.f32 %v1735_v39  ;;  %v3051_v40 = vld [vmem:[%s5857_s5 + $0x18] sm:$0xff] }
 0x259   : > { %v5013_v43 = vmul.f32 %v3569_v5, %v1977_v42 }
 0x25b   : > { %2079 = vst [vmem:[#allocation3 + $0x51] sm:$0xff] %v5013_v43 }
 0x25c   : > { %2780 = vrot.lane.b32.xlu1 %v4911_v10, %s5897_s26 }
 0x25d   : > { %v3703_v35 = vpop.eup %3702 }
 0x25e   : > { %v1851_v46 = vmul.f32 %v3703_v35, %v1735_v39  ;;  %vm1857_vm13 = vweird.f32 %v3703_v35 }
 0x25f   : > { %vm1858_vm0 = vmor %vm1856_vm15, %vm1857_vm13 }
 0x260   : > { %v1852_v47 = vmul.f32 %v3703_v35, %v1851_v46 }
 0x262   : > { %v1853_v37 = vmul.f32 0.5, %v1852_v47  ;;  %v5019_v49 = vld [vmem:[#allocation3 + $0x50] sm:$0xff] }
 0x263   : > { %v5021_v14 = vld [vmem:[#allocation3 + $0x4a] sm:$0xff]  ;;  %2318 = vrot.lane.b32.xlu2 %v5019_v49, %s5893_s21  ;;  %2175 = vst.msk [vmem:[#allocation4 + $0x38] sm:$0xff] %vm449_vm1, %v5019_v49 }
 0x264   : > { %2972 = vrot.lane.b32.xlu0 %v5021_v14, %s5899_s27  ;;  %v1854_v10 = vsub.f32 1.5, %v1853_v37  ;;  %2222 = vrot.lane.b32.xlu1 %v4960_v59, %s5900_s14  ;;  %v5066_v59 = vld [vmem:[#allocation3 + $0x52] sm:$0xff]  ;;  %v3049_v37 = vld [vmem:[%s5857_s5 + $0x8] sm:$0xff] }
 0x266   : > { %v1855_v50 = vmul.f32 %v3703_v35, %v1854_v10 }
 0x268   : > { %v1859_v51 = vsel %vm1858_vm0, %v3703_v35, %v1855_v50  ;;  %v3048_v50 = vld [vmem:[%s5857_s5] sm:$0xff] }
 0x269   : > { %v1978_v57 = vmul.f32 %v1859_v51, %v4842_v41  ;;  %v1638_v45 = vpop.f32.mrf.mxu0 }
 0x26a   : > { %v5039_v60 = vadd.f32 %v4998_v29, %v1638_v45  ;;  %v1997_v45 = vadd.s32 5, %v4829_v23 }
 0x26b   : > { %v5042_v61 = vmul.f32 %v5032_v52, %v1978_v57  ;;  %v1737_v62 = vpop.f32.mrf.mxu1  ;;  %2646 = vrot.lane.b32.xlu2 %v5013_v43, %s5896_s19 }
 0x26c   : > { %2454 = vrot.lane.b32.xlu0 %v4895_v48, %s5894_s18  ;;  %v1738_v41 = vadd.f32 %v4805_v6, %v1737_v62  ;;  %2550 = vrot.lane.b32.xlu1 %v4949_v56, %s5895_s29  ;;  %v1668_v44 = vmul.f32 %v5039_v60, %v5039_v60  ;;  %v3060_v48 = vld [vmem:[%s5857_s5 + $0x60] sm:$0xff]  ;;  %vm2007_vm13 = vcmp.ge.s32.totalorder %v1997_v45, 0  ;;  %vm2017_vm14 = vcmp.lt.s32.totalorder %v1997_v45, 16 }
 0x26d   : > { %2080 = vst [vmem:[#allocation3 + $0x61] sm:$0xff] %v5042_v61  ;;  %3071 = vmatpush.msra.mxu2 %v3060_v48  ;;  %vm2027_vm0 = vmand %vm2007_vm13, %vm2017_vm14 }
 0x26e   : > { %3704 = vrsqrt.f32 %v1738_v41  ;;  %1754 = vmatmul.f32.gmra.mxu1 %v1668_v44  ;;  %vm1866_vm11 = vweird.f32 %v1738_v41 }
 0x26f   : > { %3072 = vmatpush.msra.mxu2 %v3059_v11 }
 0x271   : > { %3073 = vmatpush.msra.mxu2 %v3058_v7 }
 0x273   : > { %2974 = vrot.lane.b32.xlu2 %v5066_v59, %s5899_s27  ;;  %3074 = vmatpush.msra.mxu2 %v3057_v13 }
 0x274   : > { %2782 = vrot.lane.b32.xlu0 %v4932_v26, %s5897_s26  ;;  %v3705_v8 = vpop.eup %3704  ;;  %2878 = vrot.lane.b32.xlu1 %v4985_v58, %s5898_s0  ;;  %v5079_v5 = vld [vmem:[#allocation3 + $0x60] sm:$0xff] }
 0x275   : > { %v1861_v12 = vmul.f32 %v3705_v8, %v1738_v41  ;;  %2176 = vst.msk [vmem:[#allocation4 + $0x40] sm:$0xff] %vm449_vm1, %v5079_v5  ;;  %3075 = vmatpush.msra.mxu2 %v3056_v9  ;;  %vm1867_vm10 = vweird.f32 %v3705_v8 }
 0x276   : > { %v2217_v26 = vpop.permute.xlu1 %2216  ;;  %vm1868_vm12 = vmor %vm1866_vm11, %vm1867_vm10 }
 0x277   : > { %v1862_v17 = vmul.f32 %v3705_v8, %v1861_v12  ;;  %2264 = vst.msk [vmem:[#allocation4] sm:$0xff] %vm571_vm2, %v2217_v26  ;;  %3076 = vmatpush.msra.mxu2 %v3055_v32  ;;  %v3571_v26 = vsel %vm2027_vm0, 1.0, %v3856_v0 }
 0x279   : > { %v1863_v19 = vmul.f32 0.5, %v1862_v17  ;;  %3077 = vmatpush.msra.mxu2 %v3054_v24 }
 0x27b   : > { %v1864_v21 = vsub.f32 1.5, %v1863_v19  ;;  %2456 = vrot.lane.b32.xlu2 %v4928_v20, %s5894_s18  ;;  %3078 = vmatpush.msra.mxu2 %v3053_v28  ;;  %v2777_v20 = vpop.permute.xlu0 %2776 }
 0x27c   : > { %2224 = vrot.lane.b32.xlu0 %v4989_v22, %s5900_s14  ;;  %2320 = vrot.lane.b32.xlu1 %v5079_v5, %s5893_s21 }
 0x27d   : > { %v1865_v27 = vmul.f32 %v3705_v8, %v1864_v21  ;;  %3079 = vmatpush.msra.mxu2 %v3052_v34 }
 0x27e   : > { %v2545_v47 = vpop.permute.xlu1 %2544 }
 0x27f   : > { %v1869_v22 = vsel %vm1868_vm12, %v3705_v8, %v1865_v27  ;;  %3080 = vmatpush.msra.mxu2 %v3051_v40 }
 0x280   : > { %v1979_v38 = vmul.f32 %v1869_v22, %v4859_v2  ;;  %v1641_v39 = vpop.f32.mrf.mxu0 }
 0x281   : > { %v5112_v30 = vadd.f32 %v4998_v29, %v1641_v39  ;;  %3081 = vmatpush.msra.mxu2 %v3050_v63 }
 0x282   : > { %v5118_v42 = vmul.f32 %v5032_v52, %v1979_v38  ;;  %v1740_v35 = vpop.f32.mrf.mxu1 }
 0x283   : > { %v1741_v46 = vadd.f32 %v4805_v6, %v1740_v35  ;;  %2784 = vrot.lane.b32.xlu2 %v4971_v15, %s5897_s26  ;;  %v1669_v2 = vmul.f32 %v5112_v30, %v5112_v30  ;;  %3082 = vmatpush.msra.mxu2 %v3049_v37 }
 0x284   : > { %2552 = vrot.lane.b32.xlu0 %v4973_v18, %s5895_s29  ;;  %2081 = vst [vmem:[#allocation3 + $0x69] sm:$0xff] %v5118_v42  ;;  %2648 = vrot.lane.b32.xlu1 %v5042_v61, %s5896_s19 }
 0x285   : > { %3706 = vrsqrt.f32 %v1741_v46  ;;  %1757 = vmatmul.f32.gmra.mxu1 %v1669_v2  ;;  %v2313_v15 = vpop.permute.xlu2 %2312  ;;  %3083 = vmatpush.msra.mxu2 %v3048_v50  ;;  %vm1876_vm10 = vweird.f32 %v1741_v46 }
 0x286   : > { %2360 = vst.msk [vmem:[#allocation4] sm:$0xff] %vm693_vm3, %v2313_v15 }
 0x287   : > { %2496 = vst.msk [vmem:[#allocation4] sm:$0xff] %vm862_vm4, %v2449_v53 }
 0x288   : > { %v2219_v10 = vpop.permute.xlu0 %2218  ;;  %2592 = vst.msk [vmem:[#allocation4] sm:$0xff] %vm983_vm5, %v2545_v47 }
 0x289   : > { %2265 = vst.msk [vmem:[#allocation4 + $0x8] sm:$0xff] %vm571_vm2, %v2219_v10  ;;  %v1998_v10 = vadd.s32 6, %v4829_v23 }
 0x28b   : > { %v3707_v51 = vpop.eup %3706  ;;  %2226 = vrot.lane.b32.xlu2 %v5019_v49, %s5900_s14  ;;  %v5147_v52 = vld [vmem:[#allocation3 + $0x62] sm:$0xff]  ;;  %v2873_v49 = vpop.permute.xlu1 %2872  ;;  %v5186_v24 = vld [vmem:[#allocation3 + $0x6a] sm:$0xff]  ;;  %vm2018_vm0 = vcmp.lt.s32.totalorder %v1998_v10, 16 }
 0x28c   : > { %2880 = vrot.lane.b32.xlu0 %v5021_v14, %s5898_s0  ;;  %v5149_v55 = vld [vmem:[#allocation3 + $0x68] sm:$0xff]  ;;  %v1871_v57 = vmul.f32 %v3707_v51, %v1741_v46  ;;  %2976 = vrot.lane.b32.xlu1 %v5147_v52, %s5899_s27  ;;  %vm1877_vm15 = vweird.f32 %v3707_v51 }
 0x28d   : > { %2177 = vst.msk [vmem:[#allocation4 + $0x48] sm:$0xff] %vm449_vm1, %v5149_v55  ;;  %v2641_v62 = vpop.permute.xlu2 %2640  ;;  %vm1878_vm11 = vmor %vm1876_vm10, %vm1877_vm15  ;;  %vm2008_vm15 = vcmp.ge.s32.totalorder %v1998_v10, 0 }
 0x28e   : > { %v1872_v54 = vmul.f32 %v3707_v51, %v1871_v57  ;;  %2688 = vst.msk [vmem:[#allocation4] sm:$0xff] %vm1104_vm6, %v2641_v62 }
 0x28f   : > { %2824 = vst.msk [vmem:[#allocation4] sm:$0xff] %vm1273_vm7, %v2777_v20 }
 0x290   : > { %v1873_v41 = vmul.f32 0.5, %v1872_v54  ;;  %2920 = vst.msk [vmem:[#allocation4] sm:$0xff] %vm1394_vm8, %v2873_v49  ;;  %v2547_v46 = vpop.permute.xlu0 %2546 }
 0x292   : > { %v1874_v44 = vsub.f32 1.5, %v1873_v41 }
 0x293   : > { %v1644_v1 = vpop.f32.mrf.mxu0  ;;  %2554 = vrot.lane.b32.xlu2 %v5013_v43, %s5895_s29 }
 0x294   : > { %2322 = vrot.lane.b32.xlu0 %v5149_v55, %s5893_s21  ;;  %v1875_v48 = vmul.f32 %v3707_v51, %v1874_v44  ;;  %v5164_v11 = vadd.f32 %v4998_v29, %v1644_v1  ;;  %v1743_v7 = vpop.f32.mrf.mxu1  ;;  %2458 = vrot.lane.b32.xlu1 %v4949_v56, %s5894_s18 }
 0x295   : > { %v1744_v8 = vadd.f32 %v4805_v6, %v1743_v7  ;;  %v2221_v12 = vpop.permute.xlu2 %2220 }
 0x296   : > { %v1879_v13 = vsel %vm1878_vm11, %v3707_v51, %v1875_v48  ;;  %2266 = vst.msk [vmem:[#allocation4 + $0x10] sm:$0xff] %vm571_vm2, %v2221_v12  ;;  %v1670_v53 = vmul.f32 %v5164_v11, %v5164_v11  ;;  %vm2028_vm11 = vmand %vm2008_vm15, %vm2018_vm0 }
 0x297   : > { %v1980_v17 = vmul.f32 %v1879_v13, %v4885_v36  ;;  %3708 = vrsqrt.f32 %v1744_v8  ;;  %vm1886_vm13 = vweird.f32 %v1744_v8  ;;  %v3572_v41 = vsel %vm2028_vm11, 1.0, %v3856_v0 }
 0x298   : > { %1760 = vmatmul.f32.gmra.mxu1 %v1670_v53 }
 0x299   : > { %v5174_v9 = vmul.f32 %v3571_v26, %v1980_v17 }
 0x29b   : > { %2082 = vst [vmem:[#allocation3 + $0x79] sm:$0xff] %v5174_v9  ;;  %2882 = vrot.lane.b32.xlu2 %v5066_v59, %s5898_s0 }
 0x29c   : > { %2650 = vrot.lane.b32.xlu0 %v5118_v42, %s5896_s19  ;;  %2786 = vrot.lane.b32.xlu1 %v4985_v58, %s5897_s26 }
 0x29d   : > { %v3709_v6 = vpop.eup %3708  ;;  %v2969_v56 = vpop.permute.xlu2 %2968 }
 0x29e   : > { %v1881_v19 = vmul.f32 %v3709_v6, %v1744_v8  ;;  %3016 = vst.msk [vmem:[#allocation4] sm:$0xff] %vm1515_vm9, %v2969_v56  ;;  %vm1887_vm12 = vweird.f32 %v3709_v6 }
 0x29f   : > { %vm1888_vm14 = vmor %vm1886_vm13, %vm1887_vm12 }
 0x2a0   : > { %v1882_v36 = vmul.f32 %v3709_v6, %v1881_v19 }
 0x2a2   : > { %v1883_v32 = vmul.f32 0.5, %v1882_v36  ;;  %v5184_v21 = vld [vmem:[#allocation3 + $0x78] sm:$0xff] }
 0x2a3   : > { %2324 = vrot.lane.b32.xlu2 %v5184_v21, %s5893_s21  ;;  %2178 = vst.msk [vmem:[#allocation4 + $0x50] sm:$0xff] %vm449_vm1, %v5184_v21 }
 0x2a4   : > { %2978 = vrot.lane.b32.xlu0 %v5186_v24, %s5899_s27  ;;  %v1884_v58 = vsub.f32 1.5, %v1883_v32  ;;  %2228 = vrot.lane.b32.xlu1 %v5079_v5, %s5900_s14  ;;  %v5211_v5 = vld [vmem:[%s5856_s4] ss:$0 sm:$0xff] }
 0x2a5   : > { %v3032_v27 = vld [vmem:[#allocation4] sm:$0xff]  ;;  %v5199_v39 = vpop.permute.xlu2 %2548 }
 0x2a6   : > { %v1885_v28 = vmul.f32 %v3709_v6, %v1884_v58  ;;  %3084 = vmatmul.f32.vlgmr.msra.gmra.mxu2 %v3032_v27 }
 0x2a8   : > { %v1889_v20 = vsel %vm1888_vm14, %v3709_v6, %v1885_v28 }
 0x2a9   : > { %v1981_v22 = vmul.f32 %v1889_v20, %v4907_v4 }
 0x2aa   : > { %v1647_v34 = vpop.f32.mrf.mxu0 }
 0x2ab   : > { %v5197_v38 = vmul.f32 %v3571_v26, %v1981_v22  ;;  %v5202_v40 = vadd.f32 %v4998_v29, %v1647_v34  ;;  %v1746_v35 = vpop.f32.mrf.mxu1  ;;  %2652 = vrot.lane.b32.xlu2 %v5174_v9, %s5896_s19 }
 0x2ac   : > { %2460 = vrot.lane.b32.xlu0 %v4973_v18, %s5894_s18  ;;  %v1747_v4 = vadd.f32 %v5211_v5, %v1746_v35  ;;  %2556 = vrot.lane.b32.xlu1 %v5042_v61, %s5895_s29 }
 0x2ad   : > { %2083 = vst [vmem:[#allocation3 + $0x81] sm:$0xff] %v5197_v38  ;;  %v1671_v2 = vmul.f32 %v5202_v40, %v5202_v40  ;;  %v2877_v50 = vpop.permute.xlu2 %2876 }
 0x2ae   : > { %3710 = vrsqrt.f32 %v1747_v4  ;;  %v2315_v63 = vpop.permute.xlu1 %2314  ;;  %vm1896_vm12 = vweird.f32 %v1747_v4 }
 0x2af   : > { %1763 = vmatmul.f32.gmra.mxu1 %v1671_v2  ;;  %2361 = vst.msk [vmem:[#allocation4 + $0x8] sm:$0xff] %vm693_vm3, %v2315_v63 }
 0x2b0   : > { %2497 = vst.msk [vmem:[#allocation4 + $0x8] sm:$0xff] %vm862_vm4, %v5068_v3 }
 0x2b1   : > { %2593 = vst.msk [vmem:[#allocation4 + $0x8] sm:$0xff] %vm983_vm5, %v2547_v46 }
 0x2b4   : > { %2788 = vrot.lane.b32.xlu0 %v5021_v14, %s5897_s26  ;;  %v3711_v18 = vpop.eup %3710  ;;  %2884 = vrot.lane.b32.xlu1 %v5147_v52, %s5898_s0  ;;  %v5227_v47 = vld [vmem:[#allocation3 + $0x7a] sm:$0xff]  ;;  %v2875_v14 = vpop.permute.xlu0 %2874  ;;  %v5271_v17 = vld [vmem:[#allocation3 + $0x82] sm:$0xff] }
 0x2b5   : > { %v5229_v15 = vld [vmem:[#allocation3 + $0x80] sm:$0xff]  ;;  %v1891_v37 = vmul.f32 %v3711_v18, %v1747_v4  ;;  %2980 = vrot.lane.b32.xlu2 %v5227_v47, %s5899_s27  ;;  %vm1897_vm10 = vweird.f32 %v3711_v18 }
 0x2b6   : > { %2179 = vst.msk [vmem:[#allocation4 + $0x58] sm:$0xff] %vm449_vm1, %v5229_v15  ;;  %v2643_v3 = vpop.permute.xlu1 %2642  ;;  %vm1898_vm13 = vmor %vm1896_vm12, %vm1897_vm10 }
 0x2b7   : > { %v1892_v51 = vmul.f32 %v3711_v18, %v1891_v37  ;;  %2689 = vst.msk [vmem:[#allocation4 + $0x8] sm:$0xff] %vm1104_vm6, %v2643_v3 }
 0x2b8   : > { %2825 = vst.msk [vmem:[#allocation4 + $0x8] sm:$0xff] %vm1273_vm7, %v5102_v25 }
 0x2b9   : > { %v1893_v57 = vmul.f32 0.5, %v1892_v51  ;;  %2921 = vst.msk [vmem:[#allocation4 + $0x8] sm:$0xff] %vm1394_vm8, %v2875_v14 }
 0x2bb   : > { %v1894_v45 = vsub.f32 1.5, %v1893_v57 }
 0x2bc   : > { %2230 = vrot.lane.b32.xlu0 %v5149_v55, %s5900_s14  ;;  %2326 = vrot.lane.b32.xlu1 %v5229_v15, %s5893_s21 }
 0x2bd   : > { %v1895_v62 = vmul.f32 %v3711_v18, %v1894_v45  ;;  %2462 = vrot.lane.b32.xlu2 %v5013_v43, %s5894_s18  ;;  %v2319_v25 = vpop.permute.xlu2 %2318 }
 0x2be   : > { %v2971_v54 = vpop.permute.xlu1 %2970 }
 0x2bf   : > { %v1899_v49 = vsel %vm1898_vm13, %v3711_v18, %v1895_v62  ;;  %3017 = vst.msk [vmem:[#allocation4 + $0x8] sm:$0xff] %vm1515_vm9, %v2971_v54  ;;  %v2317_v44 = vpop.permute.xlu0 %2316  ;;  %v1999_v18 = vadd.s32 7, %v4829_v23 }
 0x2c0   : > { %v1982_v55 = vmul.f32 %v1899_v49, %v4938_v33  ;;  %2362 = vst.msk [vmem:[#allocation4 + $0x10] sm:$0xff] %vm693_vm3, %v2317_v44  ;;  %v1650_v1 = vpop.f32.mrf.mxu0 }
 0x2c1   : > { %v5251_v48 = vadd.f32 %v4998_v29, %v1650_v1  ;;  %vm2009_vm10 = vcmp.ge.s32.totalorder %v1999_v18, 0  ;;  %vm2019_vm11 = vcmp.lt.s32.totalorder %v1999_v18, 16 }
 0x2c2   : > { %v5253_v7 = vmul.f32 %v3572_v41, %v1982_v55  ;;  %v1749_v43 = vpop.f32.mrf.mxu1  ;;  %vm2029_vm13 = vmand %vm2009_vm10, %vm2019_vm11 }
 0x2c3   : > { %v1750_v8 = vadd.f32 %v5211_v5, %v1749_v43  ;;  %v1672_v12 = vmul.f32 %v5251_v48, %v5251_v48  ;;  %v5328_v54 = vsel %vm2029_vm13, 1.0, %v3856_v0  ;;  %v3197_v43 = vld [vmem:[%s5859_s7 + $0x78] sm:$0xff] }
 0x2c4   : > { %2558 = vrot.lane.b32.xlu0 %v5118_v42, %s5895_s29  ;;  %2084 = vst [vmem:[#allocation3 + $0x91] sm:$0xff] %v5253_v7  ;;  %2654 = vrot.lane.b32.xlu1 %v5197_v38, %s5896_s19 }
 0x2c5   : > { %3712 = vrsqrt.f32 %v1750_v8  ;;  %1766 = vmatmul.f32.gmra.mxu1 %v1672_v12  ;;  %2790 = vrot.lane.b32.xlu2 %v5066_v59, %s5897_s26  ;;  %v2647_v33 = vpop.permute.xlu2 %2646  ;;  %vm1906_vm15 = vweird.f32 %v1750_v8 }
 0x2c6   : > { %v2453_v29 = vpop.permute.xlu1 %2452  ;;  %v3033_v13 = vld [vmem:[#allocation4 + $0x8] sm:$0xff]  ;;  %3202 = vmatpush.msra.mxu3 %v3197_v43 }
 0x2c7   : > { %2498 = vst.msk [vmem:[#allocation4 + $0x10] sm:$0xff] %vm862_vm4, %v2453_v29  ;;  %v2645_v26 = vpop.permute.xlu0 %2644  ;;  %3087 = vmatmul.f32.gmra.mxu2 %v3033_v13 }
 0x2c8   : > { %2594 = vst.msk [vmem:[#allocation4 + $0x10] sm:$0xff] %vm983_vm5, %v5199_v39 }
 0x2c9   : > { %2690 = vst.msk [vmem:[#allocation4 + $0x10] sm:$0xff] %vm1104_vm6, %v2645_v26  ;;  %v3196_v26 = vld [vmem:[%s5859_s7 + $0x70] sm:$0xff] }
 0x2ca   : > { %3203 = vmatpush.msra.mxu3 %v3196_v26 }
 0x2cb   : > { %v3713_v53 = vpop.eup %3712  ;;  %v5273_v6 = vld [vmem:[#allocation3 + $0x90] sm:$0xff] }
 0x2cc   : > { %2886 = vrot.lane.b32.xlu0 %v5186_v24, %s5898_s0  ;;  %v1901_v59 = vmul.f32 %v3713_v53, %v1750_v8  ;;  %2982 = vrot.lane.b32.xlu1 %v5271_v17, %s5899_s27  ;;  %2180 = vst.msk [vmem:[#allocation4 + $0x60] sm:$0xff] %vm449_vm1, %v5273_v6  ;;  %vm1907_vm14 = vweird.f32 %v3713_v53 }
 0x2cd   : > { %2232 = vrot.lane.b32.xlu2 %v5184_v21, %s5900_s14  ;;  %v5281_v56 = vpop.permute.xlu2 %2974  ;;  %vm1908_vm0 = vmor %vm1906_vm15, %vm1907_vm14 }
 0x2ce   : > { %v1902_v19 = vmul.f32 %v3713_v53, %v1901_v59  ;;  %v2781_v36 = vpop.permute.xlu1 %2780 }
 0x2cf   : > { %2826 = vst.msk [vmem:[#allocation4 + $0x10] sm:$0xff] %vm1273_vm7, %v2781_v36  ;;  %v3194_v36 = vld [vmem:[%s5859_s7 + $0x60] sm:$0xff] }
 0x2d0   : > { %v1903_v32 = vmul.f32 0.5, %v1902_v19  ;;  %2922 = vst.msk [vmem:[#allocation4 + $0x10] sm:$0xff] %vm1394_vm8, %v2877_v50 }
 0x2d2   : > { %v1904_v58 = vsub.f32 1.5, %v1903_v32 }
 0x2d4   : > { %2328 = vrot.lane.b32.xlu0 %v5273_v6, %s5893_s21  ;;  %v1905_v27 = vmul.f32 %v3713_v53, %v1904_v58  ;;  %v1752_v28 = vpop.f32.mrf.mxu1  ;;  %2464 = vrot.lane.b32.xlu1 %v5042_v61, %s5894_s18  ;;  %v3193_v58 = vld [vmem:[%s5859_s7 + $0x58] sm:$0xff] }
 0x2d5   : > { %v1753_v21 = vadd.f32 %v5211_v5, %v1752_v28  ;;  %2560 = vrot.lane.b32.xlu2 %v5174_v9, %s5895_s29  ;;  %v5292_v20 = vpop.permute.xlu2 %2456 }
 0x2d6   : > { %v2973_v22 = vpop.permute.xlu0 %2972  ;;  %v1909_v34 = vsel %vm1908_vm0, %v3713_v53, %v1905_v27  ;;  %v2223_v39 = vpop.permute.xlu1 %2222 }
 0x2d7   : > { %3018 = vst.msk [vmem:[#allocation4 + $0x10] sm:$0xff] %vm1515_vm9, %v2973_v22  ;;  %v1983_v35 = vmul.f32 %v1909_v34, %v4969_v16  ;;  %3714 = vrsqrt.f32 %v1753_v21  ;;  %vm1916_vm14 = vweird.f32 %v1753_v21  ;;  %v3191_v34 = vld [vmem:[%s5859_s7 + $0x48] sm:$0xff] }
 0x2d8   : > { %2267 = vst.msk [vmem:[#allocation4 + $0x18] sm:$0xff] %vm571_vm2, %v2223_v39  ;;  %v3190_v39 = vld [vmem:[%s5859_s7 + $0x40] sm:$0xff] }
 0x2d9   : > { %2363 = vst.msk [vmem:[#allocation4 + $0x18] sm:$0xff] %vm693_vm3, %v2319_v25  ;;  %v5298_v61 = vmul.f32 %v3572_v41, %v1983_v35 }
 0x2db   : > { %2085 = vst [vmem:[#allocation3 + $0x99] sm:$0xff] %v5298_v61 }
 0x2dc   : > { %2656 = vrot.lane.b32.xlu0 %v5253_v7, %s5896_s19  ;;  %2792 = vrot.lane.b32.xlu1 %v5147_v52, %s5897_s26 }
 0x2dd   : > { %v3715_v4 = vpop.eup %3714  ;;  %2888 = vrot.lane.b32.xlu2 %v5227_v47, %s5898_s0  ;;  %v5307_v16 = vpop.permute.xlu2 %2784 }
 0x2de   : > { %v2455_v46 = vpop.permute.xlu0 %2454  ;;  %v3034_v2 = vld [vmem:[#allocation4 + $0x10] sm:$0xff]  ;;  %v1911_v63 = vmul.f32 %v3715_v4, %v1753_v21  ;;  %v2551_v37 = vpop.permute.xlu1 %2550  ;;  %vm1917_vm12 = vweird.f32 %v3715_v4 }
 0x2df   : > { %2499 = vst.msk [vmem:[#allocation4 + $0x18] sm:$0xff] %vm862_vm4, %v2455_v46  ;;  %3090 = vmatmul.f32.gmra.mxu2 %v3034_v2  ;;  %vm1918_vm15 = vmor %vm1916_vm14, %vm1917_vm12  ;;  %v3189_v46 = vld [vmem:[%s5859_s7 + $0x38] sm:$0xff]  ;;  %v3188_v2 = vld [vmem:[%s5859_s7 + $0x30] sm:$0xff] }
 0x2e0   : > { %2595 = vst.msk [vmem:[#allocation4 + $0x18] sm:$0xff] %vm983_vm5, %v2551_v37  ;;  %v1912_v10 = vmul.f32 %v3715_v4, %v1911_v63 }
 0x2e1   : > { %2691 = vst.msk [vmem:[#allocation4 + $0x18] sm:$0xff] %vm1104_vm6, %v2647_v33 }
 0x2e2   : > { %v1913_v52 = vmul.f32 0.5, %v1912_v10  ;;  %v5313_v50 = vld [vmem:[#allocation3 + $0x92] sm:$0xff]  ;;  %v5358_v12 = vld [vmem:[#allocation3 + $0x9a] sm:$0xff]  ;;  %v3187_v10 = vld [vmem:[%s5859_s7 + $0x28] sm:$0xff] }
 0x2e3   : > { %v5315_v3 = vld [vmem:[#allocation3 + $0x98] sm:$0xff] }
 0x2e4   : > { %2984 = vrot.lane.b32.xlu0 %v5313_v50, %s5899_s27  ;;  %2181 = vst.msk [vmem:[#allocation4 + $0x68] sm:$0xff] %vm449_vm1, %v5315_v3  ;;  %v1914_v14 = vsub.f32 1.5, %v1913_v52  ;;  %2234 = vrot.lane.b32.xlu1 %v5229_v15, %s5900_s14 }
 0x2e5   : > { %2330 = vrot.lane.b32.xlu2 %v5315_v3, %s5893_s21  ;;  %v2227_v51 = vpop.permute.xlu2 %2226 }
 0x2e6   : > { %v2783_v57 = vpop.permute.xlu0 %2782  ;;  %v1915_v45 = vmul.f32 %v3715_v4, %v1914_v14  ;;  %2269 = vst.msk [vmem:[#allocation4 + $0x28] sm:$0xff] %vm571_vm2, %v2227_v51  ;;  %v2879_v62 = vpop.permute.xlu1 %2878 }
 0x2e7   : > { %2827 = vst.msk [vmem:[#allocation4 + $0x18] sm:$0xff] %vm1273_vm7, %v2783_v57 }
 0x2e8   : > { %v1919_v25 = vsel %vm1918_vm15, %v3715_v4, %v1915_v45  ;;  %2923 = vst.msk [vmem:[#allocation4 + $0x18] sm:$0xff] %vm1394_vm8, %v2879_v62  ;;  %v2000_v45 = vadd.s32 8, %v4829_v23  ;;  %v3185_v62 = vld [vmem:[%s5859_s7 + $0x18] sm:$0xff] }
 0x2e9   : > { %v1984_v15 = vmul.f32 %v1919_v25, %v5001_v31  ;;  %3019 = vst.msk [vmem:[#allocation4 + $0x18] sm:$0xff] %vm1515_vm9, %v5281_v56  ;;  %v3195_v56 = vld [vmem:[%s5859_s7 + $0x68] sm:$0xff] }
 0x2ea   : > { %3204 = vmatpush.msra.mxu3 %v3195_v56  ;;  %vm2020_vm12 = vcmp.lt.s32.totalorder %v2000_v45, 16 }
 0x2eb   : > { %v5335_v49 = vmul.f32 %v5328_v54, %v1984_v15  ;;  %v1755_v41 = vpop.f32.mrf.mxu1 }
 0x2ec   : > { %2466 = vrot.lane.b32.xlu0 %v5118_v42, %s5894_s18  ;;  %v1756_v44 = vadd.f32 %v5211_v5, %v1755_v41  ;;  %2562 = vrot.lane.b32.xlu1 %v5197_v38, %s5895_s29 }
 0x2ed   : > { %2086 = vst [vmem:[#allocation3 + $0xa9] sm:$0xff] %v5335_v49  ;;  %2658 = vrot.lane.b32.xlu2 %v5298_v61, %s5896_s19  ;;  %v5345_v31 = vpop.permute.xlu2 %2554  ;;  %3205 = vmatpush.msra.mxu3 %v3194_v36 }
 0x2ee   : > { %v2225_v55 = vpop.permute.xlu0 %2224  ;;  %3716 = vrsqrt.f32 %v1756_v44  ;;  %v2321_v1 = vpop.permute.xlu1 %2320  ;;  %vm1926_vm10 = vweird.f32 %v1756_v44 }
 0x2ef   : > { %2268 = vst.msk [vmem:[#allocation4 + $0x20] sm:$0xff] %vm571_vm2, %v2225_v55  ;;  %3206 = vmatpush.msra.mxu3 %v3193_v58  ;;  %v3182_v55 = vld [vmem:[%s5859_s7] sm:$0xff] }
 0x2f0   : > { %2364 = vst.msk [vmem:[#allocation4 + $0x20] sm:$0xff] %vm693_vm3, %v2321_v1  ;;  %v3035_v42 = vld [vmem:[#allocation4 + $0x18] sm:$0xff] }
 0x2f1   : > { %2500 = vst.msk [vmem:[#allocation4 + $0x20] sm:$0xff] %vm862_vm4, %v5292_v20  ;;  %3093 = vmatmul.f32.gmra.mxu2 %v3035_v42 }
 0x2f4   : > { %2794 = vrot.lane.b32.xlu0 %v5186_v24, %s5897_s26  ;;  %v3717_v8 = vpop.eup %3716  ;;  %2890 = vrot.lane.b32.xlu1 %v5271_v17, %s5898_s0  ;;  %v5360_v33 = vld [vmem:[#allocation3 + $0xa8] sm:$0xff] }
 0x2f5   : > { %v1921_v29 = vmul.f32 %v3717_v8, %v1756_v44  ;;  %2986 = vrot.lane.b32.xlu2 %v5358_v12, %s5899_s27  ;;  %v5364_v13 = vpop.permute.xlu2 %2882  ;;  %2182 = vst.msk [vmem:[#allocation4 + $0x70] sm:$0xff] %vm449_vm1, %v5360_v33  ;;  %vm1927_vm0 = vweird.f32 %v3717_v8 }
 0x2f6   : > { %v2553_v24 = vpop.permute.xlu0 %2552  ;;  %v2649_v53 = vpop.permute.xlu1 %2648  ;;  %vm1928_vm11 = vmor %vm1926_vm10, %vm1927_vm0 }
 0x2f7   : > { %2596 = vst.msk [vmem:[#allocation4 + $0x20] sm:$0xff] %vm983_vm5, %v2553_v24  ;;  %v1922_v59 = vmul.f32 %v3717_v8, %v1921_v29 }
 0x2f8   : > { %2692 = vst.msk [vmem:[#allocation4 + $0x20] sm:$0xff] %vm1104_vm6, %v2649_v53 }
 0x2f9   : > { %2828 = vst.msk [vmem:[#allocation4 + $0x20] sm:$0xff] %vm1273_vm7, %v5307_v16  ;;  %v1923_v19 = vmul.f32 0.5, %v1922_v59 }
 0x2fb   : > { %v1924_v32 = vsub.f32 1.5, %v1923_v19 }
 0x2fc   : > { %2236 = vrot.lane.b32.xlu0 %v5273_v6, %s5900_s14  ;;  %2332 = vrot.lane.b32.xlu1 %v5360_v33, %s5893_s21  ;;  %v3192_v6 = vld [vmem:[%s5859_s7 + $0x50] sm:$0xff] }
 0x2fd   : > { %v1925_v27 = vmul.f32 %v3717_v8, %v1924_v32  ;;  %2468 = vrot.lane.b32.xlu2 %v5174_v9, %s5894_s18  ;;  %v5390_v28 = vpop.permute.xlu2 %2324  ;;  %3207 = vmatpush.msra.mxu3 %v3192_v6 }
 0x2fe   : > { %v2881_v21 = vpop.permute.xlu0 %2880  ;;  %v2977_v20 = vpop.permute.xlu1 %2976 }
 0x2ff   : > { %2924 = vst.msk [vmem:[#allocation4 + $0x20] sm:$0xff] %vm1394_vm8, %v2881_v21  ;;  %v1929_v22 = vsel %vm1928_vm11, %v3717_v8, %v1925_v27  ;;  %3208 = vmatpush.msra.mxu3 %v3191_v34  ;;  %v5504_v34 = vld [vmem:[%s5858_s6] ss:$0 sm:$0xff] }
 0x300   : > { %3020 = vst.msk [vmem:[#allocation4 + $0x20] sm:$0xff] %vm1515_vm9, %v2977_v20  ;;  %v1985_v9 = vmul.f32 %v1929_v22, %v5039_v60 }
 0x301   : > { %3209 = vmatpush.msra.mxu3 %v3190_v39 }
 0x302   : > { %v5405_v35 = vmul.f32 %v5328_v54, %v1985_v9  ;;  %v1758_v4 = vpop.f32.mrf.mxu1  ;;  %v3184_v54 = vld [vmem:[%s5859_s7 + $0x10] sm:$0xff] }
 0x303   : > { %v1759_v16 = vadd.f32 %v5211_v5, %v1758_v4  ;;  %3210 = vmatpush.msra.mxu3 %v3189_v46 }
 0x304   : > { %2564 = vrot.lane.b32.xlu0 %v5253_v7, %s5895_s29  ;;  %2087 = vst [vmem:[#allocation3 + $0xb1] sm:$0xff] %v5405_v35  ;;  %2660 = vrot.lane.b32.xlu1 %v5335_v49, %s5896_s19 }
 0x305   : > { %3718 = vrsqrt.f32 %v1759_v16  ;;  %2796 = vrot.lane.b32.xlu2 %v5227_v47, %s5897_s26  ;;  %3211 = vmatpush.msra.mxu3 %v3188_v2  ;;  %v5422_v37 = vpop.permute.xlu2 %2652  ;;  %v3186_v47 = vld [vmem:[%s5859_s7 + $0x20] sm:$0xff]  ;;  %vm1936_vm15 = vweird.f32 %v1759_v16 }
 0x306   : > { %v2323_v60 = vpop.permute.xlu0 %2322  ;;  %v2459_v63 = vpop.permute.xlu1 %2458 }
 0x307   : > { %2365 = vst.msk [vmem:[#allocation4 + $0x28] sm:$0xff] %vm693_vm3, %v2323_v60  ;;  %v3036_v18 = vld [vmem:[#allocation4 + $0x20] sm:$0xff]  ;;  %3212 = vmatpush.msra.mxu3 %v3187_v10 }
 0x308   : > { %2501 = vst.msk [vmem:[#allocation4 + $0x28] sm:$0xff] %vm862_vm4, %v2459_v63  ;;  %3096 = vmatmul.f32.gmra.mxu2 %v3036_v18 }
 0x309   : > { %2597 = vst.msk [vmem:[#allocation4 + $0x28] sm:$0xff] %vm983_vm5, %v5345_v31  ;;  %3213 = vmatpush.msra.mxu3 %v3186_v47  ;;  %v3183_v31 = vld [vmem:[%s5859_s7 + $0x8] sm:$0xff] }
 0x30b   : > { %v3719_v52 = vpop.eup %3718  ;;  %v5435_v14 = vld [vmem:[#allocation3 + $0xaa] sm:$0xff]  ;;  %3214 = vmatpush.msra.mxu3 %v3185_v62 }
 0x30c   : > { %2892 = vrot.lane.b32.xlu0 %v5313_v50, %s5898_s0  ;;  %v5437_v51 = vld [vmem:[#allocation3 + $0xb0] sm:$0xff]  ;;  %v1931_v57 = vmul.f32 %v3719_v52, %v1759_v16  ;;  %2988 = vrot.lane.b32.xlu1 %v5435_v14, %s5899_s27  ;;  %vm1937_vm13 = vweird.f32 %v3719_v52 }
 0x30d   : > { %2183 = vst.msk [vmem:[#allocation4 + $0x78] sm:$0xff] %vm449_vm1, %v5437_v51  ;;  %2238 = vrot.lane.b32.xlu2 %v5315_v3, %s5900_s14  ;;  %3215 = vmatpush.msra.mxu3 %v3184_v54  ;;  %vm2010_vm1 = vcmp.ge.s32.totalorder %v2000_v45, 0  ;;  %vm1938_vm0 = vmor %vm1936_vm15, %vm1937_vm13  ;;  %v3576_v16 = vld [vmem:[%s4006_s24 + $0x31] sm:$0xff]  ;;  %v2001_v54 = vadd.s32 9, %v4829_v23 }
 0x30e   : > { %v2651_v25 = vpop.permute.xlu0 %2650  ;;  %v1932_v15 = vmul.f32 %v3719_v52, %v1931_v57  ;;  %v2787_v41 = vpop.permute.xlu1 %2786  ;;  %vm2030_vm14 = vmand %vm2010_vm1, %vm2020_vm12 }
 0x30f   : > { %2693 = vst.msk [vmem:[#allocation4 + $0x28] sm:$0xff] %vm1104_vm6, %v2651_v25  ;;  %v5454_v44 = vpop.permute.xlu2 %2980  ;;  %3216 = vmatpush.msra.mxu3 %v3183_v31  ;;  %vm2011_vm12 = vcmp.ge.s32.totalorder %v2001_v54, 0  ;;  %vm2021_vm13 = vcmp.lt.s32.totalorder %v2001_v54, 16 }
 0x310   : > { %2829 = vst.msk [vmem:[#allocation4 + $0x28] sm:$0xff] %vm1273_vm7, %v2787_v41  ;;  %v1933_v3 = vmul.f32 0.5, %v1932_v15  ;;  %vm2031_vm15 = vmand %vm2011_vm12, %vm2021_vm13 }
 0x311   : > { %2925 = vst.msk [vmem:[#allocation4 + $0x28] sm:$0xff] %vm1394_vm8, %v5364_v13  ;;  %3217 = vmatpush.msra.mxu3 %v3182_v55  ;;  %v3574_v13 = vsel %vm2030_vm14, 1.0, %v3856_v0 }
 0x312   : > { %v1934_v1 = vsub.f32 1.5, %v1933_v3 }
 0x314   : > { %2334 = vrot.lane.b32.xlu0 %v5437_v51, %s5893_s21  ;;  %v1935_v42 = vmul.f32 %v3719_v52, %v1934_v1  ;;  %2470 = vrot.lane.b32.xlu1 %v5197_v38, %s5894_s18 }
 0x315   : > { %v1761_v43 = vpop.f32.mrf.mxu1  ;;  %2566 = vrot.lane.b32.xlu2 %v5298_v61, %s5895_s29 }
 0x316   : > { %v2979_v8 = vpop.permute.xlu0 %2978  ;;  %v1939_v29 = vsel %vm1938_vm0, %v3719_v52, %v1935_v42  ;;  %v1762_v24 = vadd.f32 %v5211_v5, %v1761_v43  ;;  %v2229_v26 = vpop.permute.xlu1 %2228  ;;  %v3575_v43 = vsel %vm2031_vm15, 1.0, %v3856_v0 }
 0x317   : > { %3021 = vst.msk [vmem:[#allocation4 + $0x28] sm:$0xff] %vm1515_vm9, %v2979_v8  ;;  %v1986_v53 = vmul.f32 %v1939_v29, %v5112_v30  ;;  %v2463_v59 = vpop.permute.xlu2 %2462 }
 0x318   : > { %2270 = vst.msk [vmem:[#allocation4 + $0x30] sm:$0xff] %vm571_vm2, %v2229_v26  ;;  %3720 = vrsqrt.f32 %v1762_v24  ;;  %vm1946_vm11 = vweird.f32 %v1762_v24 }
 0x319   : > { %2366 = vst.msk [vmem:[#allocation4 + $0x30] sm:$0xff] %vm693_vm3, %v5390_v28  ;;  %v5477_v38 = vmul.f32 %v3574_v13, %v1986_v53  ;;  %v5490_v28 = vld [vmem:[#allocation3 + $0xb2] sm:$0xff] }
 0x31a   : > { %v3577_v53 = vld [vmem:[%s4006_s24 + $0x39] sm:$0xff] }
 0x31b   : > { %2088 = vst [vmem:[#allocation3 + $0xc1] sm:$0xff] %v5477_v38 }
 0x31c   : > { %2662 = vrot.lane.b32.xlu0 %v5405_v35, %s5896_s19  ;;  %2798 = vrot.lane.b32.xlu1 %v5271_v17, %s5897_s26 }
 0x31d   : > { %2894 = vrot.lane.b32.xlu2 %v5358_v12, %s5898_s0 }
 0x31e   : > { %v2461_v30 = vpop.permute.xlu0 %2460  ;;  %v3037_v56 = vld [vmem:[#allocation4 + $0x28] sm:$0xff]  ;;  %v3721_v19 = vpop.eup %3720 }
 0x31f   : > { %2502 = vst.msk [vmem:[#allocation4 + $0x30] sm:$0xff] %vm862_vm4, %v2461_v30  ;;  %v2557_v36 = vpop.permute.xlu1 %2556  ;;  %3099 = vmatmul.f32.gmra.mxu2 %v3037_v56  ;;  %v1941_v32 = vmul.f32 %v3721_v19, %v1762_v24  ;;  %v2791_v58 = vpop.permute.xlu2 %2790  ;;  %vm1947_vm10 = vweird.f32 %v3721_v19 }
 0x320   : > { %2598 = vst.msk [vmem:[#allocation4 + $0x30] sm:$0xff] %vm983_vm5, %v2557_v36  ;;  %vm1948_vm1 = vmor %vm1946_vm11, %vm1947_vm10 }
 0x321   : > { %2694 = vst.msk [vmem:[#allocation4 + $0x30] sm:$0xff] %vm1104_vm6, %v5422_v37  ;;  %v1942_v27 = vmul.f32 %v3721_v19, %v1941_v32 }
 0x322   : > { %v5496_v21 = vld [vmem:[#allocation3 + $0xc0] sm:$0xff] }
 0x323   : > { %v1943_v17 = vmul.f32 0.5, %v1942_v27 }
 0x324   : > { %2990 = vrot.lane.b32.xlu0 %v5490_v28, %s5899_s27  ;;  %2240 = vrot.lane.b32.xlu1 %v5360_v33, %s5900_s14 }
 0x325   : > { %v1944_v6 = vsub.f32 1.5, %v1943_v17  ;;  %2336 = vrot.lane.b32.xlu2 %v5496_v21, %s5893_s21 }
 0x326   : > { %v2789_v20 = vpop.permute.xlu0 %2788 }
 0x327   : > { %2830 = vst.msk [vmem:[#allocation4 + $0x30] sm:$0xff] %vm1273_vm7, %v2789_v20  ;;  %v2885_v22 = vpop.permute.xlu1 %2884  ;;  %v1945_v9 = vmul.f32 %v3721_v19, %v1944_v6  ;;  %v2233_v33 = vpop.permute.xlu2 %2232 }
 0x328   : > { %2926 = vst.msk [vmem:[#allocation4 + $0x30] sm:$0xff] %vm1394_vm8, %v2885_v22 }
 0x329   : > { %3022 = vst.msk [vmem:[#allocation4 + $0x30] sm:$0xff] %vm1515_vm9, %v5454_v44  ;;  %v1949_v39 = vsel %vm1948_vm1, %v3721_v19, %v1945_v9  ;;  %v3085_v4 = vpop.f32.mrf.mxu2 }
 0x32a   : > { %2272 = vst.msk [vmem:[#allocation4 + $0x40] sm:$0xff] %vm571_vm2, %v2233_v33  ;;  %v1987_v46 = vmul.f32 %v1949_v39, %v5164_v11  ;;  %v3086_v60 = vadd.f32 %v5504_v34, %v3085_v4 }
 0x32c   : > { %2472 = vrot.lane.b32.xlu0 %v5253_v7, %s5894_s18  ;;  %v5515_v2 = vmul.f32 %v3574_v13, %v1987_v46  ;;  %v5517_v63 = vadd.f32 %v3576_v16, %v3086_v60  ;;  %v1764_v18 = vpop.f32.mrf.mxu1  ;;  %2568 = vrot.lane.b32.xlu1 %v5335_v49, %s5895_s29 }
 0x32d   : > { %v1765_v37 = vadd.f32 %v5211_v5, %v1764_v18  ;;  %2664 = vrot.lane.b32.xlu2 %v5477_v38, %s5896_s19 }
 0x32e   : > { %v2231_v10 = vpop.permute.xlu0 %2230  ;;  %2089 = vst [vmem:[#allocation3 + $0xc9] sm:$0xff] %v5515_v2  ;;  %v3166_v7 = vmul.f32 %v5517_v63, %v5517_v63 }
 0x32f   : > { %v2327_v11 = vpop.permute.xlu1 %2326  ;;  %3722 = vrsqrt.f32 %v1765_v37  ;;  %2271 = vst.msk [vmem:[#allocation4 + $0x38] sm:$0xff] %vm571_vm2, %v2231_v10  ;;  %v2561_v47 = vpop.permute.xlu2 %2560  ;;  %vm1956_vm0 = vweird.f32 %v1765_v37 }
 0x330   : > { %v3038_v52 = vld [vmem:[#allocation4 + $0x30] sm:$0xff]  ;;  %2367 = vst.msk [vmem:[#allocation4 + $0x38] sm:$0xff] %vm693_vm3, %v2327_v11  ;;  %3218 = vmatmul.f32.vlgmr.msra.gmra.mxu3 %v3166_v7 }
 0x331   : > { %3102 = vmatmul.f32.gmra.mxu2 %v3038_v52  ;;  %2503 = vst.msk [vmem:[#allocation4 + $0x38] sm:$0xff] %vm862_vm4, %v2463_v59 }
 0x334   : > { %2800 = vrot.lane.b32.xlu0 %v5313_v50, %s5897_s26  ;;  %2896 = vrot.lane.b32.xlu1 %v5435_v14, %s5898_s0 }
 0x335   : > { %v3723_v57 = vpop.eup %3722  ;;  %v5534_v45 = vld [vmem:[#allocation3 + $0xc2] sm:$0xff]  ;;  %v5568_v56 = vld [vmem:[#allocation3 + $0xca] sm:$0xff] }
 0x336   : > { %v2559_v62 = vpop.permute.xlu0 %2558  ;;  %v1951_v25 = vmul.f32 %v3723_v57, %v1765_v37  ;;  %2992 = vrot.lane.b32.xlu2 %v5534_v45, %s5899_s27  ;;  %v5544_v31 = vld [vmem:[#allocation3 + $0xc8] sm:$0xff]  ;;  %vm1957_vm14 = vweird.f32 %v3723_v57 }
 0x337   : > { %2599 = vst.msk [vmem:[#allocation4 + $0x38] sm:$0xff] %vm983_vm5, %v2559_v62  ;;  %v2655_v15 = vpop.permute.xlu1 %2654  ;;  %v2889_v41 = vpop.permute.xlu2 %2888  ;;  %vm1958_vm10 = vmor %vm1956_vm0, %vm1957_vm14  ;;  %v3578_v37 = vld [vmem:[%s4006_s24 + $0x49] sm:$0xff] }
 0x338   : > { %2695 = vst.msk [vmem:[#allocation4 + $0x38] sm:$0xff] %vm1104_vm6, %v2655_v15  ;;  %v1952_v50 = vmul.f32 %v3723_v57, %v1951_v25 }
 0x339   : > { %2831 = vst.msk [vmem:[#allocation4 + $0x38] sm:$0xff] %vm1273_vm7, %v2791_v58 }
 0x33a   : > { %v1953_v44 = vmul.f32 0.5, %v1952_v50 }
 0x33c   : > { %2242 = vrot.lane.b32.xlu0 %v5437_v51, %s5900_s14  ;;  %v1954_v23 = vsub.f32 1.5, %v1953_v44  ;;  %2338 = vrot.lane.b32.xlu1 %v5544_v31, %s5893_s21 }
 0x33e   : > { %v2887_v3 = vpop.permute.xlu0 %2886  ;;  %v1955_v55 = vmul.f32 %v3723_v57, %v1954_v23  ;;  %2474 = vrot.lane.b32.xlu2 %v5298_v61, %s5894_s18 }
 0x33f   : > { %2927 = vst.msk [vmem:[#allocation4 + $0x38] sm:$0xff] %vm1394_vm8, %v2887_v3  ;;  %v2983_v1 = vpop.permute.xlu1 %2982  ;;  %v2331_v51 = vpop.permute.xlu2 %2330 }
 0x340   : > { %3023 = vst.msk [vmem:[#allocation4 + $0x38] sm:$0xff] %vm1515_vm9, %v2983_v1  ;;  %v1959_v42 = vsel %vm1958_vm10, %v3723_v57, %v1955_v55 }
 0x341   : > { %v1988_v8 = vmul.f32 %v1959_v42, %v5202_v40 }
 0x342   : > { %v1767_v29 = vpop.f32.mrf.mxu1 }
 0x343   : > { %v2070_v13 = vmul.f32 %v3575_v43, %v1988_v8  ;;  %v1768_v24 = vadd.f32 %v5211_v5, %v1767_v29 }
 0x344   : > { %2570 = vrot.lane.b32.xlu0 %v5405_v35, %s5895_s29  ;;  %2666 = vrot.lane.b32.xlu1 %v5515_v2, %s5896_s19 }
 0x345   : > { %2090 = vst [vmem:[#allocation3 + $0xd9] sm:$0xff] %v2070_v13  ;;  %3724 = vrsqrt.f32 %v1768_v24  ;;  %vm1966_vm1 = vweird.f32 %v1768_v24 }
 0x346   : > { %v2329_v61 = vpop.permute.xlu0 %2328  ;;  %2802 = vrot.lane.b32.xlu2 %v5358_v12, %s5897_s26 }
 0x347   : > { %2368 = vst.msk [vmem:[#allocation4 + $0x40] sm:$0xff] %vm693_vm3, %v2329_v61  ;;  %v2465_v0 = vpop.permute.xlu1 %2464  ;;  %v3039_v40 = vld [vmem:[#allocation4 + $0x38] sm:$0xff]  ;;  %v2659_v26 = vpop.permute.xlu2 %2658 }
 0x348   : > { %2504 = vst.msk [vmem:[#allocation4 + $0x40] sm:$0xff] %vm862_vm4, %v2465_v0  ;;  %3105 = vmatmul.f32.gmra.mxu2 %v3039_v40 }
 0x349   : > { %2600 = vst.msk [vmem:[#allocation4 + $0x40] sm:$0xff] %vm983_vm5, %v2561_v47 }
 0x34a   : > { %v3088_v5 = vpop.f32.mrf.mxu2 }
 0x34b   : > { %v3725_v59 = vpop.eup %3724  ;;  %v3089_v30 = vadd.f32 %v5504_v34, %v3088_v5 }
 0x34c   : > { %2898 = vrot.lane.b32.xlu0 %v5490_v28, %s5898_s0  ;;  %v1961_v12 = vmul.f32 %v3725_v59, %v1768_v24  ;;  %2994 = vrot.lane.b32.xlu1 %v5568_v56, %s5899_s27  ;;  %vm1967_vm11 = vweird.f32 %v3725_v59  ;;  %v2130_v22 = vld [vmem:[#allocation3 + $0xd8] sm:$0xff]  ;;  %v3580_v24 = vld [vmem:[%s4006_s24 + $0x61] sm:$0xff] }
 0x34d   : > { %v5572_v19 = vadd.f32 %v3577_v53, %v3089_v30  ;;  %vm1968_vm12 = vmor %vm1966_vm1, %vm1967_vm11 }
 0x34e   : > { %v2657_v36 = vpop.permute.xlu0 %2656  ;;  %v1962_v32 = vmul.f32 %v3725_v59, %v1961_v12  ;;  %2244 = vrot.lane.b32.xlu2 %v5496_v21, %s5900_s14 }
 0x34f   : > { %2696 = vst.msk [vmem:[#allocation4 + $0x40] sm:$0xff] %vm1104_vm6, %v2657_v36  ;;  %v2793_v58 = vpop.permute.xlu1 %2792  ;;  %v2987_v27 = vpop.permute.xlu2 %2986  ;;  %v3167_v17 = vmul.f32 %v5572_v19, %v5572_v19 }
 0x350   : > { %2832 = vst.msk [vmem:[#allocation4 + $0x40] sm:$0xff] %vm1273_vm7, %v2793_v58  ;;  %v1963_v6 = vmul.f32 0.5, %v1962_v32 }
 0x351   : > { %2928 = vst.msk [vmem:[#allocation4 + $0x40] sm:$0xff] %vm1394_vm8, %v2889_v41  ;;  %3221 = vmatmul.f32.gmra.mxu3 %v3167_v17  ;;  %v3579_v41 = vld [vmem:[%s4006_s24 + $0x51] sm:$0xff]  ;;  %v3581_v17 = vld [vmem:[%s4006_s24 + $0x69] sm:$0xff] }
 0x352   : > { %v1964_v20 = vsub.f32 1.5, %v1963_v6 }
 0x354   : > { %2340 = vrot.lane.b32.xlu0 %v2130_v22, %s5893_s21  ;;  %v1965_v9 = vmul.f32 %v3725_v59, %v1964_v20  ;;  %2476 = vrot.lane.b32.xlu1 %v5335_v49, %s5894_s18 }
 0x356   : > { %v2985_v21 = vpop.permute.xlu0 %2984  ;;  %v1969_v33 = vsel %vm1968_vm12, %v3725_v59, %v1965_v9  ;;  %2572 = vrot.lane.b32.xlu2 %v5477_v38, %s5895_s29 }
 0x357   : > { %3024 = vst.msk [vmem:[#allocation4 + $0x40] sm:$0xff] %vm1515_vm9, %v2985_v21  ;;  %v2235_v39 = vpop.permute.xlu1 %2234  ;;  %v1989_v4 = vmul.f32 %v1969_v33, %v5251_v48  ;;  %v2469_v16 = vpop.permute.xlu2 %2468 }
 0x358   : > { %2273 = vst.msk [vmem:[#allocation4 + $0x48] sm:$0xff] %vm571_vm2, %v2235_v39 }
 0x359   : > { %2369 = vst.msk [vmem:[#allocation4 + $0x48] sm:$0xff] %vm693_vm3, %v2331_v51  ;;  %v2071_v46 = vmul.f32 %v3575_v43, %v1989_v4 }
 0x35b   : > { %2091 = vst [vmem:[#allocation3 + $0xe1] sm:$0xff] %v2071_v46 }
 0x35c   : > { %2668 = vrot.lane.b32.xlu0 %v2070_v13, %s5896_s19  ;;  %2804 = vrot.lane.b32.xlu1 %v5435_v14, %s5897_s26 }
 0x35e   : > { %v2467_v49 = vpop.permute.xlu0 %2466  ;;  %v3040_v38 = vld [vmem:[#allocation4 + $0x40] sm:$0xff]  ;;  %2900 = vrot.lane.b32.xlu2 %v5534_v45, %s5898_s0 }
 0x35f   : > { %2505 = vst.msk [vmem:[#allocation4 + $0x48] sm:$0xff] %vm862_vm4, %v2467_v49  ;;  %v2563_v48 = vpop.permute.xlu1 %2562  ;;  %3108 = vmatmul.f32.gmra.mxu2 %v3040_v38  ;;  %v2797_v60 = vpop.permute.xlu2 %2796  ;;  %v3582_v38 = vld [vmem:[%s4006_s24 + $0x79] sm:$0xff] }
 0x360   : > { %2601 = vst.msk [vmem:[#allocation4 + $0x48] sm:$0xff] %vm983_vm5, %v2563_v48 }
 0x361   : > { %2697 = vst.msk [vmem:[#allocation4 + $0x48] sm:$0xff] %vm1104_vm6, %v2659_v26 }
 0x362   : > { %v3091_v18 = vpop.f32.mrf.mxu2  ;;  %v2722_v11 = vld [vmem:[#allocation3 + $0xda] sm:$0xff]  ;;  %v2723_v50 = vld [vmem:[#allocation3 + $0xe2] sm:$0xff] }
 0x363   : > { %v3092_v10 = vadd.f32 %v5504_v34, %v3091_v18  ;;  %v2131_v7 = vld [vmem:[#allocation3 + $0xe0] sm:$0xff] }
 0x364   : > { %2996 = vrot.lane.b32.xlu0 %v2722_v11, %s5899_s27  ;;  %2246 = vrot.lane.b32.xlu1 %v5544_v31, %s5900_s14 }
 0x365   : > { %v5601_v14 = vadd.f32 %v3578_v37, %v3092_v10 }
 0x366   : > { %v2795_v47 = vpop.permute.xlu0 %2794  ;;  %2342 = vrot.lane.b32.xlu2 %v2131_v7, %s5893_s21 }
 0x367   : > { %2833 = vst.msk [vmem:[#allocation4 + $0x48] sm:$0xff] %vm1273_vm7, %v2795_v47  ;;  %v2891_v52 = vpop.permute.xlu1 %2890  ;;  %v3168_v57 = vmul.f32 %v5601_v14, %v5601_v14  ;;  %v2239_v45 = vpop.permute.xlu2 %2238 }
 0x368   : > { %2929 = vst.msk [vmem:[#allocation4 + $0x48] sm:$0xff] %vm1394_vm8, %v2891_v52 }
 0x369   : > { %3025 = vst.msk [vmem:[#allocation4 + $0x48] sm:$0xff] %vm1515_vm9, %v2987_v27  ;;  %3224 = vmatmul.f32.gmra.mxu3 %v3168_v57 }
 0x36a   : > { %2275 = vst.msk [vmem:[#allocation4 + $0x58] sm:$0xff] %vm571_vm2, %v2239_v45 }
 0x36c   : > { %2478 = vrot.lane.b32.xlu0 %v5405_v35, %s5894_s18  ;;  %2574 = vrot.lane.b32.xlu1 %v5515_v2, %s5895_s29  ;;  %s347_s18 = sand.u32 1, %s3830_s10  }
 0x36d   : > { %s3561_s21 = sshll.u32 %s347_s18, 7 }
 0x36e   : > { %v2237_v62 = vpop.permute.xlu0 %2236  ;;  %2670 = vrot.lane.b32.xlu2 %v2071_v46, %s5896_s19  ;;  %v5670_v46 = vld [vmem:[%s5860_s8] ss:$0 sm:$0xff]  ;;  %s5691_s29 = scalar_lea.vmem [#allocation5], %s3561_s21 }
 0x36f   : > { %2274 = vst.msk [vmem:[#allocation4 + $0x50] sm:$0xff] %vm571_vm2, %v2237_v62  ;;  %v2333_v25 = vpop.permute.xlu1 %2332  ;;  %v2567_v54 = vpop.permute.xlu2 %2566  ;;  %s3475_s17 = sshll.u32 %s5691_s29, 4  ;;  %s3476_s17 = int_to_ptr.vmem [resolvable:$true] %s3475_s17 }
 0x370   : > { %2370 = vst.msk [vmem:[#allocation4 + $0x50] sm:$0xff] %vm693_vm3, %v2333_v25  ;;  %v3041_v15 = vld [vmem:[#allocation4 + $0x48] sm:$0xff] }
 0x371   : > { %2506 = vst.msk [vmem:[#allocation4 + $0x50] sm:$0xff] %vm862_vm4, %v2469_v16  ;;  %3111 = vmatmul.f32.gmra.mxu2 %v3041_v15 }
 0x374   : > { %2806 = vrot.lane.b32.xlu0 %v5490_v28, %s5897_s26  ;;  %v3094_v35 = vpop.f32.mrf.mxu2  ;;  %2902 = vrot.lane.b32.xlu1 %v5568_v56, %s5898_s0  ;;  %s3595_s0 = sshll.u32 %s3842_s13, 5  ;;  %s3460_s13 = scalar_lea.sflag [#allocation6], %s347_s18 }
 0x375   : > { %v3095_v2 = vadd.f32 %v5504_v34, %v3094_v35 }
 0x376   : > { %v2565_v44 = vpop.permute.xlu0 %2564  ;;  %2998 = vrot.lane.b32.xlu2 %v2723_v50, %s5899_s27 }
 0x377   : > { %2602 = vst.msk [vmem:[#allocation4 + $0x50] sm:$0xff] %vm983_vm5, %v2565_v44  ;;  %v2661_v31 = vpop.permute.xlu1 %2660  ;;  %v5628_v23 = vadd.f32 %v3579_v41, %v3095_v2  ;;  %v2895_v3 = vpop.permute.xlu2 %2894 }
 0x378   : > { %2698 = vst.msk [vmem:[#allocation4 + $0x50] sm:$0xff] %vm1104_vm6, %v2661_v31 }
 0x379   : > { %2834 = vst.msk [vmem:[#allocation4 + $0x50] sm:$0xff] %vm1273_vm7, %v2797_v60  ;;  %v3169_v28 = vmul.f32 %v5628_v23, %v5628_v23 }
 0x37b   : > { %3227 = vmatmul.f32.gmra.mxu3 %v3169_v28 }
 0x37e   : > { %v2893_v55 = vpop.permute.xlu0 %2892 }
 0x37f   : > { %2930 = vst.msk [vmem:[#allocation4 + $0x50] sm:$0xff] %vm1394_vm8, %v2893_v55  ;;  %v2989_v1 = vpop.permute.xlu1 %2988  ;;  %v2337_v51 = vpop.permute.xlu2 %2336  ;;  %v3583_v55 = vld [vmem:[%s4006_s24 + $0x81] sm:$0xff] }
 0x380   : > { %3026 = vst.msk [vmem:[#allocation4 + $0x50] sm:$0xff] %vm1515_vm9, %v2989_v1 }
 0x386   : > { %v2335_v42 = vpop.permute.xlu0 %2334 }
 0x387   : > { %2371 = vst.msk [vmem:[#allocation4 + $0x58] sm:$0xff] %vm693_vm3, %v2335_v42  ;;  %v2471_v43 = vpop.permute.xlu1 %2470  ;;  %v3042_v8 = vld [vmem:[#allocation4 + $0x50] sm:$0xff]  ;;  %v2665_v29 = vpop.permute.xlu2 %2664 }
 0x388   : > { %2507 = vst.msk [vmem:[#allocation4 + $0x58] sm:$0xff] %vm862_vm4, %v2471_v43  ;;  %3114 = vmatmul.f32.gmra.mxu2 %v3042_v8 }
 0x389   : > { %2603 = vst.msk [vmem:[#allocation4 + $0x58] sm:$0xff] %vm983_vm5, %v2567_v54 }
 0x38b   : > { %v3097_v13 = vpop.f32.mrf.mxu2 }
 0x38c   : > { %v3098_v61 = vadd.f32 %v5504_v34, %v3097_v13 }
 0x38e   : > { %v5641_v0 = vadd.f32 %v3580_v24, %v3098_v61  ;;  %v2663_v40 = vpop.permute.xlu0 %2662 }
 0x38f   : > { %2699 = vst.msk [vmem:[#allocation4 + $0x58] sm:$0xff] %vm1104_vm6, %v2663_v40  ;;  %v2799_v26 = vpop.permute.xlu1 %2798 }
 0x390   : > { %2835 = vst.msk [vmem:[#allocation4 + $0x58] sm:$0xff] %vm1273_vm7, %v2799_v26  ;;  %v3170_v5 = vmul.f32 %v5641_v0, %v5641_v0  ;;  %v2993_v53 = vpop.permute.xlu2 %2992 }
 0x391   : > { %2931 = vst.msk [vmem:[#allocation4 + $0x58] sm:$0xff] %vm1394_vm8, %v2895_v3 }
 0x392   : > { %3230 = vmatmul.f32.gmra.mxu3 %v3170_v5 }
 0x396   : > { %v2991_v59 = vpop.permute.xlu0 %2990 }
 0x397   : > { %3027 = vst.msk [vmem:[#allocation4 + $0x58] sm:$0xff] %vm1515_vm9, %v2991_v59  ;;  %v2241_v30 = vpop.permute.xlu1 %2240 }
 0x398   : > { %2276 = vst.msk [vmem:[#allocation4 + $0x60] sm:$0xff] %vm571_vm2, %v2241_v30  ;;  %v2475_v56 = vpop.permute.xlu2 %2474 }
 0x399   : > { %2372 = vst.msk [vmem:[#allocation4 + $0x60] sm:$0xff] %vm693_vm3, %v2337_v51 }
 0x39e   : > { %v2473_v12 = vpop.permute.xlu0 %2472  ;;  %v3043_v36 = vld [vmem:[#allocation4 + $0x58] sm:$0xff] }
 0x39f   : > { %2508 = vst.msk [vmem:[#allocation4 + $0x60] sm:$0xff] %vm862_vm4, %v2473_v12  ;;  %v2569_v32 = vpop.permute.xlu1 %2568  ;;  %3117 = vmatmul.f32.gmra.mxu2 %v3043_v36  ;;  %v3584_v36 = vld [vmem:[%s4006_s24 + $0x91] sm:$0xff] }
 0x3a0   : > { %2604 = vst.msk [vmem:[#allocation4 + $0x60] sm:$0xff] %vm983_vm5, %v2569_v32  ;;  %v2803_v58 = vpop.permute.xlu2 %2802 }
 0x3a1   : > { %2700 = vst.msk [vmem:[#allocation4 + $0x60] sm:$0xff] %vm1104_vm6, %v2665_v29 }
 0x3a2   : > { %v3100_v27 = vpop.f32.mrf.mxu2 }
 0x3a3   : > { %v3101_v6 = vadd.f32 %v5504_v34, %v3100_v27 }
 0x3a5   : > { %v5656_v20 = vadd.f32 %v3581_v17, %v3101_v6 }
 0x3a6   : > { %v2801_v22 = vpop.permute.xlu0 %2800 }
 0x3a7   : > { %2836 = vst.msk [vmem:[#allocation4 + $0x60] sm:$0xff] %vm1273_vm7, %v2801_v22  ;;  %v2897_v9 = vpop.permute.xlu1 %2896  ;;  %v3171_v21 = vmul.f32 %v5656_v20, %v5656_v20 }
 0x3a8   : > { %2932 = vst.msk [vmem:[#allocation4 + $0x60] sm:$0xff] %vm1394_vm8, %v2897_v9  ;;  %v2245_v33 = vpop.permute.xlu2 %2244 }
 0x3a9   : > { %3028 = vst.msk [vmem:[#allocation4 + $0x60] sm:$0xff] %vm1515_vm9, %v2993_v53  ;;  %3233 = vmatmul.f32.gmra.mxu3 %v3171_v21 }
 0x3aa   : > { %2278 = vst.msk [vmem:[#allocation4 + $0x70] sm:$0xff] %vm571_vm2, %v2245_v33 }
 0x3ae   : > { %v2243_v39 = vpop.permute.xlu0 %2242 }
 0x3af   : > { %2277 = vst.msk [vmem:[#allocation4 + $0x68] sm:$0xff] %vm571_vm2, %v2243_v39  ;;  %v2339_v4 = vpop.permute.xlu1 %2338 }
 0x3b0   : > { %2373 = vst.msk [vmem:[#allocation4 + $0x68] sm:$0xff] %vm693_vm3, %v2339_v4  ;;  %v3044_v16 = vld [vmem:[#allocation4 + $0x60] sm:$0xff]  ;;  %v2573_v62 = vpop.permute.xlu2 %2572 }
 0x3b1   : > { %2509 = vst.msk [vmem:[#allocation4 + $0x68] sm:$0xff] %vm862_vm4, %v2475_v56  ;;  %3120 = vmatmul.f32.gmra.mxu2 %v3044_v16 }
 0x3b3   : > { %v3219_v48 = vpop.f32.mrf.mxu3 }
 0x3b4   : > { %v3103_v49 = vpop.f32.mrf.mxu2  ;;  %v3220_v18 = vadd.f32 %v5670_v46, %v3219_v48 }
 0x3b5   : > { %v3104_v60 = vadd.f32 %v5504_v34, %v3103_v49 }
 0x3b6   : > { %v2571_v37 = vpop.permute.xlu0 %2570  ;;  %3726 = vrsqrt.f32 %v3220_v18  ;;  %vm3273_vm14 = vweird.f32 %v3220_v18 }
 0x3b7   : > { %v5675_v10 = vadd.f32 %v3582_v38, %v3104_v60  ;;  %2605 = vst.msk [vmem:[#allocation4 + $0x68] sm:$0xff] %vm983_vm5, %v2571_v37  ;;  %v2667_v11 = vpop.permute.xlu1 %2666  ;;  %v3585_v60 = vld [vmem:[%s4006_s24 + $0x99] sm:$0xff] }
 0x3b8   : > { %2701 = vst.msk [vmem:[#allocation4 + $0x68] sm:$0xff] %vm1104_vm6, %v2667_v11  ;;  %v2901_v3 = vpop.permute.xlu2 %2900 }
 0x3b9   : > { %2837 = vst.msk [vmem:[#allocation4 + $0x68] sm:$0xff] %vm1273_vm7, %v2803_v58  ;;  %v3172_v7 = vmul.f32 %v5675_v10, %v5675_v10 }
 0x3bb   : > { %3236 = vmatmul.f32.gmra.mxu3 %v3172_v7 }
 0x3bc   : > { %v3727_v47 = vpop.eup %3726 }
 0x3bd   : > { %v3268_v52 = vmul.f32 %v3727_v47, %v3220_v18  ;;  %vm3274_vm13 = vweird.f32 %v3727_v47 }
 0x3be   : > { %v2899_v57 = vpop.permute.xlu0 %2898  ;;  %vm3275_vm15 = vmor %vm3273_vm14, %vm3274_vm13 }
 0x3bf   : > { %2933 = vst.msk [vmem:[#allocation4 + $0x68] sm:$0xff] %vm1394_vm8, %v2899_v57  ;;  %v2995_v45 = vpop.permute.xlu1 %2994  ;;  %v3269_v25 = vmul.f32 %v3727_v47, %v3268_v52 }
 0x3c0   : > { %3029 = vst.msk [vmem:[#allocation4 + $0x68] sm:$0xff] %vm1515_vm9, %v2995_v45  ;;  %v2343_v8 = vpop.permute.xlu2 %2342 }
 0x3c1   : > { %v3270_v54 = vmul.f32 0.5, %v3269_v25 }
 0x3c3   : > { %v3271_v15 = vsub.f32 1.5, %v3270_v54 }
 0x3c5   : > { %v3272_v35 = vmul.f32 %v3727_v47, %v3271_v15 }
 0x3c6   : > { %v2341_v41 = vpop.permute.xlu0 %2340 }
 0x3c7   : > { %2374 = vst.msk [vmem:[#allocation4 + $0x70] sm:$0xff] %vm693_vm3, %v2341_v41  ;;  %v2477_v2 = vpop.permute.xlu1 %2476  ;;  %v3045_v50 = vld [vmem:[#allocation4 + $0x68] sm:$0xff]  ;;  %v3276_v44 = vsel %vm3275_vm15, %v3727_v47, %v3272_v35 }
 0x3c8   : > { %2510 = vst.msk [vmem:[#allocation4 + $0x70] sm:$0xff] %vm862_vm4, %v2477_v2  ;;  %3123 = vmatmul.f32.gmra.mxu2 %v3045_v50  ;;  %v3427_v31 = vmul.f32 %v3276_v44, %v5517_v63  ;;  %v2671_v26 = vpop.permute.xlu2 %2670  ;;  %v3586_v44 = vld [vmem:[%s4006_s24 + $0xa9] sm:$0xff] }
 0x3c9   : > { %2606 = vst.msk [vmem:[#allocation4 + $0x70] sm:$0xff] %vm983_vm5, %v2573_v62 }
 0x3ca   : > { %3443 = vst [vmem:[%s5691_s29] sm:$0xff] %v3427_v31 }
 0x3cb   : > { %v3106_v28 = vpop.f32.mrf.mxu2 }
 0x3cc   : > { %v3107_v1 = vadd.f32 %v5504_v34, %v3106_v28 }
 0x3ce   : > { %v5696_v51 = vadd.f32 %v3583_v55, %v3107_v1  ;;  %v2669_v42 = vpop.permute.xlu0 %2668 }
 0x3cf   : > { %2702 = vst.msk [vmem:[#allocation4 + $0x70] sm:$0xff] %vm1104_vm6, %v2669_v42  ;;  %v2805_v43 = vpop.permute.xlu1 %2804 }
 0x3d0   : > { %2838 = vst.msk [vmem:[#allocation4 + $0x70] sm:$0xff] %vm1273_vm7, %v2805_v43  ;;  %v3173_v63 = vmul.f32 %v5696_v51, %v5696_v51  ;;  %v2999_v33 = vpop.permute.xlu2 %2998 }
 0x3d1   : > { %2934 = vst.msk [vmem:[#allocation4 + $0x70] sm:$0xff] %vm1394_vm8, %v2901_v3 }
 0x3d2   : > { %3239 = vmatmul.f32.gmra.mxu3 %v3173_v63 }
 0x3d4   : > { %v3222_v29 = vpop.f32.mrf.mxu3 }
 0x3d5   : > { %v3223_v13 = vadd.f32 %v5670_v46, %v3222_v29 }
 0x3d6   : > { %v2997_v24 = vpop.permute.xlu0 %2996 }
 0x3d7   : > { %3030 = vst.msk [vmem:[#allocation4 + $0x70] sm:$0xff] %vm1515_vm9, %v2997_v24  ;;  %v2247_v61 = vpop.permute.xlu1 %2246  ;;  %3728 = vrsqrt.f32 %v3223_v13 }
 0x3d8   : > { %2279 = vst.msk [vmem:[#allocation4 + $0x78] sm:$0xff] %vm571_vm2, %v2247_v61 }
 0x3d9   : > { %2375 = vst.msk [vmem:[#allocation4 + $0x78] sm:$0xff] %vm693_vm3, %v2343_v8  ;;  %vm3283_vm3 = vweird.f32 %v3223_v13 }
 0x3dd   : > { %v3729_v40 = vpop.eup %3728 }
 0x3de   : > { %v2479_v5 = vpop.permute.xlu0 %2478  ;;  %v3046_v53 = vld [vmem:[#allocation4 + $0x70] sm:$0xff]  ;;  %v3278_v59 = vmul.f32 %v3729_v40, %v3223_v13  ;;  %vm3284_vm2 = vweird.f32 %v3729_v40 }
 0x3df   : > { %2511 = vst.msk [vmem:[#allocation4 + $0x78] sm:$0xff] %vm862_vm4, %v2479_v5  ;;  %v2575_v30 = vpop.permute.xlu1 %2574  ;;  %3126 = vmatmul.f32.gmra.mxu2 %v3046_v53  ;;  %vm3285_vm4 = vmor %vm3283_vm3, %vm3284_vm2 }
 0x3e0   : > { %2607 = vst.msk [vmem:[#allocation4 + $0x78] sm:$0xff] %vm983_vm5, %v2575_v30  ;;  %v3279_v56 = vmul.f32 %v3729_v40, %v3278_v59 }
 0x3e1   : > { %2703 = vst.msk [vmem:[#allocation4 + $0x78] sm:$0xff] %vm1104_vm6, %v2671_v26 }
 0x3e2   : > { %v3109_v12 = vpop.f32.mrf.mxu2  ;;  %v3280_v32 = vmul.f32 0.5, %v3279_v56 }
 0x3e3   : > { %v3110_v58 = vadd.f32 %v5504_v34, %v3109_v12 }
 0x3e4   : > { %v3281_v27 = vsub.f32 1.5, %v3280_v32 }
 0x3e5   : > { %v5712_v17 = vadd.f32 %v3584_v36, %v3110_v58 }
 0x3e6   : > { %v2807_v6 = vpop.permute.xlu0 %2806  ;;  %v3282_v22 = vmul.f32 %v3729_v40, %v3281_v27  ;;  %v3588_v27 = vld [vmem:[%s4006_s24 + $0xc1] sm:$0xff] }
 0x3e7   : > { %2839 = vst.msk [vmem:[#allocation4 + $0x78] sm:$0xff] %vm1273_vm7, %v2807_v6  ;;  %v2903_v9 = vpop.permute.xlu1 %2902  ;;  %v3174_v21 = vmul.f32 %v5712_v17, %v5712_v17 }
 0x3e8   : > { %2935 = vst.msk [vmem:[#allocation4 + $0x78] sm:$0xff] %vm1394_vm8, %v2903_v9  ;;  %v3286_v39 = vsel %vm3285_vm4, %v3729_v40, %v3282_v22  ;;  %v3587_v40 = vld [vmem:[%s4006_s24 + $0xb1] sm:$0xff] }
 0x3e9   : > { %3031 = vst.msk [vmem:[#allocation4 + $0x78] sm:$0xff] %vm1515_vm9, %v2999_v33  ;;  %3242 = vmatmul.f32.gmra.mxu3 %v3174_v21  ;;  %v3428_v4 = vmul.f32 %v3286_v39, %v5572_v19 }
 0x3eb   : > { %3444 = vst [vmem:[%s5691_s29 + $0x8] sm:$0xff] %v3428_v4 }
 0x3ec   : > { %v3225_v16 = vpop.f32.mrf.mxu3 }
 0x3ed   : > { %v3226_v49 = vadd.f32 %v5670_v46, %v3225_v16 }
 0x3ef   : > { %3730 = vrsqrt.f32 %v3226_v49  ;;  %vm3293_vm6 = vweird.f32 %v3226_v49 }
 0x3f0   : > { %v3047_v38 = vld [vmem:[#allocation4 + $0x78] sm:$0xff] }
 0x3f1   : > { %3129 = vmatmul.f32.gmra.mxu2 %v3047_v38 }
 0x3f4   : > { %v3112_v48 = vpop.f32.mrf.mxu2 }
 0x3f5   : > { %v3731_v18 = vpop.eup %3730  ;;  %v3113_v37 = vadd.f32 %v5504_v34, %v3112_v48 }
 0x3f6   : > { %v3288_v11 = vmul.f32 %v3731_v18, %v3226_v49  ;;  %vm3294_vm5 = vweird.f32 %v3731_v18 }
 0x3f7   : > { %v5724_v7 = vadd.f32 %v3585_v60, %v3113_v37  ;;  %vm3295_vm7 = vmor %vm3293_vm6, %vm3294_vm5 }
 0x3f8   : > { %v3289_v47 = vmul.f32 %v3731_v18, %v3288_v11 }
 0x3f9   : > { %v3175_v19 = vmul.f32 %v5724_v7, %v5724_v7 }
 0x3fa   : > { %v3290_v52 = vmul.f32 0.5, %v3289_v47 }
 0x3fb   : > { %3245 = vmatmul.f32.gmra.mxu3 %v3175_v19  ;;  %v3589_v19 = vld [vmem:[%s4006_s24 + $0xc9] sm:$0xff] }
 0x3fc   : > { %v3291_v57 = vsub.f32 1.5, %v3290_v52 }
 0x3fe   : > { %v3292_v45 = vmul.f32 %v3731_v18, %v3291_v57  ;;  %v3228_v62 = vpop.f32.mrf.mxu3 }
 0x3ff   : > { %v3229_v54 = vadd.f32 %v5670_v46, %v3228_v62 }
 0x400   : > { %v3296_v25 = vsel %vm3295_vm7, %v3731_v18, %v3292_v45 }
 0x401   : > { %v3429_v15 = vmul.f32 %v3296_v25, %v5601_v14  ;;  %3732 = vrsqrt.f32 %v3229_v54  ;;  %vm3303_vm9 = vweird.f32 %v3229_v54 }
 0x403   : > { %3445 = vst [vmem:[%s5691_s29 + $0x10] sm:$0xff] %v3429_v15 }
 0x407   : > { %v3733_v35 = vpop.eup %3732 }
 0x408   : > { %v3298_v41 = vmul.f32 %v3733_v35, %v3229_v54  ;;  %vm3304_vm8 = vweird.f32 %v3733_v35 }
 0x409   : > { %vm3305_vm0 = vmor %vm3303_vm9, %vm3304_vm8 }
 0x40a   : > { %v3299_v2 = vmul.f32 %v3733_v35, %v3298_v41 }
 0x40b   : > { %v3115_v50 = vpop.f32.mrf.mxu2 }
 0x40c   : > { %v3116_v31 = vadd.f32 %v5504_v34, %v3115_v50  ;;  %v3300_v3 = vmul.f32 0.5, %v3299_v2 }
 0x40e   : > { %v5733_v28 = vadd.f32 %v3586_v44, %v3116_v31  ;;  %v3301_v55 = vsub.f32 1.5, %v3300_v3  ;;  %v3590_v3 = vld [vmem:[%s4006_s24 + $0xd9] sm:$0xff] }
 0x410   : > { %v3176_v1 = vmul.f32 %v5733_v28, %v5733_v28  ;;  %v3302_v14 = vmul.f32 %v3733_v35, %v3301_v55 }
 0x412   : > { %3248 = vmatmul.f32.gmra.mxu3 %v3176_v1  ;;  %v3306_v42 = vsel %vm3305_vm0, %v3733_v35, %v3302_v14 }
 0x413   : > { %v3430_v43 = vmul.f32 %v3306_v42, %v5628_v23 }
 0x415   : > { %v3231_v63 = vpop.f32.mrf.mxu3  ;;  %3446 = vst [vmem:[%s5691_s29 + $0x18] sm:$0xff] %v3430_v43 }
 0x416   : > { %v3232_v8 = vadd.f32 %v5670_v46, %v3231_v63 }
 0x418   : > { %3734 = vrsqrt.f32 %v3232_v8  ;;  %vm3313_vm11 = vweird.f32 %v3232_v8 }
 0x41e   : > { %v3735_v29 = vpop.eup %3734 }
 0x41f   : > { %v3308_v13 = vmul.f32 %v3735_v29, %v3232_v8  ;;  %vm3314_vm10 = vweird.f32 %v3735_v29 }
 0x420   : > { %vm3315_vm1 = vmor %vm3313_vm11, %vm3314_vm10 }
 0x421   : > { %v3309_v24 = vmul.f32 %v3735_v29, %v3308_v13 }
 0x422   : > { %v3118_v61 = vpop.f32.mrf.mxu2 }
 0x423   : > { %v3310_v26 = vmul.f32 0.5, %v3309_v24  ;;  %v3119_v5 = vadd.f32 %v5504_v34, %v3118_v61  ;;  %v3591_v61 = vld [vmem:[%s4006_s24 + $0xe1] sm:$0xff]  ;;  %s3599_s24 = sshll.u32 %s3838_s12, 4 }
 0x424   : > { %s3472_s14 = sadd.s32 %s3599_s24, %s3595_s0  ;;  %s3780_s24 = scalar_lea.hbm %s5861_s9, 512 }
 0x425   : > { %v3311_v53 = vsub.f32 1.5, %v3310_v26  ;;  %v5742_v59 = vadd.f32 %v3587_v40, %v3119_v5  ;;  %s3596_s1 = sshll.u32 %s3472_s14, 3 }
 0x426   : > { %s3474_s15 = scalar_lea.hbm %s5861_s9, %s3596_s1 }
 0x427   : > { %v3312_v23 = vmul.f32 %v3735_v29, %v3311_v53  ;;  %v3177_v30 = vmul.f32 %v5742_v59, %v5742_v59  ;;  %s3477_s12 = sshll.u32 %s3474_s15, 4  ;;  %s3478_s12 = int_to_ptr.hbm [resolvable:$true] %s3477_s12 }
 0x428   : > { %s3774_s20 = sshra.s32 %s3478_s12, 4  ;;  %s3775_s20 = int_to_ptr.hbm [resolvable:$true] %s3774_s20 }
 0x429   : > { %v3316_v56 = vsel %vm3315_vm1, %v3735_v29, %v3312_v23  ;;  %3251 = vmatmul.f32.gmra.mxu3 %v3177_v30  ;;  %s3776_s19 = scalar_lea.hbm %s3775_s20, 128  ;;  %p3781_p2 = scmp.lt.s32.totalorder %s3775_s20, %s5861_s9 }
 0x42a   : > { %v3431_v12 = vmul.f32 %v3316_v56, %v5641_v0  ;;  %p3777_p13 = scmp.ne.s32.totalorder %s3775_s20, %s3776_s19  ;;  %p3782_p4 = scmp.lt.s32.totalorder %s3780_s24, %s3776_s19 }
 0x42c   : > { %3447 = vst [vmem:[%s5691_s29 + $0x20] sm:$0xff] %v3431_v12  ;;  %v3234_v36 = vpop.f32.mrf.mxu3  ;;  %p3778_p0 = pnand %p3777_p13, %p3967_p3  ;;  %p3783_p5 = por %p3782_p4, %p3781_p2 }
 0x42d   : > { %v3235_v32 = vadd.f32 %v5670_v46, %v3234_v36 }
 0x42e   : > { %p3779_p1 = pneg %p3778_p0 }
 0x42f   : > { %3736 = vrsqrt.f32 %v3235_v32  ;;  %vm3323_vm13 = vweird.f32 %v3235_v32 }
 0x430   : > { %p3784_p6 = pnand %p3783_p5, %p3779_p1 }
 0x434   : > { %v3121_v58 = vpop.f32.mrf.mxu2 }
 0x435   : > { %v3737_v6 = vpop.eup %3736  ;;  %v3122_v22 = vadd.f32 %v5504_v34, %v3121_v58 }
 0x436   : > { %v3318_v9 = vmul.f32 %v3737_v6, %v3235_v32  ;;  %vm3324_vm12 = vweird.f32 %v3737_v6 }
 0x437   : > { %v5751_v21 = vadd.f32 %v3588_v27, %v3122_v22  ;;  %vm3325_vm14 = vmor %vm3323_vm13, %vm3324_vm12 }
 0x438   : > { %v3319_v33 = vmul.f32 %v3737_v6, %v3318_v9 }
 0x439   : > { %v3178_v39 = vmul.f32 %v5751_v21, %v5751_v21 }
 0x43a   : > { %v3320_v4 = vmul.f32 0.5, %v3319_v33 }
 0x43b   : > { %3254 = vmatmul.f32.gmra.mxu3 %v3178_v39 }
 0x43c   : > { %v3321_v0 = vsub.f32 1.5, %v3320_v4 }
 0x43e   : > { %v3322_v16 = vmul.f32 %v3737_v6, %v3321_v0  ;;  %v3237_v49 = vpop.f32.mrf.mxu3 }
 0x43f   : > { %v3238_v38 = vadd.f32 %v5670_v46, %v3237_v49 }
 0x440   : > { %v3326_v48 = vsel %vm3325_vm14, %v3737_v6, %v3322_v16 }
 0x441   : > { %v3432_v60 = vmul.f32 %v3326_v48, %v5656_v20  ;;  %3738 = vrsqrt.f32 %v3238_v38  ;;  %vm3333_vm2 = vweird.f32 %v3238_v38 }
 0x443   : > { %3448 = vst [vmem:[%s5691_s29 + $0x28] sm:$0xff] %v3432_v60 }
 0x447   : > { %v3739_v18 = vpop.eup %3738 }
 0x448   : > { %v3328_v37 = vmul.f32 %v3739_v18, %v3238_v38  ;;  %vm3334_vm15 = vweird.f32 %v3739_v18 }
 0x449   : > { %vm3335_vm3 = vmor %vm3333_vm2, %vm3334_vm15 }
 0x44a   : > { %v3329_v11 = vmul.f32 %v3739_v18, %v3328_v37 }
 0x44b   : > { %v3124_v47 = vpop.f32.mrf.mxu2 }
 0x44c   : > { %v3330_v52 = vmul.f32 0.5, %v3329_v11  ;;  %v3125_v57 = vadd.f32 %v5504_v34, %v3124_v47 }
 0x44e   : > { %v3331_v45 = vsub.f32 1.5, %v3330_v52  ;;  %v5760_v62 = vadd.f32 %v3589_v19, %v3125_v57 }
 0x450   : > { %v3332_v25 = vmul.f32 %v3739_v18, %v3331_v45  ;;  %v3179_v20 = vmul.f32 %v5760_v62, %v5760_v62 }
 0x452   : > { %v3336_v54 = vsel %vm3335_vm3, %v3739_v18, %v3332_v25  ;;  %3257 = vmatmul.f32.gmra.mxu3 %v3179_v20 }
 0x453   : > { %v3433_v15 = vmul.f32 %v3336_v54, %v5675_v10 }
 0x455   : > { %3449 = vst [vmem:[%s5691_s29 + $0x30] sm:$0xff] %v3433_v15  ;;  %v3240_v35 = vpop.f32.mrf.mxu3 }
 0x456   : > { %v3241_v41 = vadd.f32 %v5670_v46, %v3240_v35 }
 0x458   : > { %3740 = vrsqrt.f32 %v3241_v41  ;;  %vm3343_vm5 = vweird.f32 %v3241_v41 }
 0x45e   : > { %v3741_v2 = vpop.eup %3740 }
 0x45f   : > { %v3338_v50 = vmul.f32 %v3741_v2, %v3241_v41  ;;  %vm3344_vm4 = vweird.f32 %v3741_v2 }
 0x460   : > { %vm3345_vm6 = vmor %vm3343_vm5, %vm3344_vm4 }
 0x461   : > { %v3339_v44 = vmul.f32 %v3741_v2, %v3338_v50 }
 0x462   : > { %v3127_v31 = vpop.f32.mrf.mxu2 }
 0x463   : > { %v3340_v55 = vmul.f32 0.5, %v3339_v44  ;;  %v3128_v1 = vadd.f32 %v5504_v34, %v3127_v31 }
 0x465   : > { %v3341_v14 = vsub.f32 1.5, %v3340_v55  ;;  %v5769_v42 = vadd.f32 %v3590_v3, %v3128_v1 }
 0x467   : > { %v3342_v10 = vmul.f32 %v3741_v2, %v3341_v14  ;;  %v3180_v43 = vmul.f32 %v5769_v42, %v5769_v42 }
 0x469   : > { %v3346_v63 = vsel %vm3345_vm6, %v3741_v2, %v3342_v10  ;;  %3260 = vmatmul.f32.gmra.mxu3 %v3180_v43 }
 0x46a   : > { %v3434_v8 = vmul.f32 %v3346_v63, %v5696_v51 }
 0x46c   : > { %3450 = vst [vmem:[%s5691_s29 + $0x38] sm:$0xff] %v3434_v8  ;;  %v3243_v29 = vpop.f32.mrf.mxu3 }
 0x46d   : > { %v3244_v13 = vadd.f32 %v5670_v46, %v3243_v29 }
 0x46f   : > { %3742 = vrsqrt.f32 %v3244_v13  ;;  %vm3353_vm8 = vweird.f32 %v3244_v13 }
 0x474   : > { %v3130_v24 = vpop.f32.mrf.mxu2 }
 0x475   : > { %v3743_v40 = vpop.eup %3742  ;;  %v3131_v26 = vadd.f32 %v5504_v34, %v3130_v24 }
 0x476   : > { %v3348_v5 = vmul.f32 %v3743_v40, %v3244_v13  ;;  %vm3354_vm7 = vweird.f32 %v3743_v40 }
 0x477   : > { %v5778_v53 = vadd.f32 %v3591_v61, %v3131_v26  ;;  %vm3355_vm9 = vmor %vm3353_vm8, %vm3354_vm7 }
 0x478   : > { %v3349_v23 = vmul.f32 %v3743_v40, %v3348_v5 }
 0x479   : > { %v3181_v30 = vmul.f32 %v5778_v53, %v5778_v53 }
 0x47a   : > { %v3350_v56 = vmul.f32 0.5, %v3349_v23 }
 0x47b   : > { %3263 = vmatmul.f32.gmra.mxu3 %v3181_v30 }
 0x47c   : > { %v3351_v51 = vsub.f32 1.5, %v3350_v56 }
 0x47e   : > { %v3352_v12 = vmul.f32 %v3743_v40, %v3351_v51  ;;  %v3246_v36 = vpop.f32.mrf.mxu3 }
 0x47f   : > { %v3247_v32 = vadd.f32 %v5670_v46, %v3246_v36 }
 0x480   : > { %v3356_v34 = vsel %vm3355_vm9, %v3743_v40, %v3352_v12 }
 0x481   : > { %v3435_v58 = vmul.f32 %v3356_v34, %v5712_v17  ;;  %3744 = vrsqrt.f32 %v3247_v32  ;;  %vm3363_vm10 = vweird.f32 %v3247_v32 }
 0x483   : > { %3451 = vst [vmem:[%s5691_s29 + $0x40] sm:$0xff] %v3435_v58 }
 0x487   : > { %v3745_v27 = vpop.eup %3744 }
 0x488   : > { %v3358_v6 = vmul.f32 %v3745_v27, %v3247_v32  ;;  %vm3364_vm0 = vweird.f32 %v3745_v27 }
 0x489   : > { %vm3365_vm11 = vmor %vm3363_vm10, %vm3364_vm0 }
 0x48a   : > { %v3359_v22 = vmul.f32 %v3745_v27, %v3358_v6 }
 0x48c   : > { %v3360_v9 = vmul.f32 0.5, %v3359_v22 }
 0x48e   : > { %v3361_v33 = vsub.f32 1.5, %v3360_v9 }
 0x490   : > { %v3362_v39 = vmul.f32 %v3745_v27, %v3361_v33 }
 0x492   : > { %v3366_v4 = vsel %vm3365_vm11, %v3745_v27, %v3362_v39 }
 0x493   : > { %v3436_v0 = vmul.f32 %v3366_v4, %v5724_v7 }
 0x495   : > { %3452 = vst [vmem:[%s5691_s29 + $0x48] sm:$0xff] %v3436_v0  ;;  %v3249_v16 = vpop.f32.mrf.mxu3 }
 0x496   : > { %v3250_v49 = vadd.f32 %v5670_v46, %v3249_v16 }
 0x498   : > { %3746 = vrsqrt.f32 %v3250_v49  ;;  %vm3373_vm12 = vweird.f32 %v3250_v49 }
 0x49e   : > { %v3747_v17 = vpop.eup %3746 }
 0x49f   : > { %v3368_v38 = vmul.f32 %v3747_v17, %v3250_v49  ;;  %vm3374_vm1 = vweird.f32 %v3747_v17 }
 0x4a0   : > { %vm3375_vm13 = vmor %vm3373_vm12, %vm3374_vm1 }
 0x4a1   : > { %v3369_v48 = vmul.f32 %v3747_v17, %v3368_v38 }
 0x4a3   : > { %v3370_v60 = vmul.f32 0.5, %v3369_v48 }
 0x4a5   : > { %v3371_v18 = vsub.f32 1.5, %v3370_v60 }
 0x4a7   : > { %v3372_v37 = vmul.f32 %v3747_v17, %v3371_v18 }
 0x4a9   : > { %v3376_v11 = vsel %vm3375_vm13, %v3747_v17, %v3372_v37 }
 0x4aa   : > { %v3437_v47 = vmul.f32 %v3376_v11, %v5733_v28 }
 0x4ac   : > { %3453 = vst [vmem:[%s5691_s29 + $0x50] sm:$0xff] %v3437_v47  ;;  %v3252_v7 = vpop.f32.mrf.mxu3 }
 0x4ad   : > { %v3253_v19 = vadd.f32 %v5670_v46, %v3252_v7 }
 0x4af   : > { %3748 = vrsqrt.f32 %v3253_v19  ;;  %vm3383_vm15 = vweird.f32 %v3253_v19 }
 0x4b5   : > { %v3749_v52 = vpop.eup %3748 }
 0x4b6   : > { %v3378_v57 = vmul.f32 %v3749_v52, %v3253_v19  ;;  %vm3384_vm14 = vweird.f32 %v3749_v52 }
 0x4b7   : > { %vm3385_vm2 = vmor %vm3383_vm15, %vm3384_vm14 }
 0x4b8   : > { %v3379_v45 = vmul.f32 %v3749_v52, %v3378_v57 }
 0x4ba   : > { %v3380_v25 = vmul.f32 0.5, %v3379_v45 }
 0x4bc   : > { %v3381_v20 = vsub.f32 1.5, %v3380_v25 }
 0x4be   : > { %v3382_v54 = vmul.f32 %v3749_v52, %v3381_v20  ;;  %v3255_v15 = vpop.f32.mrf.mxu3 }
 0x4bf   : > { %v3256_v35 = vadd.f32 %v5670_v46, %v3255_v15 }
 0x4c0   : > { %v3386_v28 = vsel %vm3385_vm2, %v3749_v52, %v3382_v54 }
 0x4c1   : > { %v3438_v41 = vmul.f32 %v3386_v28, %v5742_v59  ;;  %3750 = vrsqrt.f32 %v3256_v35  ;;  %vm3393_vm4 = vweird.f32 %v3256_v35 }
 0x4c3   : > { %3454 = vst [vmem:[%s5691_s29 + $0x58] sm:$0xff] %v3438_v41 }
 0x4c7   : > { %v3751_v2 = vpop.eup %3750 }
 0x4c8   : > { %v3388_v50 = vmul.f32 %v3751_v2, %v3256_v35  ;;  %vm3394_vm3 = vweird.f32 %v3751_v2 }
 0x4c9   : > { %vm3395_vm5 = vmor %vm3393_vm4, %vm3394_vm3 }
 0x4ca   : > { %v3389_v44 = vmul.f32 %v3751_v2, %v3388_v50 }
 0x4cc   : > { %v3390_v31 = vmul.f32 0.5, %v3389_v44 }
 0x4ce   : > { %v3391_v3 = vsub.f32 1.5, %v3390_v31 }
 0x4d0   : > { %v3392_v55 = vmul.f32 %v3751_v2, %v3391_v3 }
 0x4d2   : > { %v3396_v1 = vsel %vm3395_vm5, %v3751_v2, %v3392_v55 }
 0x4d3   : > { %v3439_v14 = vmul.f32 %v3396_v1, %v5751_v21 }
 0x4d5   : > { %3455 = vst [vmem:[%s5691_s29 + $0x60] sm:$0xff] %v3439_v14  ;;  %v3258_v10 = vpop.f32.mrf.mxu3 }
 0x4d6   : > { %v3259_v43 = vadd.f32 %v5670_v46, %v3258_v10 }
 0x4d8   : > { %3752 = vrsqrt.f32 %v3259_v43  ;;  %vm3403_vm7 = vweird.f32 %v3259_v43 }
 0x4de   : > { %v3753_v59 = vpop.eup %3752 }
 0x4df   : > { %v3398_v63 = vmul.f32 %v3753_v59, %v3259_v43  ;;  %vm3404_vm6 = vweird.f32 %v3753_v59 }
 0x4e0   : > { %vm3405_vm8 = vmor %vm3403_vm7, %vm3404_vm6 }
 0x4e1   : > { %v3399_v8 = vmul.f32 %v3753_v59, %v3398_v63 }
 0x4e3   : > { %v3400_v29 = vmul.f32 0.5, %v3399_v8 }
 0x4e5   : > { %v3401_v13 = vsub.f32 1.5, %v3400_v29 }
 0x4e7   : > { %v3402_v24 = vmul.f32 %v3753_v59, %v3401_v13 }
 0x4e9   : > { %v3406_v61 = vsel %vm3405_vm8, %v3753_v59, %v3402_v24 }
 0x4ea   : > { %v3440_v40 = vmul.f32 %v3406_v61, %v5760_v62 }
 0x4ec   : > { %3456 = vst [vmem:[%s5691_s29 + $0x68] sm:$0xff] %v3440_v40  ;;  %v3261_v21 = vpop.f32.mrf.mxu3 }
 0x4ed   : > { %v3262_v26 = vadd.f32 %v5670_v46, %v3261_v21 }
 0x4ef   : > { %3754 = vrsqrt.f32 %v3262_v26  ;;  %vm3413_vm0 = vweird.f32 %v3262_v26 }
 0x4f5   : > { %v3755_v5 = vpop.eup %3754 }
 0x4f6   : > { %v3408_v23 = vmul.f32 %v3755_v5, %v3262_v26  ;;  %vm3414_vm9 = vweird.f32 %v3755_v5 }
 0x4f7   : > { %vm3415_vm10 = vmor %vm3413_vm0, %vm3414_vm9 }
 0x4f8   : > { %v3409_v30 = vmul.f32 %v3755_v5, %v3408_v23 }
 0x4fa   : > { %v3410_v56 = vmul.f32 0.5, %v3409_v30 }
 0x4fc   : > { %v3411_v51 = vsub.f32 1.5, %v3410_v56 }
 0x4fe   : > { %v3412_v12 = vmul.f32 %v3755_v5, %v3411_v51  ;;  %v3264_v36 = vpop.f32.mrf.mxu3 }
 0x4ff   : > { %v3265_v62 = vadd.f32 %v5670_v46, %v3264_v36 }
 0x500   : > { %v3416_v32 = vsel %vm3415_vm10, %v3755_v5, %v3412_v12 }
 0x501   : > { %v3441_v34 = vmul.f32 %v3416_v32, %v5769_v42  ;;  %3756 = vrsqrt.f32 %v3265_v62  ;;  %vm3423_vm1 = vweird.f32 %v3265_v62 }
 0x503   : > { %3457 = vst [vmem:[%s5691_s29 + $0x70] sm:$0xff] %v3441_v34 }
 0x507   : > { %v3757_v58 = vpop.eup %3756 }
 0x508   : > { %v3418_v27 = vmul.f32 %v3757_v58, %v3265_v62  ;;  %vm3424_vm11 = vweird.f32 %v3757_v58 }
 0x509   : > { %vm3425_vm12 = vmor %vm3423_vm1, %vm3424_vm11 }
 0x50a   : > { %v3419_v6 = vmul.f32 %v3757_v58, %v3418_v27 }
 0x50c   : > { %v3420_v22 = vmul.f32 0.5, %v3419_v6 }
 0x50e   : > { %v3421_v46 = vsub.f32 1.5, %v3420_v22 }
 0x510   : > { %v3422_v42 = vmul.f32 %v3757_v58, %v3421_v46 }
 0x512   : > { %v3426_v9 = vsel %vm3425_vm12, %v3757_v58, %v3422_v42 }
 0x513   : > { %v3442_v33 = vmul.f32 %v3426_v9, %v5778_v53 }
 0x515   : > { %3458 = vst [vmem:[%s5691_s29 + $0x78] sm:$0xff] %v3442_v33 }
 0x516   : > { %3787 = shalt.err (!%p3784_p6)
}
 0x517   : > { %s3865_s18 = smov 128  }
 0x518   : > { %3601 = dma.vmem_to_hbm [thread:$0]  (%p3967_p3), %s3476_s17, 2048, %s3478_s12, %s3460_s13, %s3865_s18, %s3865_s18, %s5897_s26  }
 0x519 PF: > { %p3607_p7 = scmp.ge.s32.totalorder %s3854_s16, 2  ;;  %s3492_s29 = sand.u32 1, %s3826_s30  }
 0x51a   : > { %s3493_s1 = scalar_lea.sflag [#allocation6], %s3492_s29 }
 0x51b   : > { %p3604_p9 = pnand %p3607_p7, %p3976_p8 }
 0x51d   : > { %p3605_p10 = pneg %p3604_p9 }
 0x51f   : > { %3821 = dma.done.wait (%p3605_p10), %s3493_s1, 2048  }
 0x520   : > { %3823 = vsyncadd (%p3605_p10), %s3493_s1, 4294965248  ;;  %s22_s16 = sadd.s32 1, %s3854_s16   ;;  %s5901_s22 = sld [smem:[#allocation12_spill]] }
 0x521   : > { %p19_p11 = scmp.ge.s32.totalorder %s22_s16, 6   ;;  %s5902_s12 = sld [smem:[#allocation8_spill]] }
 0x522   : > { %s5903_s13 = sld [smem:[#allocation9_spill]]  ;;  %s5906_s30 = smov %s3830_s10 }
 0x523   : > { %s5904_s14 = sld [smem:[#allocation10_spill]]  ;;  %s5907_s10 = smov %s3834_s11 }
 0x524   : > { %s5905_s15 = sld [smem:[#allocation11_spill]]  ;;  %21 = sbr.rel (!%p19_p11) target bundleno = 8 (0x8), region = 94 }
 0x526   : > { %s5908_s11 = smov %s5901_s22 }
 0x529   :  { %3499 = vsyncpa [#allocation6], 1 }
 0x52a   :  { %3501 = vsyncpa [#allocation6 + $0x1], 1 }

</bundles_post_ra>
